<compile_context>
chip_gen: v7x
topology: tpu7x:2x2x1
jax: 0.10.0
libtpu: 0.0.40
codegen_flags: <defaults>
</compile_context>

<pallas_src>
import functools

import jax
import jax.numpy as jnp
from jax.experimental import pallas as pl
from jax.experimental.pallas import tpu as pltpu

H_SIZE = 1024          # hidden size hard-coded in Super_Critic.__init__
N_RES = 4              # four ResBlocks per q*_emb branch
HEAD_H = 256           # hidden size of the q head
RES_STEPS = 2          # grid steps along the res axis (coarsened from 4)
RB_PER_STEP = N_RES // RES_STEPS   # residual blocks handled per grid step


# --------------------------------------------------------------------------
# Fused kernel: grid = (branch, res_step)
# --------------------------------------------------------------------------
def _super_critic_kernel(s_dim, a_dim, rb_per_step,
                         state_ref, action_ref,
                         w0_ref, b0_ref,          # Linear(state_dim -> H), bf16 / f32
                         wres_ref,                # int8 [rb_per_step, H, H] (streamed)
                         sb_ref,                  # f32  [rb_per_step, 2, H]: scale,bias
                         wlast_ref,               # bf16 [H, state_dim]
                         h256_ref,                # bf16 [S+A+1, 256]: wh1z|wh1a|wh2
                         hsm_ref,                 # f32  [3, 256]: bh1 | blast | bh2
                         q_ref,                   # out  [B, 1]
                         h_scratch):              # f32 VMEM carry [B, H]
    rb = pl.program_id(1)

    # --- first res step of this branch: also run the input Linear ------------
    # NOTE: h_scratch is only valid because the res axis is 'arbitrary' (serial)
    # and re-initialized here at rb == 0 for every branch; do not reorder the
    # grid or mark axis 1 'parallel'.
    @pl.when(rb == 0)
    def _():
        x = state_ref[...].astype(jnp.bfloat16)
        h_scratch[...] = (
            jnp.dot(x, w0_ref[...], preferred_element_type=jnp.float32)
            + b0_ref[...])

    # --- rb_per_step residual blocks:  h = h + relu((h @ Wq) * scale + b) ----
    h = h_scratch[...]
    for j in range(rb_per_step):                 # short static unroll
        w = wres_ref[j].astype(jnp.bfloat16)     # int8 -> bf16 (exact), VPU, hidden under DMA
        sb = sb_ref[j]                           # (2, H) f32: row0 = scale, row1 = bias
        y = jnp.dot(h.astype(jnp.bfloat16), w,
                    preferred_element_type=jnp.float32)
        y = y * sb[0:1, :] + sb[1:2, :]          # per-out-channel dequant scale + bias
        h = h + jnp.maximum(y, 0.0)
    h_scratch[...] = h

    # --- last res step: output Linear + q head --------------------------------
    @pl.when(rb == pl.num_programs(1) - 1)
    def _():
        z = (jnp.dot(h.astype(jnp.bfloat16), wlast_ref[...],
                     preferred_element_type=jnp.float32)
             + hsm_ref[1:2, 0:s_dim])                          # + blast
        a = action_ref[...].astype(jnp.bfloat16)
        h1 = (jnp.dot(z.astype(jnp.bfloat16), h256_ref[0:s_dim, :],
                      preferred_element_type=jnp.float32)
              + jnp.dot(a, h256_ref[s_dim:s_dim + a_dim, :],
                        preferred_element_type=jnp.float32)
              + hsm_ref[0:1, :])                               # + bh1
        h1 = jnp.maximum(h1, 0.0)                              # ReLU
        # Linear(256 -> 1) as a VPU/XLU lane reduction (keeps the MXU out of a
        # 1-output-column pass).
        wh2 = h256_ref[s_dim + a_dim:s_dim + a_dim + 1, :].astype(jnp.float32)
        q_ref[...] = (jnp.sum(h1 * wh2, axis=-1, keepdims=True)
                      + hsm_ref[2:3, 0:1])                     # + bh2


def super_critic_forward(state, action, kp):
    """Equivalent of Super_Critic.forward(state, action) -> (q1, q2).

    `kp` holds both branches' packed parameters stacked along a leading axis
    of size 2 (see pack_params)."""
    B, S = state.shape
    A = action.shape[1]

    head_idx = lambda br, rb: (br, 0, 0)   # per-branch params, resident across res steps
    res_idx = lambda br, rb: (br, rb, 0, 0)  # streamed per-step residual weights

    grid_spec = pltpu.PrefetchScalarGridSpec(
        num_scalar_prefetch=0,
        grid=(2, RES_STEPS),
        in_specs=[
            pl.BlockSpec((B, S), lambda br, rb: (0, 0)),                      # state
            pl.BlockSpec((B, A), lambda br, rb: (0, 0)),                      # action
            pl.BlockSpec((None, S, H_SIZE), head_idx),                        # w0   bf16
            pl.BlockSpec((None, 1, H_SIZE), head_idx),                        # b0   f32
            pl.BlockSpec((None, RB_PER_STEP, H_SIZE, H_SIZE), res_idx),       # wres int8
            pl.BlockSpec((None, RB_PER_STEP, 2, H_SIZE), res_idx),            # scale|bias
            pl.BlockSpec((None, H_SIZE, S), head_idx),                        # wlast bf16
            pl.BlockSpec((None, S + A + 1, HEAD_H), head_idx),                # wh1z|wh1a|wh2
            pl.BlockSpec((None, 3, HEAD_H), head_idx),                        # bh1|blast|bh2
        ],
        out_specs=pl.BlockSpec((None, B, 1), head_idx),
        scratch_shapes=[pltpu.VMEM((B, H_SIZE), jnp.float32)],
    )

    flops_per_branch = 2 * B * (S * H_SIZE + N_RES * H_SIZE * H_SIZE
                                + H_SIZE * S + (S + A) * HEAD_H + HEAD_H)
    bytes_accessed = (state.size * state.dtype.itemsize
                      + action.size * action.dtype.itemsize
                      + sum(int(v.size) * v.dtype.itemsize for v in kp.values())
                      + 2 * B * 4)
    cost = pl.CostEstimate(flops=2 * flops_per_branch, transcendentals=0,
                           bytes_accessed=int(bytes_accessed))

    kernel = functools.partial(_super_critic_kernel, S, A, RB_PER_STEP)

    q = pl.pallas_call(
        kernel,
        out_shape=jax.ShapeDtypeStruct((2, B, 1), jnp.float32),
        grid_spec=grid_spec,
        cost_estimate=cost,
        compiler_params=pltpu.CompilerParams(
            # branch axis -> megacore parallel on v7x; res axis carries the
            # h_scratch accumulator and must stay serial ("arbitrary").
            dimension_semantics=("parallel", "arbitrary"),
            # Resident footprint is only a few MiB (2 MiB int8 weight blocks,
            # double-buffered); 32 MiB fits v5e / v6e / v7x scoped VMEM.
            vmem_limit_bytes=32 * 1024 * 1024,
        ),
    )(state, action,
      kp["w0"], kp["b0"], kp["wres"], kp["res_sb"],
      kp["wlast"], kp["head256"], kp["headsm"])

    return q[0], q[1]


# --------------------------------------------------------------------------
# Deterministic parameter construction (synthetic weights, no checkpoint)
# --------------------------------------------------------------------------
def _init_branch_raw(key, state_dim, action_dim):
    ks = jax.random.split(key, 10)

    def u(k, shape, s=0.05):
        return jax.random.uniform(k, shape, jnp.float32, -s, s)

    return {
        # q*_emb
        "w0":    u(ks[0], (state_dim, H_SIZE)),
        "b0":    u(ks[1], (H_SIZE,)),
        "wres":  u(ks[2], (N_RES, H_SIZE, H_SIZE)),
        "bres":  u(ks[3], (N_RES, H_SIZE)),
        "wlast": u(ks[4], (H_SIZE, state_dim)),
        "blast": u(ks[5], (state_dim,)),
        # q* head: Linear(state_dim + action_dim, 256); rows [0:S] act on z,
        # rows [S:S+A] act on action (matches torch.cat([z, action], 1)).
        "wh1":   u(ks[6], (state_dim + action_dim, HEAD_H)),
        "bh1":   u(ks[7], (HEAD_H,)),
        "wh2":   u(ks[8], (HEAD_H,)),
        "bh2":   u(ks[9], ()),
    }


def _quantize_res(wres):
    """Per-output-channel int8 quantization of the residual weights."""
    amax = jnp.max(jnp.abs(wres), axis=1, keepdims=True)          # (N_RES, 1, H)
    scale = jnp.maximum(amax, 1e-12) / 127.0
    wq = jnp.clip(jnp.round(wres / scale), -127.0, 127.0).astype(jnp.int8)
    return wq, scale[:, 0, :]                                     # (N_RES,H,H), (N_RES,H)


def pack_params(branches):
    """Pack both branches' raw f32 params into the kernel's stacked layout."""
    w0, b0, wres_q, res_sb, wlast, head256, headsm = [], [], [], [], [], [], []
    for p in branches:
        w0.append(p["w0"].astype(jnp.bfloat16))
        b0.append(p["b0"].reshape(1, H_SIZE))
        wq, scale = _quantize_res(p["wres"])
        wres_q.append(wq)
        res_sb.append(jnp.stack([scale, p["bres"]], axis=1))       # (N_RES, 2, H)
        wlast.append(p["wlast"].astype(jnp.bfloat16))
        head256.append(jnp.concatenate(
            [p["wh1"], p["wh2"].reshape(1, HEAD_H)], axis=0).astype(jnp.bfloat16))
        s_dim = p["blast"].shape[0]
        row_bh1 = p["bh1"].reshape(1, HEAD_H)
        row_blast = jnp.zeros((1, HEAD_H), jnp.float32).at[0, :s_dim].set(p["blast"])
        row_bh2 = jnp.zeros((1, HEAD_H), jnp.float32).at[0, 0].set(p["bh2"])
        headsm.append(jnp.concatenate([row_bh1, row_blast, row_bh2], axis=0))
    stk = lambda xs: jnp.stack(xs, axis=0)
    return {
        "w0": stk(w0), "b0": stk(b0),
        "wres": stk(wres_q), "res_sb": stk(res_sb),
        "wlast": stk(wlast), "head256": stk(head256), "headsm": stk(headsm),
    }


# Pure-JAX reference with the same storage precision (bf16/int8 weights,
# f32 accumulation, scale applied after the matmul — exactly the kernel math).
def _branch_ref(state, action, p):
    bf = lambda x: x.astype(jnp.bfloat16).astype(jnp.float32)
    S = state.shape[1]
    h = bf(state) @ bf(p["w0"]) + p["b0"][None, :]
    wq, scale = _quantize_res(p["wres"])
    for r in range(N_RES):
        y = (bf(h) @ wq[r].astype(jnp.float32)) * scale[r][None, :] + p["bres"][r][None, :]
        h = h + jnp.maximum(y, 0.0)
    z = bf(h) @ bf(p["wlast"]) + p["blast"][None, :]
    w1 = bf(p["wh1"])
    h1 = bf(z) @ w1[:S] + bf(action) @ w1[S:] + p["bh1"][None, :]
    h1 = jnp.maximum(h1, 0.0)
    return jnp.sum(h1 * bf(p["wh2"])[None, :], axis=-1, keepdims=True) + p["bh2"]


if __name__ == "__main__":
    B, STATE_DIM, ACTION_DIM = 2, 16, 8

    key = jax.random.PRNGKey(0)
    k_state, k_action, k_p1, k_p2 = jax.random.split(key, 4)

    state = jax.random.normal(k_state, (B, STATE_DIM), jnp.float32)
    action = jax.random.normal(k_action, (B, ACTION_DIM), jnp.float32)

    params_q1 = _init_branch_raw(k_p1, STATE_DIM, ACTION_DIM)
    params_q2 = _init_branch_raw(k_p2, STATE_DIM, ACTION_DIM)
    kp = pack_params([params_q1, params_q2])

    q1, q2 = super_critic_forward(state, action, kp)
    q1 = jax.block_until_ready(q1)
    q2 = jax.block_until_ready(q2)

    # Verify against a pure-JAX reference of the same forward pass.
    q1_ref = _branch_ref(state, action, params_q1)
    q2_ref = _branch_ref(state, action, params_q2)
    assert q1.shape == (B, 1) and q2.shape == (B, 1)
    assert jnp.allclose(q1, q1_ref, rtol=2e-2, atol=2e-2), (q1, q1_ref)
    assert jnp.allclose(q2, q2_ref, rtol=2e-2, atol=2e-2), (q2, q2_ref)

    print("KERNEL_OK")
</pallas_src>

<mosaic_0001>
module attributes {stable_mosaic.version = 11 : i64} {
  func.func @_super_critic_kernel(%arg0: i32, %arg1: i32, %arg2: memref<2x16xf32, #tpu.memory_space<vmem>>, %arg3: memref<2x8xf32, #tpu.memory_space<vmem>>, %arg4: memref<1x16x1024xbf16, #tpu.memory_space<vmem>>, %arg5: memref<1x1x1024xf32, #tpu.memory_space<vmem>>, %arg6: memref<1x2x1024x1024xi8, #tpu.memory_space<vmem>>, %arg7: memref<1x2x2x1024xf32, #tpu.memory_space<vmem>>, %arg8: memref<1x1024x16xbf16, #tpu.memory_space<vmem>>, %arg9: memref<1x25x256xbf16, #tpu.memory_space<vmem>>, %arg10: memref<1x3x256xf32, #tpu.memory_space<vmem>>, %arg11: memref<1x2x1xf32, #tpu.memory_space<vmem>>, %arg12: memref<2x1024xf32, #tpu.memory_space<vmem>>) attributes {dimension_semantics = [#tpu.dimension_semantics<parallel>, #tpu.dimension_semantics<arbitrary>], iteration_bounds = array<i64: 2, 2>, scalar_prefetch = 0 : i64, scratch_operands = 1 : i64, tpu.core_type = #tpu.core_type<tc>, window_params = [{pipeline_mode = #tpu.pipeline_mode<synchronous>, transform_indices = @transform_0, window_bounds = array<i64: 2, 16>}, {pipeline_mode = #tpu.pipeline_mode<synchronous>, transform_indices = @transform_1, window_bounds = array<i64: 2, 8>}, {transform_indices = @transform_2, window_bounds = array<i64: 1, 16, 1024>}, {transform_indices = @transform_3, window_bounds = array<i64: 1, 1, 1024>}, {transform_indices = @transform_4, window_bounds = array<i64: 1, 2, 1024, 1024>}, {transform_indices = @transform_5, window_bounds = array<i64: 1, 2, 2, 1024>}, {transform_indices = @transform_6, window_bounds = array<i64: 1, 1024, 16>}, {transform_indices = @transform_7, window_bounds = array<i64: 1, 25, 256>}, {transform_indices = @transform_8, window_bounds = array<i64: 1, 3, 256>}, {transform_indices = @transform_9, window_bounds = array<i64: 1, 2, 1>}]} {
    %c0_i32 = arith.constant 0 : i32
    %0 = arith.cmpi eq, %arg1, %c0_i32 : i32
    %1 = arith.extui %0 : i1 to i32
    %c0_i32_0 = arith.constant 0 : i32
    %2 = arith.cmpi ne, %1, %c0_i32_0 : i32
    scf.if %2 {
      %c0_23 = arith.constant 0 : index
      %c0_24 = arith.constant 0 : index
      %40 = vector.load %arg2[%c0_23, %c0_24] : memref<2x16xf32, #tpu.memory_space<vmem>>, vector<2x16xf32>
      %41 = arith.truncf %40 : vector<2x16xf32> to vector<2x16xbf16>
      %c0_25 = arith.constant 0 : index
      %c0_26 = arith.constant 0 : index
      %c0_27 = arith.constant 0 : index
      %42 = vector.load %arg4[%c0_25, %c0_26, %c0_27] : memref<1x16x1024xbf16, #tpu.memory_space<vmem>>, vector<1x16x1024xbf16>
      %43 = vector.shape_cast %42 : vector<1x16x1024xbf16> to vector<16x1024xbf16>
      %cst_28 = arith.constant dense<0.000000e+00> : vector<2x1024xf32>
      %44 = tpu.matmul %41, %43, %cst_28 {dimension_numbers = #tpu.dot_dimension_numbers<[1], [0], [0], [1], [0, 0, 1, 1], [], []>} : vector<2x16xbf16>, vector<16x1024xbf16>, vector<2x1024xf32> -> vector<2x1024xf32>
      %c0_29 = arith.constant 0 : index
      %c0_30 = arith.constant 0 : index
      %c0_31 = arith.constant 0 : index
      %45 = vector.load %arg5[%c0_29, %c0_30, %c0_31] : memref<1x1x1024xf32, #tpu.memory_space<vmem>>, vector<1x1x1024xf32>
      %46 = vector.shape_cast %45 : vector<1x1x1024xf32> to vector<1x1024xf32>
      %47 = vector.broadcast %46 : vector<1x1024xf32> to vector<2x1024xf32>
      %48 = arith.addf %44, %47 : vector<2x1024xf32>
      %c0_32 = arith.constant 0 : index
      %c0_33 = arith.constant 0 : index
      %49 = vector.load %arg12[%c0_32, %c0_33] : memref<2x1024xf32, #tpu.memory_space<vmem>>, vector<2x1024xf32>
      tpu.vector_store %arg12[%c0_32, %c0_33], %48 {strides = array<i32>} : memref<2x1024xf32, #tpu.memory_space<vmem>>, vector<2x1024xf32>,
    } else {
    }
    %c0 = arith.constant 0 : index
    %c0_1 = arith.constant 0 : index
    %3 = vector.load %arg12[%c0, %c0_1] : memref<2x1024xf32, #tpu.memory_space<vmem>>, vector<2x1024xf32>
    %c0_2 = arith.constant 0 : index
    %c0_3 = arith.constant 0 : index
    %c0_4 = arith.constant 0 : index
    %c0_5 = arith.constant 0 : index
    %4 = vector.load %arg6[%c0_2, %c0_3, %c0_4, %c0_5] : memref<1x2x1024x1024xi8, #tpu.memory_space<vmem>>, vector<1x1x1024x1024xi8>
    %5 = vector.shape_cast %4 : vector<1x1x1024x1024xi8> to vector<1024x1024xi8>
    %6 = arith.sitofp %5 : vector<1024x1024xi8> to vector<1024x1024xbf16>
    %c0_6 = arith.constant 0 : index
    %c0_7 = arith.constant 0 : index
    %c0_8 = arith.constant 0 : index
    %c0_9 = arith.constant 0 : index
    %7 = vector.load %arg7[%c0_6, %c0_7, %c0_8, %c0_9] : memref<1x2x2x1024xf32, #tpu.memory_space<vmem>>, vector<1x1x2x1024xf32>
    %8 = vector.shape_cast %7 : vector<1x1x2x1024xf32> to vector<2x1024xf32>
    %9 = arith.truncf %3 : vector<2x1024xf32> to vector<2x1024xbf16>
    %cst = arith.constant dense<0.000000e+00> : vector<2x1024xf32>
    %10 = tpu.matmul %9, %6, %cst {dimension_numbers = #tpu.dot_dimension_numbers<[1], [0], [0], [1], [0, 0, 1, 1], [], []>} : vector<2x1024xbf16>, vector<1024x1024xbf16>, vector<2x1024xf32> -> vector<2x1024xf32>
    %11 = vector.extract_strided_slice %8 {offsets = [0, 0], sizes = [1, 1024], strides = [1, 1]} : vector<2x1024xf32> to vector<1x1024xf32>
    %12 = vector.broadcast %11 : vector<1x1024xf32> to vector<2x1024xf32>
    %13 = arith.mulf %10, %12 : vector<2x1024xf32>
    %14 = vector.extract_strided_slice %8 {offsets = [1, 0], sizes = [1, 1024], strides = [1, 1]} : vector<2x1024xf32> to vector<1x1024xf32>
    %15 = vector.broadcast %14 : vector<1x1024xf32> to vector<2x1024xf32>
    %16 = arith.addf %13, %15 : vector<2x1024xf32>
    %cst_10 = arith.constant 0.000000e+00 : f32
    %17 = vector.broadcast %cst_10 : f32 to vector<2x1024xf32>
    %18 = arith.maximumf %16, %17 : vector<2x1024xf32>
    %19 = arith.addf %3, %18 : vector<2x1024xf32>
    %c0_11 = arith.constant 0 : index
    %c1 = arith.constant 1 : index
    %c0_12 = arith.constant 0 : index
    %c0_13 = arith.constant 0 : index
    %20 = vector.load %arg6[%c0_11, %c1, %c0_12, %c0_13] : memref<1x2x1024x1024xi8, #tpu.memory_space<vmem>>, vector<1x1x1024x1024xi8>
    %21 = vector.shape_cast %20 : vector<1x1x1024x1024xi8> to vector<1024x1024xi8>
    %22 = arith.sitofp %21 : vector<1024x1024xi8> to vector<1024x1024xbf16>
    %c0_14 = arith.constant 0 : index
    %c1_15 = arith.constant 1 : index
    %c0_16 = arith.constant 0 : index
    %c0_17 = arith.constant 0 : index
    %23 = vector.load %arg7[%c0_14, %c1_15, %c0_16, %c0_17] : memref<1x2x2x1024xf32, #tpu.memory_space<vmem>>, vector<1x1x2x1024xf32>
    %24 = vector.shape_cast %23 : vector<1x1x2x1024xf32> to vector<2x1024xf32>
    %25 = arith.truncf %19 : vector<2x1024xf32> to vector<2x1024xbf16>
    %cst_18 = arith.constant dense<0.000000e+00> : vector<2x1024xf32>
    %26 = tpu.matmul %25, %22, %cst_18 {dimension_numbers = #tpu.dot_dimension_numbers<[1], [0], [0], [1], [0, 0, 1, 1], [], []>} : vector<2x1024xbf16>, vector<1024x1024xbf16>, vector<2x1024xf32> -> vector<2x1024xf32>
    %27 = vector.extract_strided_slice %24 {offsets = [0, 0], sizes = [1, 1024], strides = [1, 1]} : vector<2x1024xf32> to vector<1x1024xf32>
    %28 = vector.broadcast %27 : vector<1x1024xf32> to vector<2x1024xf32>
    %29 = arith.mulf %26, %28 : vector<2x1024xf32>
    %30 = vector.extract_strided_slice %24 {offsets = [1, 0], sizes = [1, 1024], strides = [1, 1]} : vector<2x1024xf32> to vector<1x1024xf32>
    %31 = vector.broadcast %30 : vector<1x1024xf32> to vector<2x1024xf32>
    %32 = arith.addf %29, %31 : vector<2x1024xf32>
    %cst_19 = arith.constant 0.000000e+00 : f32
    %33 = vector.broadcast %cst_19 : f32 to vector<2x1024xf32>
    %34 = arith.maximumf %32, %33 : vector<2x1024xf32>
    %35 = arith.addf %19, %34 : vector<2x1024xf32>
    %c0_20 = arith.constant 0 : index
    %c0_21 = arith.constant 0 : index
    %36 = vector.load %arg12[%c0_20, %c0_21] : memref<2x1024xf32, #tpu.memory_space<vmem>>, vector<2x1024xf32>
    tpu.vector_store %arg12[%c0_20, %c0_21], %35 {strides = array<i32>} : memref<2x1024xf32, #tpu.memory_space<vmem>>, vector<2x1024xf32>,
    %c1_i32 = arith.constant 1 : i32
    %37 = arith.cmpi eq, %arg1, %c1_i32 : i32
    %38 = arith.extui %37 : i1 to i32
    %c0_i32_22 = arith.constant 0 : i32
    %39 = arith.cmpi ne, %38, %c0_i32_22 : i32
    scf.if %39 {
      %40 = arith.truncf %35 : vector<2x1024xf32> to vector<2x1024xbf16>
      %c0_23 = arith.constant 0 : index
      %c0_24 = arith.constant 0 : index
      %c0_25 = arith.constant 0 : index
      %41 = vector.load %arg8[%c0_23, %c0_24, %c0_25] : memref<1x1024x16xbf16, #tpu.memory_space<vmem>>, vector<1x1024x16xbf16>
      %42 = vector.shape_cast %41 : vector<1x1024x16xbf16> to vector<1024x16xbf16>
      %cst_26 = arith.constant dense<0.000000e+00> : vector<2x16xf32>
      %43 = tpu.matmul %40, %42, %cst_26 {dimension_numbers = #tpu.dot_dimension_numbers<[1], [0], [0], [1], [0, 0, 1, 1], [], []>} : vector<2x1024xbf16>, vector<1024x16xbf16>, vector<2x16xf32> -> vector<2x16xf32>
      %c0_27 = arith.constant 0 : index
      %c1_28 = arith.constant 1 : index
      %c0_29 = arith.constant 0 : index
      %44 = vector.load %arg10[%c0_27, %c1_28, %c0_29] : memref<1x3x256xf32, #tpu.memory_space<vmem>>, vector<1x1x16xf32>
      %45 = vector.shape_cast %44 : vector<1x1x16xf32> to vector<1x16xf32>
      %46 = vector.broadcast %45 : vector<1x16xf32> to vector<2x16xf32>
      %47 = arith.addf %43, %46 : vector<2x16xf32>
      %c0_30 = arith.constant 0 : index
      %c0_31 = arith.constant 0 : index
      %48 = vector.load %arg3[%c0_30, %c0_31] : memref<2x8xf32, #tpu.memory_space<vmem>>, vector<2x8xf32>
      %49 = arith.truncf %48 : vector<2x8xf32> to vector<2x8xbf16>
      %50 = arith.truncf %47 : vector<2x16xf32> to vector<2x16xbf16>
      %c0_32 = arith.constant 0 : index
      %c0_33 = arith.constant 0 : index
      %c0_34 = arith.constant 0 : index
      %51 = vector.load %arg9[%c0_32, %c0_33, %c0_34] : memref<1x25x256xbf16, #tpu.memory_space<vmem>>, vector<1x16x256xbf16>
      %52 = vector.shape_cast %51 : vector<1x16x256xbf16> to vector<16x256xbf16>
      %cst_35 = arith.constant dense<0.000000e+00> : vector<2x256xf32>
      %53 = tpu.matmul %50, %52, %cst_35 {dimension_numbers = #tpu.dot_dimension_numbers<[1], [0], [0], [1], [0, 0, 1, 1], [], []>} : vector<2x16xbf16>, vector<16x256xbf16>, vector<2x256xf32> -> vector<2x256xf32>
      %c0_36 = arith.constant 0 : index
      %c16 = arith.constant 16 : index
      %c0_37 = arith.constant 0 : index
      %54 = vector.load %arg9[%c0_36, %c16, %c0_37] : memref<1x25x256xbf16, #tpu.memory_space<vmem>>, vector<1x8x256xbf16>
      %55 = vector.shape_cast %54 : vector<1x8x256xbf16> to vector<8x256xbf16>
      %cst_38 = arith.constant dense<0.000000e+00> : vector<2x256xf32>
      %56 = tpu.matmul %49, %55, %cst_38 {dimension_numbers = #tpu.dot_dimension_numbers<[1], [0], [0], [1], [0, 0, 1, 1], [], []>} : vector<2x8xbf16>, vector<8x256xbf16>, vector<2x256xf32> -> vector<2x256xf32>
      %57 = arith.addf %53, %56 : vector<2x256xf32>
      %c0_39 = arith.constant 0 : index
      %c0_40 = arith.constant 0 : index
      %c0_41 = arith.constant 0 : index
      %58 = vector.load %arg10[%c0_39, %c0_40, %c0_41] : memref<1x3x256xf32, #tpu.memory_space<vmem>>, vector<1x1x256xf32>
      %59 = vector.shape_cast %58 : vector<1x1x256xf32> to vector<1x256xf32>
      %60 = vector.broadcast %59 : vector<1x256xf32> to vector<2x256xf32>
      %61 = arith.addf %57, %60 : vector<2x256xf32>
      %cst_42 = arith.constant 0.000000e+00 : f32
      %62 = vector.broadcast %cst_42 : f32 to vector<2x256xf32>
      %63 = arith.maximumf %61, %62 : vector<2x256xf32>
      %c0_43 = arith.constant 0 : index
      %c24 = arith.constant 24 : index
      %c0_44 = arith.constant 0 : index
      %64 = vector.load %arg9[%c0_43, %c24, %c0_44] : memref<1x25x256xbf16, #tpu.memory_space<vmem>>, vector<1x1x256xbf16>
      %65 = vector.shape_cast %64 : vector<1x1x256xbf16> to vector<1x256xbf16>
      %66 = arith.extf %65 : vector<1x256xbf16> to vector<1x256xf32>
      %67 = vector.broadcast %66 : vector<1x256xf32> to vector<2x256xf32>
      %68 = arith.mulf %63, %67 : vector<2x256xf32>
      %cst_45 = arith.constant dense<0.000000e+00> : vector<2xf32>
      %69 = vector.multi_reduction <add>, %68, %cst_45 [1] : vector<2x256xf32> to vector<2xf32>
      %70 = vector.shape_cast %69 : vector<2xf32> to vector<2x1xf32>
      %c0_46 = arith.constant 0 : index
      %c2 = arith.constant 2 : index
      %c0_47 = arith.constant 0 : index
      %71 = vector.load %arg10[%c0_46, %c2, %c0_47] : memref<1x3x256xf32, #tpu.memory_space<vmem>>, vector<1x1x1xf32>
      %72 = vector.shape_cast %71 : vector<1x1x1xf32> to vector<1x1xf32>
      %73 = vector.broadcast %72 : vector<1x1xf32> to vector<2x1xf32>
      %74 = arith.addf %70, %73 : vector<2x1xf32>
      %c0_48 = arith.constant 0 : index
      %c0_49 = arith.constant 0 : index
      %c0_50 = arith.constant 0 : index
      %75 = vector.load %arg11[%c0_48, %c0_49, %c0_50] : memref<1x2x1xf32, #tpu.memory_space<vmem>>, vector<1x2x1xf32>
      %76 = vector.shape_cast %75 : vector<1x2x1xf32> to vector<2x1xf32>
      %77 = vector.shape_cast %74 : vector<2x1xf32> to vector<1x2x1xf32>
      tpu.vector_store %arg11[%c0_48, %c0_49, %c0_50], %77 {strides = array<i32>} : memref<1x2x1xf32, #tpu.memory_space<vmem>>, vector<1x2x1xf32>,
    } else {
    }
    return
  }
  func.func @transform_0(%arg0: i32, %arg1: i32) -> (i32, i32) {
    %c0_i32 = arith.constant 0 : i32
    %c0_i32_0 = arith.constant 0 : i32
    %c0_i32_1 = arith.constant 0 : i32
    return %c0_i32, %c0_i32_0 : i32, i32
  }
  func.func @transform_1(%arg0: i32, %arg1: i32) -> (i32, i32) {
    %c0_i32 = arith.constant 0 : i32
    %c0_i32_0 = arith.constant 0 : i32
    %c0_i32_1 = arith.constant 0 : i32
    return %c0_i32, %c0_i32_0 : i32, i32
  }
  func.func @transform_2(%arg0: i32, %arg1: i32) -> (i32, i32, i32) {
    %c0_i32 = arith.constant 0 : i32
    %c0_i32_0 = arith.constant 0 : i32
    %c0_i32_1 = arith.constant 0 : i32
    return %arg0, %c0_i32, %c0_i32_0 : i32, i32, i32
  }
  func.func @transform_3(%arg0: i32, %arg1: i32) -> (i32, i32, i32) {
    %c0_i32 = arith.constant 0 : i32
    %c0_i32_0 = arith.constant 0 : i32
    %c0_i32_1 = arith.constant 0 : i32
    return %arg0, %c0_i32, %c0_i32_0 : i32, i32, i32
  }
  func.func @transform_4(%arg0: i32, %arg1: i32) -> (i32, i32, i32, i32) {
    %c0_i32 = arith.constant 0 : i32
    %c0_i32_0 = arith.constant 0 : i32
    %c0_i32_1 = arith.constant 0 : i32
    return %arg0, %arg1, %c0_i32, %c0_i32_0 : i32, i32, i32, i32
  }
  func.func @transform_5(%arg0: i32, %arg1: i32) -> (i32, i32, i32, i32) {
    %c0_i32 = arith.constant 0 : i32
    %c0_i32_0 = arith.constant 0 : i32
    %c0_i32_1 = arith.constant 0 : i32
    return %arg0, %arg1, %c0_i32, %c0_i32_0 : i32, i32, i32, i32
  }
  func.func @transform_6(%arg0: i32, %arg1: i32) -> (i32, i32, i32) {
    %c0_i32 = arith.constant 0 : i32
    %c0_i32_0 = arith.constant 0 : i32
    %c0_i32_1 = arith.constant 0 : i32
    return %arg0, %c0_i32, %c0_i32_0 : i32, i32, i32
  }
  func.func @transform_7(%arg0: i32, %arg1: i32) -> (i32, i32, i32) {
    %c0_i32 = arith.constant 0 : i32
    %c0_i32_0 = arith.constant 0 : i32
    %c0_i32_1 = arith.constant 0 : i32
    return %arg0, %c0_i32, %c0_i32_0 : i32, i32, i32
  }
  func.func @transform_8(%arg0: i32, %arg1: i32) -> (i32, i32, i32) {
    %c0_i32 = arith.constant 0 : i32
    %c0_i32_0 = arith.constant 0 : i32
    %c0_i32_1 = arith.constant 0 : i32
    return %arg0, %c0_i32, %c0_i32_0 : i32, i32, i32
  }
  func.func @transform_9(%arg0: i32, %arg1: i32) -> (i32, i32, i32) {
    %c0_i32 = arith.constant 0 : i32
    %c0_i32_0 = arith.constant 0 : i32
    %c0_i32_1 = arith.constant 0 : i32
    return %arg0, %c0_i32, %c0_i32_0 : i32, i32, i32
  }
}

</mosaic_0001>

<bundles_post_ra>
// kernel: tpu_custom_call.1
= control target key start
LH: loop header
LB: loop body
LE: loop exit
PB: predicated region body
PF: predicated region fallthrough
CT: control target
= control target key end

     0   :  { %s7819_s0 = inlined_call_operand.hbm [shape: f32[2,16], index: 0, kind: input, shape index: {}]   ;;  %s7820_s1 = inlined_call_operand.hbm [shape: f32[2,8], index: 1, kind: input, shape index: {}]   ;;  %s7821_s2 = inlined_call_operand.hbm [shape: bf16[2,16,1024], index: 2, kind: input, shape index: {}]   ;;  %s7822_s3 = inlined_call_operand.hbm [shape: f32[2,1,1024], index: 3, kind: input, shape index: {}]   ;;  %s7823_s4 = inlined_call_operand.hbm [shape: s8[2,4,1024,1024], index: 4, kind: input, shape index: {}]   ;;  %s7824_s5 = inlined_call_operand.hbm [shape: f32[2,4,2,1024], index: 5, kind: input, shape index: {}]   ;;  %s7825_s6 = inlined_call_operand.vmem [shape: bf16[2,1024,16], index: 6, kind: input, shape index: {}]   ;;  %s7826_s7 = inlined_call_operand.vmem [shape: bf16[2,25,256], index: 7, kind: input, shape index: {}]   ;;  %s7827_s8 = inlined_call_operand.vmem [shape: f32[2,3,256], index: 8, kind: input, shape index: {}]   ;;  %s7828_s9 = inlined_call_operand.vmem [shape: f32[2,2,1], index: 9, kind: output, shape index: {}]  }
   0x1   :  { %7852 = sst [smem:[#allocation23_spill]] %s7819_s0 }
   0x2   :  { %7853 = sst [smem:[#allocation24_spill]] %s7820_s1 }
   0x3   :  { %7854 = sst [smem:[#allocation25_spill]] %s7821_s2 }
   0x4   :  { %7855 = sst [smem:[#allocation26_spill]] %s7822_s3 }
   0x5   :  { %7856 = sst [smem:[#allocation27_spill]] %s7823_s4 }
   0x6   :  { %7857 = sst [smem:[#allocation28_spill]] %s7824_s5 }
   0x7   :  { %7858 = sst [smem:[#allocation29_spill]] %s7825_s6 }
   0x8   :  { %7859 = sst [smem:[#allocation30_spill]] %s7826_s7 }
   0x9   :  { %7860 = sst [smem:[#allocation31_spill]] %s7827_s8 }
   0xa   :  { %7861 = sst [smem:[#allocation32_spill]] %s7828_s9 }
   0xb   :  { %14 = vsyncpa [#allocation4], 0 }
   0xc   :  { %15 = vsyncpa [#allocation6], 0  ;;  %s6497_s30 = smov 0   ;;  %s6499_s10 = smov 0  }
   0xd   :  { %s6501_s11 = smov 0   ;;  %s6503_s12 = smov 0  }
   0xe   :  { %s6505_s13 = smov 0   ;;  %s6507_s14 = smov 0  }
   0xf   :  { %s6509_s15 = smov 0   ;;  %s6511_s16 = smov 0  }
  0x10   :  { %s6513_s17 = smov 0   ;;  %s6515_s18 = smov 0  }
  0x11   :  { %s6517_s19 = smov 0  }
  0x12 LB: > { %7862 = sst [smem:[#allocation15_spill]] %s6413_s15  ;;  %s7829_s20 = sadd.s32 4294967295, %s6429_s19   ;;  %s6429_s19 = sphi %s6517_s19, %s21_s19   ;;  %s6425_s18 = sphi %s6515_s18, %s7922_s18   ;;  %s6421_s17 = sphi %s6513_s17, %s7914_s17   ;;  %s6417_s16 = sphi %s6511_s16, %s7913_s16   ;;  %s6413_s15 = sphi %s6509_s15, %s7912_s15   ;;  %s6409_s14 = sphi %s6507_s14, %s7921_s14   ;;  %s6405_s13 = sphi %s6505_s13, %s7920_s13   ;;  %s6401_s12 = sphi %s6503_s12, %s7919_s12   ;;  %s6397_s11 = sphi %s6501_s11, %s7918_s11   ;;  %s6393_s10 = sphi %s6499_s10, %s7917_s10   ;;  %s6389_s30 = sphi %s6497_s30, %s7916_s30  }
  0x13   : > { %7863 = sst [smem:[#allocation16_spill]] %s6417_s16  ;;  %p89_p0 = scmp.ne.s32.totalorder %s6409_s14, %s6405_s13 }
  0x14   : > { %7864 = sst [smem:[#allocation17_spill]] %s6421_s17  ;;  %p90_p1 = scmp.eq.s32.totalorder %s6429_s19, 0 }
  0x15   : > { %7865 = sst [smem:[#allocation18_spill]] %s6425_s18  ;;  %p95_p2 = scmp.ne.s32.totalorder %s6405_s13, %s6401_s12 }
  0x16   : > { %p6556_p3 = scmp.eq.s32.totalorder %s7829_s20, 0  ;;  %p6560_p4 = por %p90_p1, %p89_p0 }
  0x17   : > { %p143_p6 = scmp.ne.s32.totalorder %s6397_s11, %s6393_s10  ;;  %p149_p7 = scmp.ne.s32.totalorder %s6393_s10, %s6389_s30 }
  0x18   : > { %s7866_s22 = scalar_select %p6556_p3, 1, 0 }
  0x19   : > { %p6567_p5 = por %p6556_p3, %p95_p2  ;;  %p5365_p8 = scmp.ge.s32.totalorder %s6429_s19, 1 }
  0x1a   : > { %p145_p9 = por %p143_p6, %p90_p1  ;;  %p292_p10 = scmp.lt.s32.totalorder %s6429_s19, 5 }
  0x1b   : > { %s7868_s25 = scalar_select %p6567_p5, 1, 0 }
  0x1c   : > { %p6578_p11 = por %p149_p7, %p6556_p3  ;;  %p6582_p12 = pnand %p5365_p8, %p292_p10 }
  0x1d   : > { %s6431_s28 = smov [#allocation3]   ;;  %p5975_p0 = scmp.lt.s32.totalorder %s6429_s19, 4 }
  0x1e   : > { %s7869_s26 = scalar_select %p6578_p11, 1, 0 }
  0x1f   : > { %s7871_s27 = scalar_select %p6582_p12, 1, 0 }
  0x20   : > { %7870 = sst [smem:[#allocation19_spill]] %s7869_s26  ;;  %s305_s29 = sshll.u32 %s6431_s28, 4  ;;  %s306_s29 = int_to_ptr.vmem [resolvable:$true] %s305_s29 }
  0x21   : > { %p5953_p13 = pneg %p6582_p12  ;;  %p6597_p1 = pnand %p5975_p0, %p6560_p4 }
  0x22   : > { %p6601_p6 = pnand %p5975_p0, %p145_p9  ;;  %s327_s28 = sand.u32 1, %s6429_s19  }
  0x23   : > { %p6591_p2 = pnand %p5953_p13, %p6556_p3  ;;  %s7875_s0 = sld [smem:[#allocation23_spill]] }
  0x24   : > { %s7873_s12 = scalar_select %p6597_p1, 1, 0 }
  0x25   : > { %s7872_s30 = scalar_select %p6591_p2, 1, 0 }
  0x26   : > { %s7874_s20 = scalar_select %p6601_p6, 1, 0 }
  0x27   : > { %p7840_p8 = pneg %p6591_p2 }
  0x29   : > { %s6151_s15 = scalar_lea.hbm %s7875_s0, 32 }
  0x2a   : > { %p6152_p7 = scmp.ne.s32.totalorder %s7875_s0, %s6151_s15  ;;  %p6158_p9 = scmp.lt.u32.totalorder %s6151_s15, %s7875_s0 }
  0x2c   : > { %p6154_p4 = pnand %p7840_p8, %p6152_p7 }
  0x2e   : > { %p6155_p10 = pneg %p6154_p4 }
  0x30   : > { %p6160_p13 = pnand %p6158_p9, %p6155_p10 }
  0x32   : > { %6163 = shalt.err (!%p6160_p13)
}
  0x33   : > { %s6164_s6 = scalar_lea.vmem %s306_s29, 32  ;;  %p6172_p3 = scmp.lt.s32.totalorder %s306_s29, %s306_s29 }
  0x34   : > { %p6165_p0 = scmp.ne.s32.totalorder %s306_s29, %s6164_s6  ;;  %p6173_p12 = scmp.lt.s32.totalorder %s6164_s6, %s6164_s6 }
  0x36   : > { %p6167_p11 = pnand %p6165_p0, %p7840_p8  ;;  %p6174_p6 = por %p6173_p12, %p6172_p3 }
  0x38   : > { %p6168_p5 = pneg %p6167_p11 }
  0x3a   : > { %p6175_p1 = pnand %p6174_p6, %p6168_p5 }
  0x3c   : > { %6178 = shalt.err (!%p6175_p1)
}
  0x3d   : > { %5956 = dma.hbm_to_vmem [thread:$0]  (!%p6591_p2), %s7875_s0, 32, %s306_s29, [#allocation4]  }
  0x3e   : > { %s7839_s7 = sand.u32 1, %s6409_s14   ;;  %s7838_s21 = sshll.u32 %s6425_s18, 10 }
  0x3f   : > { %s5369_s15 = sshll.u32 %s7839_s7, 6  ;;  %s7876_s2 = sld [smem:[#allocation25_spill]] }
  0x40   : > { %s331_s8 = scalar_lea.vmem [#allocation7], %s5369_s15  ;;  %s6641_s16 = scalar_lea.sflag [#allocation4], %s327_s28 }
  0x41   : > { %s338_s9 = sshll.u32 %s331_s8, 4  ;;  %p7877_p5 = scmp.ne.s32.totalorder %s7873_s12, 0  ;;  %s6639_s9 = int_to_ptr.vmem [resolvable:$true] %s338_s9 }
  0x43   : > { %p6181_p11 = pneg %p7877_p5 }
  0x45   : > { %s6637_s23 = scalar_lea.hbm %s7876_s2, %s7838_s21  ;;  %s6184_s21 = scalar_lea.hbm %s7876_s2, 2048 }
  0x46   : > { %s6179_s29 = scalar_lea.hbm %s6637_s23, 1024  ;;  %p6185_p6 = scmp.lt.u32.totalorder %s6637_s23, %s7876_s2 }
  0x47   : > { %p6180_p3 = scmp.ne.s32.totalorder %s6637_s23, %s6179_s29  ;;  %p6186_p7 = scmp.lt.u32.totalorder %s6184_s21, %s6179_s29 }
  0x48   : > { %p6188_p10 = scmp.lt.u32.totalorder %s6179_s29, %s6637_s23 }
  0x49   : > { %p6182_p12 = pnand %p6181_p11, %p6180_p3  ;;  %p6187_p4 = por %p6186_p7, %p6185_p6 }
  0x4b   : > { %p6183_p1 = pneg %p6182_p12  ;;  %p6189_p9 = por %p6188_p10, %p6187_p4 }
  0x4d   : > { %p6190_p13 = pnand %p6189_p9, %p6183_p1 }
  0x4f   : > { %6193 = shalt.err (!%p6190_p13)
}
  0x50   : > { %s6194_s28 = scalar_lea.vmem %s6639_s9, 1024  ;;  %s6432_s15 = smov [#allocation7]  }
  0x51   : > { %p6195_p0 = scmp.ne.s32.totalorder %s6639_s9, %s6194_s28  ;;  %s6199_s8 = sshll.u32 %s6432_s15, 4  ;;  %s6200_s8 = int_to_ptr.vmem [resolvable:$false] %s6199_s8 }
  0x52   : > { %s6201_s0 = scalar_lea.vmem %s6200_s8, 2048  ;;  %p6202_p8 = scmp.lt.s32.totalorder %s6639_s9, %s6200_s8 }
  0x53   : > { %p6197_p3 = pnand %p6195_p0, %p6181_p11  ;;  %p6203_p6 = scmp.lt.s32.totalorder %s6201_s0, %s6194_s28 }
  0x55   : > { %p6198_p12 = pneg %p6197_p3  ;;  %p6204_p7 = por %p6203_p6, %p6202_p8 }
  0x57   : > { %p6205_p4 = pnand %p6204_p7, %p6198_p12 }
  0x59   : > { %6208 = shalt.err (!%p6205_p4)
}
  0x5a   : > { %s6433_s7 = smov 512   ;;  %s6434_s21 = smov 32  }
  0x5b   : > { %5963 = dma.hbm_to_vmem [thread:$0]  (!%p7877_p5), %s6637_s23, 1024, %s6639_s9, %s6641_s16, %s6433_s7, %s6433_s7, %s6434_s21  }
  0x5c   : > { %s7878_s29 = sand.u32 1, %s6409_s14   ;;  %s5747_s24 = sshll.u32 %s6425_s18, 7 }
  0x5d   : > { %s5372_s6 = sshll.u32 %s7878_s29, 3  ;;  %s7879_s3 = sld [smem:[#allocation26_spill]] }
  0x5e   : > { %s352_s0 = scalar_lea.vmem [#allocation8], %s5372_s6 }
  0x5f   : > { %s360_s2 = sshll.u32 %s352_s0, 4  ;;  %s361_s2 = int_to_ptr.vmem [resolvable:$true] %s360_s2 }
  0x63   : > { %s6675_s28 = scalar_lea.hbm %s7879_s3, %s5747_s24  ;;  %s6214_s7 = scalar_lea.hbm %s7879_s3, 256 }
  0x64   : > { %s6209_s26 = scalar_lea.hbm %s6675_s28, 128  ;;  %p6215_p9 = scmp.lt.u32.totalorder %s6675_s28, %s7879_s3 }
  0x65   : > { %p6210_p8 = scmp.ne.s32.totalorder %s6675_s28, %s6209_s26  ;;  %p6216_p13 = scmp.lt.u32.totalorder %s6214_s7, %s6209_s26 }
  0x66   : > { %p6218_p3 = scmp.lt.u32.totalorder %s6209_s26, %s6675_s28 }
  0x67   : > { %p6212_p1 = pnand %p6210_p8, %p6181_p11  ;;  %p6217_p0 = por %p6216_p13, %p6215_p9 }
  0x69   : > { %p6213_p10 = pneg %p6212_p1  ;;  %p6219_p12 = por %p6218_p3, %p6217_p0 }
  0x6b   : > { %p6220_p6 = pnand %p6219_p12, %p6213_p10 }
  0x6d   : > { %6223 = shalt.err (!%p6220_p6)
}
  0x6e   : > { %s6224_s6 = scalar_lea.vmem %s361_s2, 128  ;;  %s6435_s24 = smov [#allocation8]  }
  0x6f   : > { %p6225_p7 = scmp.ne.s32.totalorder %s361_s2, %s6224_s6  ;;  %s6229_s15 = sshll.u32 %s6435_s24, 4  ;;  %s6230_s15 = int_to_ptr.vmem [resolvable:$false] %s6229_s15 }
  0x70   : > { %s6231_s8 = scalar_lea.vmem %s6230_s15, 256  ;;  %p6232_p1 = scmp.lt.s32.totalorder %s361_s2, %s6230_s15 }
  0x71   : > { %p6227_p4 = pnand %p6225_p7, %p6181_p11  ;;  %p6233_p2 = scmp.lt.s32.totalorder %s6231_s8, %s6224_s6 }
  0x73   : > { %p6228_p8 = pneg %p6227_p4  ;;  %p6234_p9 = por %p6233_p2, %p6232_p1 }
  0x75   : > { %p6235_p13 = pnand %p6234_p9, %p6228_p8 }
  0x77   : > { %6238 = shalt.err (!%p6235_p13)
}
  0x78   : > { %5966 = dma.hbm_to_vmem [thread:$0]  (!%p7877_p5), %s6675_s28, 128, %s361_s2, %s6641_s16  }
  0x79   : > { %s30_s26 = sadd.s32 1, %s6421_s17  ;;  %s33_s0 = sadd.s32 1, %s6425_s18 }
  0x7a   : > { %p31_p11 = scmp.ge.s32.totalorder %s30_s26, 2  ;;  %s7845_s23 = sand.u32 1, %s6397_s11  }
  0x7b   : > { %s5375_s9 = sshll.u32 %s7845_s23, 12  ;;  %s5748_s7 = sshll.u32 %s6421_s17, 9 }
  0x7c   : > { %s7924_s26 = smov (%p31_p11, %s30_s26), 0  ;;  %s7926_s0 = smov (!%p31_p11, %s33_s0), %s6425_s18 }
  0x7d   : > { %7880 = sst [smem:[#allocation20_spill]] %s7924_s26  ;;  %s132_s12 = ssub.s32 %s6421_s17, %s7924_s26 }
  0x7e   : > { %p35_p2 = scmp.ge.s32.totalorder %s7926_s0, 2  ;;  %s7881_s21 = sshll.u32 %s6425_s18, 10 }
  0x7f   : > { %s378_s2 = sadd.s32 %s5748_s7, %s7881_s21  ;;  %s371_s29 = scalar_lea.vmem [#allocation9], %s5375_s9 }
  0x80   : > { %s5379_s28 = sshll.u32 %s378_s2, 7  ;;  %s381_s6 = sshll.u32 %s371_s29, 4  ;;  %s6717_s6 = int_to_ptr.vmem [resolvable:$true] %s381_s6 }
  0x81   : > { %s7928_s0 = smov (%p35_p2, %s7926_s0), 0  ;;  %s7883_s4 = sld [smem:[#allocation27_spill]] }
  0x82   : > { %7882 = sst [smem:[#allocation21_spill]] %s7928_s0  ;;  %s79_s23 = ssub.s32 %s6425_s18, %s7928_s0 }
  0x83   : > { %p80_p5 = scmp.eq.s32.totalorder %s79_s23, 0  ;;  %s133_s7 = sor.u32 %s132_s12, %s79_s23 }
  0x84   : > { %p134_p10 = scmp.eq.s32.totalorder %s133_s7, 0  ;;  %s7884_s9 = sadd.s32 1, %s6409_s14 }
  0x85   : > { %s6724_s21 = scalar_select %p80_p5, %s6409_s14, %s7884_s9  }
  0x86   : > { %s7886_s2 = sadd.s32 1, %s6397_s11  ;;  %p7887_p3 = scmp.ne.s32.totalorder %s7874_s20, 0 }
  0x87   : > { %s6715_s8 = scalar_lea.hbm %s7883_s4, %s5379_s28  ;;  %7885 = sst [smem:[#allocation22_spill]] %s6724_s21 }
  0x88   : > { %s6729_s29 = scalar_select %p134_p10, %s6397_s11, %s7886_s2  }
  0x89   : > { %s6239_s24 = scalar_lea.hbm %s6715_s8, 65536  ;;  %p7848_p12 = pneg %p7887_p3 }
  0x8a   : > { %p6240_p0 = scmp.ne.s32.totalorder %s6715_s8, %s6239_s24  ;;  %s6244_s3 = scalar_lea.hbm %s7883_s4, 262144 }
  0x8b   : > { %p6245_p4 = scmp.lt.u32.totalorder %s6715_s8, %s7883_s4  ;;  %p6246_p8 = scmp.lt.u32.totalorder %s6244_s3, %s6239_s24 }
  0x8c   : > { %p6242_p6 = pnand %p7848_p12, %p6240_p0  ;;  %p6248_p9 = scmp.lt.u32.totalorder %s6239_s24, %s6715_s8 }
  0x8d   : > { %p6247_p1 = por %p6246_p8, %p6245_p4 }
  0x8e   : > { %p6243_p7 = pneg %p6242_p6 }
  0x8f   : > { %p6249_p13 = por %p6248_p9, %p6247_p1 }
  0x91   : > { %p6250_p11 = pnand %p6249_p13, %p6243_p7 }
  0x93   : > { %6253 = shalt.err (!%p6250_p11)
}
  0x94   : > { %s6254_s7 = scalar_lea.vmem %s6717_s6, 65536  ;;  %s6436_s9 = smov [#allocation9]  }
  0x95   : > { %p6255_p2 = scmp.ne.s32.totalorder %s6717_s6, %s6254_s7  ;;  %s6259_s2 = sshll.u32 %s6436_s9, 4  ;;  %s6260_s2 = int_to_ptr.vmem [resolvable:$false] %s6259_s2 }
  0x96   : > { %s6261_s28 = scalar_lea.vmem %s6260_s2, 131072  ;;  %p6262_p0 = scmp.lt.s32.totalorder %s6717_s6, %s6260_s2 }
  0x97   : > { %p6257_p5 = pnand %p6255_p2, %p7848_p12  ;;  %p6263_p6 = scmp.lt.s32.totalorder %s6261_s28, %s6254_s7 }
  0x99   : > { %p6258_p10 = pneg %p6257_p5  ;;  %p6264_p4 = por %p6263_p6, %p6262_p0 }
  0x9b   : > { %p6265_p8 = pnand %p6264_p4, %p6258_p10 }
  0x9d   : > { %6268 = shalt.err (!%p6265_p8)
}
  0x9e   : > { %s6437_s3 = smov 1024   ;;  %s6438_s24 = smov 64  }
  0x9f   : > { %5969 = dma.hbm_to_vmem [thread:$0]  (!%p7887_p3), %s6715_s8, 65536, %s6717_s6, %s6641_s16, %s6437_s3, %s6437_s3, %s6438_s24  }
  0xa0   : > { %s7888_s15 = sand.u32 1, %s6397_s11   ;;  %s6439_s12 = smov [#allocation5]  }
  0xa1   : > { %s5380_s23 = sshll.u32 %s7888_s15, 5  ;;  %s316_s9 = sshll.u32 %s6439_s12, 4  ;;  %s317_s9 = int_to_ptr.vmem [resolvable:$true] %s316_s9 }
  0xa2   : > { %s5749_s7 = sshll.u32 %s6421_s17, 4  ;;  %s7889_s1 = sld [smem:[#allocation24_spill]] }
  0xa3   : > { %p7890_p1 = scmp.ne.s32.totalorder %s7872_s30, 0 }
  0xa5   : > { %p7891_p9 = pneg %p7890_p1 }
  0xa8   : > { %s6269_s4 = scalar_lea.hbm %s7889_s1, 32 }
  0xa9   : > { %p6270_p7 = scmp.ne.s32.totalorder %s7889_s1, %s6269_s4  ;;  %p6276_p2 = scmp.lt.u32.totalorder %s6269_s4, %s7889_s1 }
  0xab   : > { %p6272_p13 = pnand %p6270_p7, %p7891_p9 }
  0xad   : > { %p6273_p11 = pneg %p6272_p13 }
  0xaf   : > { %p6278_p5 = pnand %p6276_p2, %p6273_p11 }
  0xb1   : > { %6281 = shalt.err (!%p6278_p5)
}
  0xb2   : > { %s6282_s8 = scalar_lea.vmem %s317_s9, 32  ;;  %p7892_p0 = pmov %p7891_p9 }
  0xb3   : > { %p6283_p10 = scmp.ne.s32.totalorder %s317_s9, %s6282_s8  ;;  %p6290_p8 = scmp.lt.s32.totalorder %s317_s9, %s317_s9 }
  0xb4   : > { %p6291_p12 = scmp.lt.s32.totalorder %s6282_s8, %s6282_s8 }
  0xb5   : > { %p6285_p6 = pnand %p6283_p10, %p7892_p0 }
  0xb6   : > { %p6292_p3 = por %p6291_p12, %p6290_p8 }
  0xb7   : > { %p6286_p4 = pneg %p6285_p6 }
  0xb9   : > { %p6293_p7 = pnand %p6292_p3, %p6286_p4 }
  0xbb   : > { %6296 = shalt.err (!%p6293_p7)
}
  0xbc   : > { %5959 = dma.hbm_to_vmem [thread:$0]  (!%p7890_p1), %s7889_s1, 32, %s317_s9, [#allocation6]  }
  0xbd   : > { %s5383_s4 = sshll.u32 %s6425_s18, 5  ;;  %s395_s21 = scalar_lea.vmem [#allocation10], %s5380_s23 }
  0xbe   : > { %s405_s3 = sshll.u32 %s395_s21, 4  ;;  %s402_s24 = sadd.s32 %s5749_s7, %s5383_s4  ;;  %s6781_s3 = int_to_ptr.vmem [resolvable:$true] %s405_s3 }
  0xbf   : > { %s5384_s15 = sshll.u32 %s402_s24, 5  ;;  %s7893_s5 = sld [smem:[#allocation28_spill]] }
  0xc0   : > { %p7894_p12 = scmp.ne.s32.totalorder %s7874_s20, 0 }
  0xc2   : > { %p7895_p1 = pneg %p7894_p12 }
  0xc5   : > { %s6786_s28 = scalar_lea.hbm %s7893_s5, %s5384_s15  ;;  %s6302_s7 = scalar_lea.hbm %s7893_s5, 2048 }
  0xc6   : > { %s6297_s30 = scalar_lea.hbm %s6786_s28, 512  ;;  %p6303_p11 = scmp.lt.u32.totalorder %s6786_s28, %s7893_s5 }
  0xc7   : > { %p6298_p3 = scmp.ne.s32.totalorder %s6786_s28, %s6297_s30  ;;  %p6304_p2 = scmp.lt.u32.totalorder %s6302_s7, %s6297_s30 }
  0xc8   : > { %p6306_p10 = scmp.lt.u32.totalorder %s6297_s30, %s6786_s28 }
  0xc9   : > { %p6300_p9 = pnand %p6298_p3, %p7895_p1  ;;  %p6305_p5 = por %p6304_p2, %p6303_p11 }
  0xcb   : > { %p6301_p13 = pneg %p6300_p9  ;;  %p6307_p0 = por %p6306_p10, %p6305_p5 }
  0xcd   : > { %p6308_p6 = pnand %p6307_p0, %p6301_p13 }
  0xcf   : > { %6311 = shalt.err (!%p6308_p6)
}
  0xd0   : > { %s6312_s26 = scalar_lea.vmem %s6781_s3, 512  ;;  %p7896_p8 = pmov %p7895_p1 }
  0xd1   : > { %p6313_p4 = scmp.ne.s32.totalorder %s6781_s3, %s6312_s26  ;;  %s6440_s0 = smov [#allocation10]  }
  0xd2   : > { %s6317_s4 = sshll.u32 %s6440_s0, 4  ;;  %s6318_s4 = int_to_ptr.vmem [resolvable:$false] %s6317_s4 }
  0xd3   : > { %p6315_p7 = pnand %p6313_p4, %p7896_p8  ;;  %s6319_s21 = scalar_lea.vmem %s6318_s4, 1024 }
  0xd4   : > { %p6320_p1 = scmp.lt.s32.totalorder %s6781_s3, %s6318_s4  ;;  %p6321_p9 = scmp.lt.s32.totalorder %s6319_s21, %s6312_s26 }
  0xd5   : > { %p6316_p3 = pneg %p6315_p7 }
  0xd6   : > { %p6322_p11 = por %p6321_p9, %p6320_p1 }
  0xd8   : > { %p6323_p2 = pnand %p6322_p11, %p6316_p3 }
  0xda   : > { %6326 = shalt.err (!%p6323_p2)
}
  0xdb   : > { %s6441_s24 = smov 256   ;;  %s6442_s15 = smov 16  }
  0xdc   : > { %5972 = dma.hbm_to_vmem [thread:$0]  (!%p7894_p12), %s6786_s28, 512, %s6781_s3, %s6641_s16, %s6441_s24, %s6441_s24, %s6442_s15  }
  0xdd   : > { %p7897_p13 = scmp.ne.s32.totalorder %s7871_s27, 0 }
  0xde   : > { %p7898_p5 = scmp.ne.s32.totalorder (!%p7897_p13), %s7866_s22, 0 }
  0xdf   : > { %441 = sbr.rel (%p7897_p13) target bundleno = 2430 (0x97e), region = 56 }
  0xe6   : > { %6372 = dma.done.wait (%p7898_p5), [#allocation4], 32  }
  0xe7   : > { %6374 = vsyncadd (%p7898_p5), [#allocation4], 4294967264 }
  0xe8   : > { %6376 = dma.done.wait (%p7898_p5), [#allocation6], 32  }
  0xe9   : > { %6378 = vsyncadd (%p7898_p5), [#allocation6], 4294967264  ;;  %s7899_s12 = sadd.s32 4294967295, %s6429_s19   ;;  %s453_s20 = sand.u32 1, %s6405_s13  }
  0xea   : > { %s451_s16 = sand.u32 1, %s7899_s12   ;;  %s5388_s27 = sshll.u32 %s453_s20, 6 }
  0xeb   : > { %s452_s3 = scalar_lea.sflag [#allocation4], %s451_s16  ;;  %s6825_s2 = scalar_lea.vmem [#allocation7], %s5388_s27 }
  0xec   : > { %p7900_p12 = scmp.ne.s32.totalorder %s7868_s25, 0 }
  0xee   : > { %6380 = dma.done.wait (%p7900_p12), %s452_s3, 1152  }
  0xef   : > { %6382 = vsyncadd (%p7900_p12), %s452_s3, 4294966144  ;;  %s7901_s28 = sld [smem:[#allocation19_spill]]  ;;  %s6831_s30 = sshll.u32 %s453_s20, 3 }
  0xf0   : > { %s471_s22 = sand.u32 1, %s6393_s10  }
  0xf1   : > { %s5390_s23 = sshll.u32 %s471_s22, 12 }
  0xf2   : > { %s6835_s7 = scalar_lea.vmem [#allocation9], %s5390_s23 }
  0xf5   : > { %p7902_p10 = scmp.ne.s32.totalorder %s7901_s28, 0 }
  0xf7   : > { %6384 = dma.done.wait (%p7902_p10), %s452_s3, 66048  }
  0xf8   : > { %6386 = vsyncadd (%p7902_p10), %s452_s3, 4294901248  ;;  %s7903_s6 = sld [smem:[#allocation16_spill]]  ;;  %s5391_s8 = sshll.u32 %s471_s22, 5 }
  0xf9   : > { %s7904_s21 = sld [smem:[#allocation29_spill]]  ;;  %s7905_s16 = sld [smem:[#allocation30_spill]] }
  0xfa   : > { %s7906_s9 = sld [smem:[#allocation31_spill]]  ;;  %s7907_s18 = sld [smem:[#allocation32_spill]] }
  0xfb   : > { %s6863_s0 = scalar_lea.vmem [#allocation10], %s5391_s8 }
  0xfe   : > { %p548_p0 = scmp.lt.s32.totalorder %s7903_s6, 1 }
 0x100   : > { %s7930_s6 = smov (!%p548_p0, %s7903_s6), 1 }
 0x101   : > { %s5750_s25 = sshll.u32 %s7930_s6, 9  ;;  %s5751_s26 = sshll.u32 %s7930_s6, 5 }
 0x102   : > { %s6846_s24 = scalar_lea.vmem %s7904_s21, %s5750_s25  ;;  %s6851_s20 = scalar_lea.vmem %s7905_s16, %s5751_s26 }
 0x103   : > { %s5752_s27 = sshll.u32 %s7930_s6, 3  ;;  %s5398_s28 = sshll.u32 %s7930_s6, 1 }
 0x104   : > { %s6856_s22 = scalar_lea.vmem %s7906_s9, %s5752_s27  ;;  %s6861_s17 = scalar_lea.vmem %s7907_s18, %s5398_s28 }
 0x105   : > { %s7908_s25 = sld [smem:[#allocation15_spill]] }
 0x10b   : > { %p5399_p6 = scmp.ne.s32.totalorder %s7908_s25, 0 }
 0x10c   : > { %v574_v0 = vld [vmem:[%s6825_s2] sm:$0xff] (!%p5399_p6)  ;;  %v575_v2 = vld [vmem:[%s6825_s2 + $0x8] sm:$0xff] (!%p5399_p6)  ;;  %v6443_v6 = vmov (!%p5399_p6), 0   ;;  %v572_v7 = vld [vmem:[#allocation3] sm:$0x3] (!%p5399_p6)  ;;  %vm664_vm0 = vcmask (!%p5399_p6), 130048   ;;  %v584_v19 = vlaneseq (!%p5399_p6) }
 0x10d   : > { %571 = sbr.rel (%p5399_p6) target bundleno = 506 (0x1fa), region = 84  ;;  %v578_v1 = vld [vmem:[%s6825_s2 + $0x20] sm:$0xff] (!%p5399_p6)  ;;  %v579_v4 = vld [vmem:[%s6825_s2 + $0x28] sm:$0xff] (!%p5399_p6)  ;;  %700 = vmatprep.mubr.bf16.mxu0 (!%p5399_p6), %v6443_v6  ;;  %741 = vmatprep.mubr.bf16.mxu1 (!%p5399_p6), %v6443_v6  ;;  %v576_v8 = vld [vmem:[%s6825_s2 + $0x10] sm:$0xff] (!%p5399_p6)  ;;  %v573_v14 = vpack.c.bf16 (!%p5399_p6), %v572_v7, %v572_v7  ;;  %v6444_v22 = vmov (!%p5399_p6), 1983009808  }
 0x10e   : > { %v5401_v3 = vcombine.high (!%p5399_p6), %v574_v0, %v578_v1  ;;  %v5400_v5 = vcombine.low (!%p5399_p6), %v574_v0, %v578_v1  ;;  %v5403_v9 = vcombine.high (!%p5399_p6), %v575_v2, %v579_v4  ;;  %v5402_v10 = vcombine.low (!%p5399_p6), %v575_v2, %v579_v4  ;;  %v580_v11 = vld [vmem:[%s6825_s2 + $0x30] sm:$0xff] (!%p5399_p6)  ;;  %v577_v12 = vld [vmem:[%s6825_s2 + $0x18] sm:$0xff] (!%p5399_p6)  ;;  %s7909_s1 = scalar_lea.vmem (!%p5399_p6), [#allocation8], %s6831_s30 }
 0x10f   : > { %v581_v13 = vld [vmem:[%s6825_s2 + $0x38] sm:$0xff] (!%p5399_p6)  ;;  %v5405_v15 = vcombine.high (!%p5399_p6), %v576_v8, %v580_v11  ;;  %v5404_v17 = vcombine.low (!%p5399_p6), %v576_v8, %v580_v11  ;;  %v585_v20 = vshrl.u32 (!%p5399_p6), %v584_v19, 7  ;;  %v843_v23 = vunpack.c.l.s4 (!%p5399_p6), %v6444_v22  ;;  %v582_v24 = vld [vmem:[%s7909_s1] sm:$0xff] (!%p5399_p6) }
 0x110   : > { %668 = vmatprep.subr.bf16.mxu0 (!%p5399_p6), %v5401_v3  ;;  %v5407_v16 = vcombine.high (!%p5399_p6), %v577_v12, %v581_v13  ;;  %709 = vmatprep.subr.bf16.mxu1 (!%p5399_p6), %v5403_v9  ;;  %v5406_v18 = vcombine.low (!%p5399_p6), %v577_v12, %v581_v13 }
 0x111   : > { %669 = vmatpush1.bf16.msra.mxu0 (!%p5399_p6), %v5400_v5  ;;  %710 = vmatpush1.bf16.msra.mxu1 (!%p5399_p6), %v5402_v10  ;;  %v586_v21 = vsub.s32 (!%p5399_p6), 0, %v585_v20  ;;  %v594_v25 = vsub.s32 (!%p5399_p6), 2, %v585_v20  ;;  %v590_v26 = vsub.s32 (!%p5399_p6), 1, %v585_v20  ;;  %v598_v27 = vsub.s32 (!%p5399_p6), 3, %v585_v20 }
 0x112   : > { %750 = vmatprep.subr.bf16.mxu0 (!%p5399_p6), %v5405_v15  ;;  %791 = vmatprep.subr.bf16.mxu1 (!%p5399_p6), %v5407_v16  ;;  %v844_v29 = vunpack.c.0.s8 (!%p5399_p6), %v843_v23  ;;  %v602_v38 = vsub.s32 (!%p5399_p6), 4, %v585_v20  ;;  %v610_v43 = vsub.s32 (!%p5399_p6), 6, %v585_v20  ;;  %v606_v44 = vsub.s32 (!%p5399_p6), 5, %v585_v20 }
 0x113   : > { %v587_v28 = vrot.slane (!%p5399_p6), %v582_v24, %v586_v21  ;;  %v595_v30 = vrot.slane (!%p5399_p6), %v582_v24, %v594_v25  ;;  %v591_v31 = vrot.slane (!%p5399_p6), %v582_v24, %v590_v26  ;;  %v599_v32 = vrot.slane (!%p5399_p6), %v582_v24, %v598_v27 }
 0x114   : > { %5408 = vmatmul.mubr.msk.bf16.vlgmr.msra.gmra.mrb[0].mxu0 %vm664_vm0, %v573_v14  ;;  %5409 = vmatmul.mubr.msk.bf16.vlgmr.msra.gmra.mrb[0].mxu1 %vm664_vm0, %v573_v14  ;;  %v847_v37 = vsub.s32 %v844_v29, %v585_v20  ;;  %v614_v48 = vsub.s32 7, %v585_v20  ;;  %v603_v52 = vrot.slane %v582_v24, %v602_v38  ;;  %v611_v54 = vrot.slane %v582_v24, %v610_v43 }
 0x115   : > { %751 = vmatpush1.bf16.msra.mxu0 %v5404_v17  ;;  %792 = vmatpush1.bf16.msra.mxu1 %v5406_v18  ;;  %v607_v55 = vrot.slane %v582_v24, %v606_v44 }
 0x116   : > { %782 = vmatprep.mubr.bf16.mxu0 %v6443_v6  ;;  %823 = vmatprep.mubr.bf16.mxu1 %v6443_v6  ;;  %v615_v57 = vrot.slane %v582_v24, %v614_v48 }
 0x11c   : > { %5410 = vmatmul.mubr.msk.bf16.vlgmr.msra.gmra.mrb[4].mxu0 %vm664_vm0, %v573_v14  ;;  %5411 = vmatmul.mubr.msk.bf16.vlgmr.msra.gmra.mrb[4].mxu1 %vm664_vm0, %v573_v14 }
 0x1e7   : > { %v702_v33 = vpop.f32.mrb[0].mxu0  ;;  %v743_v35 = vpop.f32.mrb[0].mxu1 }
 0x1e8   : > { %v703_v34 = vadd.f32 %v702_v33, %v587_v28  ;;  %v704_v36 = vpop.f32.mrb[1].mxu0  ;;  %v744_v39 = vadd.f32 %v743_v35, %v595_v30  ;;  %v745_v41 = vpop.f32.mrb[1].mxu1 }
 0x1e9   : > { %v705_v40 = vadd.f32 %v704_v36, %v591_v31  ;;  %v706_v42 = vpop.f32.mrb[2].mxu0  ;;  %v746_v45 = vadd.f32 %v745_v41, %v599_v32  ;;  %v747_v46 = vpop.f32.mrb[2].mxu1 }
 0x1ea   : > { %v707_v47 = vpop.f32.mrb[3].mxu0  ;;  %v748_v50 = vpop.f32.mrb[3].mxu1 }
 0x1eb   : > { %v840_v49 = vcombine.low %v703_v34, %v705_v40  ;;  %v841_v51 = vcombine.low %v744_v39, %v746_v45 }
 0x1ed   : > { %v848_v53 = vrot.slane %v840_v49, %v847_v37  ;;  %v855_v56 = vrot.slane %v841_v51, %v847_v37 }
 0x1ef   : > { %v784_v58 = vpop.f32.mrb[4].mxu0  ;;  %v856_v59 = vcombine.low %v848_v53, %v855_v56  ;;  %v825_v61 = vpop.f32.mrb[4].mxu1 }
 0x1f0   : > { %v785_v60 = vadd.f32 %v784_v58, %v603_v52  ;;  %v786_v62 = vpop.f32.mrb[5].mxu0  ;;  %v826_v63 = vadd.f32 %v825_v61, %v611_v54  ;;  %v827_v1 = vpop.f32.mrb[5].mxu1 }
 0x1f1   : > { %v787_v0 = vadd.f32 %v786_v62, %v607_v55  ;;  %v788_v2 = vpop.f32.mrb[6].mxu0  ;;  %876 = vst [vmem:[#allocation2] sm:$0xff] %v856_v59  ;;  %v828_v3 = vadd.f32 %v827_v1, %v615_v57  ;;  %v829_v4 = vpop.f32.mrb[6].mxu1 }
 0x1f2   : > { %v789_v5 = vpop.f32.mrb[7].mxu0  ;;  %v830_v7 = vpop.f32.mrb[7].mxu1 }
 0x1f3   : > { %v857_v6 = vcombine.low %v785_v60, %v787_v0  ;;  %v858_v8 = vcombine.low %v826_v63, %v828_v3 }
 0x1f5   : > { %v865_v9 = vrot.slane %v857_v6, %v847_v37  ;;  %v872_v10 = vrot.slane %v858_v8, %v847_v37 }
 0x1f7   : > { %v873_v11 = vcombine.low %v865_v9, %v872_v10 }
 0x1f9   : > { %877 = vst [vmem:[#allocation2 + $0x8] sm:$0xff] %v873_v11 }
 0x1fa PF: > { %v881_v12 = vld [vmem:[%s6835_s7 + $0x8] sm:$0xff]  ;;  %v883_v13 = vld [vmem:[%s6835_s7 + $0x18] sm:$0xff]  ;;  %v880_v14 = vld [vmem:[%s6835_s7] sm:$0xff]  ;;  %v1656_v42 = vlaneseq  ;;  %v6445_v47 = vmov 1983009808   ;;  %s7910_s5 = sld [smem:[#allocation15_spill]] }
 0x1fb   : > { %v1137_v15 = vunpack.c.l.s8.bf16 %v881_v12  ;;  %v1145_v16 = vunpack.c.h.s8.bf16 %v881_v12  ;;  %v1139_v17 = vunpack.c.l.s8.bf16 %v883_v13  ;;  %v1147_v18 = vunpack.c.h.s8.bf16 %v883_v13  ;;  %v882_v19 = vld [vmem:[%s6835_s7 + $0x10] sm:$0xff]  ;;  %v889_v22 = vld [vmem:[%s6835_s7 + $0x48] sm:$0xff]  ;;  %v891_v23 = vld [vmem:[%s6835_s7 + $0x58] sm:$0xff] }
 0x1fc   : > { %v1136_v20 = vunpack.c.l.s8.bf16 %v880_v14  ;;  %v1138_v21 = vunpack.c.l.s8.bf16 %v882_v19  ;;  %v1144_v24 = vunpack.c.h.s8.bf16 %v880_v14  ;;  %v1146_v25 = vunpack.c.h.s8.bf16 %v882_v19  ;;  %v888_v28 = vld [vmem:[%s6835_s7 + $0x40] sm:$0xff]  ;;  %v890_v29 = vld [vmem:[%s6835_s7 + $0x50] sm:$0xff]  ;;  %v897_v34 = vld [vmem:[%s6835_s7 + $0x88] sm:$0xff] }
 0x1fd   : > { %1702 = vmatprep.subr.bf16.mxu0 %v1137_v15  ;;  %1866 = vmatprep.subr.bf16.mxu1 %v1139_v17  ;;  %v1153_v26 = vunpack.c.l.s8.bf16 %v889_v22  ;;  %v1155_v27 = vunpack.c.l.s8.bf16 %v891_v23  ;;  %v1152_v30 = vunpack.c.l.s8.bf16 %v888_v28  ;;  %v1154_v31 = vunpack.c.l.s8.bf16 %v890_v29  ;;  %v899_v35 = vld [vmem:[%s6835_s7 + $0x98] sm:$0xff]  ;;  %v896_v40 = vld [vmem:[%s6835_s7 + $0x80] sm:$0xff]  ;;  %v898_v41 = vld [vmem:[%s6835_s7 + $0x90] sm:$0xff] }
 0x1fe   : > { %1703 = vmatpush1.bf16.msra.mxu0 %v1136_v20  ;;  %1867 = vmatpush1.bf16.msra.mxu1 %v1138_v21  ;;  %v1161_v32 = vunpack.c.h.s8.bf16 %v889_v22  ;;  %v1163_v33 = vunpack.c.h.s8.bf16 %v891_v23  ;;  %v1160_v36 = vunpack.c.h.s8.bf16 %v888_v28  ;;  %v1162_v37 = vunpack.c.h.s8.bf16 %v890_v29  ;;  %v905_v50 = vld [vmem:[%s6835_s7 + $0xc8] sm:$0xff]  ;;  %v907_v51 = vld [vmem:[%s6835_s7 + $0xd8] sm:$0xff]  ;;  %v904_v58 = vld [vmem:[%s6835_s7 + $0xc0] sm:$0xff] }
 0x1ff   : > { %1704 = vmatprep.subr.bf16.mxu0 %v1145_v16  ;;  %1868 = vmatprep.subr.bf16.mxu1 %v1147_v18  ;;  %v1169_v38 = vunpack.c.l.s8.bf16 %v897_v34  ;;  %v1171_v39 = vunpack.c.l.s8.bf16 %v899_v35  ;;  %v1168_v43 = vunpack.c.l.s8.bf16 %v896_v40  ;;  %v1170_v44 = vunpack.c.l.s8.bf16 %v898_v41  ;;  %v6892_v55 = vld [vmem:[#allocation2] sm:$0xff]  ;;  %v906_v59 = vld [vmem:[%s6835_s7 + $0xd0] sm:$0xff]  ;;  %v913_v3 = vld [vmem:[%s6835_s7 + $0x108] sm:$0xff] }
 0x200   : > { %v1177_v45 = vunpack.c.h.s8.bf16 %v897_v34  ;;  %v1179_v46 = vunpack.c.h.s8.bf16 %v899_v35  ;;  %v1654_v48 = vunpack.c.l.s4 %v6445_v47  ;;  %v6888_v49 = vshrl.u32 %v1656_v42, 7  ;;  %v915_v4 = vld [vmem:[%s6835_s7 + $0x118] sm:$0xff]  ;;  %v912_v10 = vld [vmem:[%s6835_s7 + $0x100] sm:$0xff]  ;;  %v914_v11 = vld [vmem:[%s6835_s7 + $0x110] sm:$0xff]  ;;  %p5670_p4 = scmp.ne.s32.totalorder %s7910_s5, 1 }
 0x201   : > { %v1176_v53 = vunpack.c.h.s8.bf16 %v896_v40  ;;  %v1178_v54 = vunpack.c.h.s8.bf16 %v898_v41  ;;  %v1185_v56 = vunpack.c.l.s8.bf16 %v905_v50  ;;  %v1187_v57 = vunpack.c.l.s8.bf16 %v907_v51  ;;  %v921_v16 = vld [vmem:[%s6835_s7 + $0x148] sm:$0xff]  ;;  %v923_v17 = vld [vmem:[%s6835_s7 + $0x158] sm:$0xff]  ;;  %v920_v22 = vld [vmem:[%s6835_s7 + $0x140] sm:$0xff] }
 0x202   : > { %1705 = vmatpush1.bf16.msra.mxu0 %v1144_v24  ;;  %1869 = vmatpush1.bf16.msra.mxu1 %v1146_v25  ;;  %v1655_v52 = vunpack.c.0.s8 %v1654_v48  ;;  %v1184_v62 = vunpack.c.l.s8.bf16 %v904_v58  ;;  %v1186_v63 = vunpack.c.l.s8.bf16 %v906_v59  ;;  %v1193_v0 = vunpack.c.h.s8.bf16 %v905_v50  ;;  %v922_v23 = vld [vmem:[%s6835_s7 + $0x150] sm:$0xff]  ;;  %v929_v28 = vld [vmem:[%s6835_s7 + $0x188] sm:$0xff]  ;;  %v931_v29 = vld [vmem:[%s6835_s7 + $0x198] sm:$0xff] }
 0x203   : > { %1706 = vmatprep.subr.bf16.mxu0 %v1153_v26  ;;  %1870 = vmatprep.subr.bf16.mxu1 %v1155_v27  ;;  %v1195_v1 = vunpack.c.h.s8.bf16 %v907_v51  ;;  %v1192_v6 = vunpack.c.h.s8.bf16 %v904_v58  ;;  %v1194_v7 = vunpack.c.h.s8.bf16 %v906_v59  ;;  %v1201_v8 = vunpack.c.l.s8.bf16 %v913_v3  ;;  %v928_v34 = vld [vmem:[%s6835_s7 + $0x180] sm:$0xff]  ;;  %v930_v35 = vld [vmem:[%s6835_s7 + $0x190] sm:$0xff]  ;;  %v937_v40 = vld [vmem:[%s6835_s7 + $0x1c8] sm:$0xff] }
 0x204   : > { %v6897_v60 = vsub.s32 %v1655_v52, %v6888_v49  ;;  %v1203_v9 = vunpack.c.l.s8.bf16 %v915_v4  ;;  %v1200_v12 = vunpack.c.l.s8.bf16 %v912_v10  ;;  %v1202_v13 = vunpack.c.l.s8.bf16 %v914_v11  ;;  %v939_v41 = vld [vmem:[%s6835_s7 + $0x1d8] sm:$0xff]  ;;  %v938_v47 = vld [vmem:[%s6835_s7 + $0x1d0] sm:$0xff] }
 0x205   : > { %v1209_v14 = vunpack.c.h.s8.bf16 %v913_v3  ;;  %v1211_v15 = vunpack.c.h.s8.bf16 %v915_v4  ;;  %v1208_v18 = vunpack.c.h.s8.bf16 %v912_v10  ;;  %v1210_v19 = vunpack.c.h.s8.bf16 %v914_v11 }
 0x206   : > { %1707 = vmatpush1.bf16.msra.mxu0 %v1152_v30  ;;  %1871 = vmatpush1.bf16.msra.mxu1 %v1154_v31  ;;  %v6901_v61 = vrot.slane %v6892_v55, %v6897_v60  ;;  %v1217_v20 = vunpack.c.l.s8.bf16 %v921_v16  ;;  %v1219_v21 = vunpack.c.l.s8.bf16 %v923_v17  ;;  %v1216_v24 = vunpack.c.l.s8.bf16 %v920_v22 }
 0x207   : > { %1708 = vmatprep.subr.bf16.mxu0 %v1161_v32  ;;  %1872 = vmatprep.subr.bf16.mxu1 %v1163_v33  ;;  %v1218_v25 = vunpack.c.l.s8.bf16 %v922_v23  ;;  %v1225_v26 = vunpack.c.h.s8.bf16 %v921_v16  ;;  %v1227_v27 = vunpack.c.h.s8.bf16 %v923_v17  ;;  %v1224_v30 = vunpack.c.h.s8.bf16 %v920_v22 }
 0x208   : > { %v1667_v2 = vcombine.high %v6901_v61, %v6901_v61  ;;  %v1226_v31 = vunpack.c.h.s8.bf16 %v922_v23  ;;  %v1233_v32 = vunpack.c.l.s8.bf16 %v929_v28  ;;  %v1235_v33 = vunpack.c.l.s8.bf16 %v931_v29 }
 0x209   : > { %v1240_v42 = vunpack.c.h.s8.bf16 %v928_v34  ;;  %v1652_v48 = vcombine.high %v6892_v55, %v6892_v55  ;;  %v1250_v51 = vunpack.c.l.s8.bf16 %v938_v47  ;;  %v1257_v52 = vunpack.c.h.s8.bf16 %v937_v40 }
 0x20a   : > { %1709 = vmatpush1.bf16.msra.mxu0 %v1160_v36  ;;  %1873 = vmatpush1.bf16.msra.mxu1 %v1162_v37  ;;  %v6907_v5 = vpack.c.bf16 %v1667_v2, %v1667_v2  ;;  %v1232_v36 = vunpack.c.l.s8.bf16 %v928_v34  ;;  %v1234_v37 = vunpack.c.l.s8.bf16 %v930_v35  ;;  %v1258_v59 = vunpack.c.h.s8.bf16 %v938_v47 }
 0x20b   : > { %1710 = vmatprep.subr.bf16.mxu0 %v1169_v38  ;;  %1874 = vmatprep.subr.bf16.mxu1 %v1171_v39  ;;  %v1241_v38 = vunpack.c.h.s8.bf16 %v929_v28  ;;  %v1243_v39 = vunpack.c.h.s8.bf16 %v931_v29  ;;  %v6938_v2 = vpack.c.bf16 %v6901_v61, %v6901_v61  ;;  %vm5020_vm1 = vcmask (!%p5670_p4), 1043456  }
 0x20c   : > { %1734 = vmatprep.mubr.bf16.mxu0 %v6907_v5  ;;  %1898 = vmatprep.mubr.bf16.mxu1 %v6907_v5  ;;  %vm5016_vm2 = vcmask (!%p5670_p4), 64512   ;;  %vm5078_vm3 = vcmask (!%p5670_p4), 130048   ;;  %vm5152_vm4 = vcmask (!%p5670_p4), 1041408   ;;  %vm5164_vm5 = vcmask (!%p5670_p4), 1024  }
 0x20e   : > { %1711 = vmatpush1.bf16.msra.mxu0 %v1168_v43  ;;  %1875 = vmatpush1.bf16.msra.mxu1 %v1170_v44  ;;  %v1242_v43 = vunpack.c.h.s8.bf16 %v930_v35  ;;  %v1249_v44 = vunpack.c.l.s8.bf16 %v937_v40 }
 0x20f   : > { %1712 = vmatprep.subr.bf16.mxu0 %v1177_v45  ;;  %1876 = vmatprep.subr.bf16.mxu1 %v1179_v46  ;;  %v1251_v45 = vunpack.c.l.s8.bf16 %v939_v41  ;;  %v936_v46 = vld [vmem:[%s6835_s7 + $0x1c0] sm:$0xff] }
 0x210   : > { %v1248_v50 = vunpack.c.l.s8.bf16 %v936_v46  ;;  %v1256_v58 = vunpack.c.h.s8.bf16 %v936_v46 }
 0x212   : > { %1713 = vmatpush1.bf16.msra.mxu0 %v1176_v53  ;;  %1877 = vmatpush1.bf16.msra.mxu1 %v1178_v54  ;;  %v1259_v53 = vunpack.c.h.s8.bf16 %v939_v41  ;;  %v945_v54 = vld [vmem:[%s6835_s7 + $0x208] sm:$0xff] }
 0x213   : > { %1714 = vmatprep.subr.bf16.mxu0 %v1185_v56  ;;  %1878 = vmatprep.subr.bf16.mxu1 %v1187_v57  ;;  %v947_v56 = vld [vmem:[%s6835_s7 + $0x218] sm:$0xff]  ;;  %v6930_v57 = vrot.slane %v1652_v48, %v6897_v60  ;;  %v1265_v55 = vunpack.c.l.s8.bf16 %v945_v54 }
 0x216   : > { %1715 = vmatpush1.bf16.msra.mxu0 %v1184_v62  ;;  %1879 = vmatpush1.bf16.msra.mxu1 %v1186_v63  ;;  %v1267_v62 = vunpack.c.l.s8.bf16 %v947_v56  ;;  %v944_v63 = vld [vmem:[%s6835_s7 + $0x200] sm:$0xff] }
 0x217   : > { %1716 = vmatprep.subr.bf16.mxu0 %v1193_v0  ;;  %1880 = vmatprep.subr.bf16.mxu1 %v1195_v1  ;;  %v946_v0 = vld [vmem:[%s6835_s7 + $0x210] sm:$0xff]  ;;  %v1668_v1 = vcombine.high %v6930_v57, %v6930_v57  ;;  %v1264_v3 = vunpack.c.l.s8.bf16 %v944_v63  ;;  %v1272_v61 = vunpack.c.h.s8.bf16 %v944_v63 }
 0x218   : > { %v1266_v4 = vunpack.c.l.s8.bf16 %v946_v0  ;;  %v1274_v11 = vunpack.c.h.s8.bf16 %v946_v0 }
 0x219   : > { %v6942_v10 = vpack.c.bf16 %v1668_v1, %v1668_v1 }
 0x21a   : > { %1717 = vmatpush1.bf16.msra.mxu0 %v1192_v6  ;;  %1881 = vmatpush1.bf16.msra.mxu1 %v1194_v7  ;;  %v1273_v6 = vunpack.c.h.s8.bf16 %v945_v54  ;;  %v1275_v7 = vunpack.c.h.s8.bf16 %v947_v56 }
 0x21b   : > { %1718 = vmatprep.subr.bf16.mxu0 %v1201_v8  ;;  %1882 = vmatprep.subr.bf16.mxu1 %v1203_v9  ;;  %v953_v8 = vld [vmem:[%s6835_s7 + $0x248] sm:$0xff]  ;;  %v955_v9 = vld [vmem:[%s6835_s7 + $0x258] sm:$0xff] }
 0x21e   : > { %1719 = vmatpush1.bf16.msra.mxu0 %v1200_v12  ;;  %1883 = vmatpush1.bf16.msra.mxu1 %v1202_v13  ;;  %v1281_v12 = vunpack.c.l.s8.bf16 %v953_v8  ;;  %v1283_v13 = vunpack.c.l.s8.bf16 %v955_v9 }
 0x21f   : > { %1720 = vmatprep.subr.bf16.mxu0 %v1209_v14  ;;  %1884 = vmatprep.subr.bf16.mxu1 %v1211_v15  ;;  %v952_v14 = vld [vmem:[%s6835_s7 + $0x240] sm:$0xff]  ;;  %v954_v15 = vld [vmem:[%s6835_s7 + $0x250] sm:$0xff] }
 0x220   : > { %v1280_v16 = vunpack.c.l.s8.bf16 %v952_v14  ;;  %v1282_v17 = vunpack.c.l.s8.bf16 %v954_v15  ;;  %v1288_v22 = vunpack.c.h.s8.bf16 %v952_v14  ;;  %v1290_v23 = vunpack.c.h.s8.bf16 %v954_v15 }
 0x222   : > { %1721 = vmatpush1.bf16.msra.mxu0 %v1208_v18  ;;  %1885 = vmatpush1.bf16.msra.mxu1 %v1210_v19  ;;  %v1289_v18 = vunpack.c.h.s8.bf16 %v953_v8  ;;  %v1291_v19 = vunpack.c.h.s8.bf16 %v955_v9 }
 0x223   : > { %1722 = vmatprep.subr.bf16.mxu0 %v1217_v20  ;;  %1886 = vmatprep.subr.bf16.mxu1 %v1219_v21  ;;  %v961_v20 = vld [vmem:[%s6835_s7 + $0x288] sm:$0xff]  ;;  %v963_v21 = vld [vmem:[%s6835_s7 + $0x298] sm:$0xff] }
 0x226   : > { %1723 = vmatpush1.bf16.msra.mxu0 %v1216_v24  ;;  %1887 = vmatpush1.bf16.msra.mxu1 %v1218_v25  ;;  %v1297_v24 = vunpack.c.l.s8.bf16 %v961_v20  ;;  %v1299_v25 = vunpack.c.l.s8.bf16 %v963_v21 }
 0x227   : > { %1724 = vmatprep.subr.bf16.mxu0 %v1225_v26  ;;  %1888 = vmatprep.subr.bf16.mxu1 %v1227_v27  ;;  %v960_v26 = vld [vmem:[%s6835_s7 + $0x280] sm:$0xff]  ;;  %v962_v27 = vld [vmem:[%s6835_s7 + $0x290] sm:$0xff] }
 0x228   : > { %v1296_v28 = vunpack.c.l.s8.bf16 %v960_v26  ;;  %v1298_v29 = vunpack.c.l.s8.bf16 %v962_v27  ;;  %v1304_v34 = vunpack.c.h.s8.bf16 %v960_v26  ;;  %v1306_v35 = vunpack.c.h.s8.bf16 %v962_v27 }
 0x22a   : > { %1725 = vmatpush1.bf16.msra.mxu0 %v1224_v30  ;;  %1889 = vmatpush1.bf16.msra.mxu1 %v1226_v31  ;;  %v1305_v30 = vunpack.c.h.s8.bf16 %v961_v20  ;;  %v1307_v31 = vunpack.c.h.s8.bf16 %v963_v21 }
 0x22b   : > { %1726 = vmatprep.subr.bf16.mxu0 %v1233_v32  ;;  %1890 = vmatprep.subr.bf16.mxu1 %v1235_v33  ;;  %v969_v32 = vld [vmem:[%s6835_s7 + $0x2c8] sm:$0xff]  ;;  %v971_v33 = vld [vmem:[%s6835_s7 + $0x2d8] sm:$0xff] }
 0x22e   : > { %1727 = vmatpush1.bf16.msra.mxu0 %v1232_v36  ;;  %1891 = vmatpush1.bf16.msra.mxu1 %v1234_v37  ;;  %v1313_v36 = vunpack.c.l.s8.bf16 %v969_v32  ;;  %v1315_v37 = vunpack.c.l.s8.bf16 %v971_v33 }
 0x22f   : > { %1728 = vmatprep.subr.bf16.mxu0 %v1241_v38  ;;  %1892 = vmatprep.subr.bf16.mxu1 %v1243_v39  ;;  %v968_v38 = vld [vmem:[%s6835_s7 + $0x2c0] sm:$0xff]  ;;  %v970_v39 = vld [vmem:[%s6835_s7 + $0x2d0] sm:$0xff] }
 0x230   : > { %v1312_v40 = vunpack.c.l.s8.bf16 %v968_v38  ;;  %v1314_v41 = vunpack.c.l.s8.bf16 %v970_v39  ;;  %v1320_v46 = vunpack.c.h.s8.bf16 %v968_v38  ;;  %v1322_v47 = vunpack.c.h.s8.bf16 %v970_v39 }
 0x232   : > { %1729 = vmatpush1.bf16.msra.mxu0 %v1240_v42  ;;  %1893 = vmatpush1.bf16.msra.mxu1 %v1242_v43  ;;  %v1321_v42 = vunpack.c.h.s8.bf16 %v969_v32  ;;  %v1323_v43 = vunpack.c.h.s8.bf16 %v971_v33 }
 0x233   : > { %1730 = vmatprep.subr.bf16.mxu0 %v1249_v44  ;;  %1894 = vmatprep.subr.bf16.mxu1 %v1251_v45  ;;  %v977_v44 = vld [vmem:[%s6835_s7 + $0x308] sm:$0xff]  ;;  %v979_v45 = vld [vmem:[%s6835_s7 + $0x318] sm:$0xff] }
 0x234   : > { %v1329_v48 = vunpack.c.l.s8.bf16 %v977_v44  ;;  %v1337_v56 = vunpack.c.h.s8.bf16 %v977_v44 }
 0x236   : > { %1731 = vmatpush1.bf16.msra.mxu0 %v1248_v50  ;;  %1895 = vmatpush1.bf16.msra.mxu1 %v1250_v51  ;;  %v1331_v50 = vunpack.c.l.s8.bf16 %v979_v45  ;;  %v976_v51 = vld [vmem:[%s6835_s7 + $0x300] sm:$0xff] }
 0x237   : > { %1732 = vmatprep.subr.bf16.mxu0 %v1257_v52  ;;  %1896 = vmatprep.subr.bf16.mxu1 %v1259_v53  ;;  %v978_v52 = vld [vmem:[%s6835_s7 + $0x310] sm:$0xff]  ;;  %v1328_v53 = vunpack.c.l.s8.bf16 %v976_v51 }
 0x238   : > { %v1330_v54 = vunpack.c.l.s8.bf16 %v978_v52  ;;  %v1338_v63 = vunpack.c.h.s8.bf16 %v978_v52  ;;  %v1019_v52 = vld [vmem:[%s6835_s7 + $0x458] sm:$0xff] }
 0x23a   : > { %1733 = vmatpush1.bf16.msra.mxu0 %v1256_v58  ;;  %1897 = vmatpush1.bf16.msra.mxu1 %v1258_v59  ;;  %v1339_v58 = vunpack.c.h.s8.bf16 %v979_v45  ;;  %v985_v59 = vld [vmem:[%s6835_s7 + $0x348] sm:$0xff]  ;;  %v6988_v45 = vpack.c.bf16 %v6930_v57, %v6930_v57 }
 0x23b   : > { %1743 = vmatprep.subr.bf16.mxu0 %v1265_v55  ;;  %1907 = vmatprep.subr.bf16.mxu1 %v1267_v62  ;;  %v987_v55 = vld [vmem:[%s6835_s7 + $0x358] sm:$0xff]  ;;  %v1336_v62 = vunpack.c.h.s8.bf16 %v976_v51  ;;  %v1345_v0 = vunpack.c.l.s8.bf16 %v985_v59  ;;  %v1353_v8 = vunpack.c.h.s8.bf16 %v985_v59  ;;  %v1017_v51 = vld [vmem:[%s6835_s7 + $0x448] sm:$0xff]  ;;  %v1016_v59 = vld [vmem:[%s6835_s7 + $0x440] sm:$0xff] }
 0x23c   : > { %v1347_v1 = vunpack.c.l.s8.bf16 %v987_v55  ;;  %v1355_v9 = vunpack.c.h.s8.bf16 %v987_v55  ;;  %v1018_v55 = vld [vmem:[%s6835_s7 + $0x450] sm:$0xff] }
 0x23d   : > { %1735 = vmatmul.mubr.bf16.vlgmr.msra.gmra.mrb[0].mxu0 %v6938_v2  ;;  %1899 = vmatmul.mubr.bf16.vlgmr.msra.gmra.mrb[0].mxu1 %v6938_v2 }
 0x23e   : > { %1744 = vmatpush1.bf16.msra.mxu0 %v1264_v3  ;;  %1908 = vmatpush1.bf16.msra.mxu1 %v1266_v4  ;;  %v984_v3 = vld [vmem:[%s6835_s7 + $0x340] sm:$0xff]  ;;  %v986_v4 = vld [vmem:[%s6835_s7 + $0x350] sm:$0xff] }
 0x23f   : > { %1745 = vmatprep.subr.bf16.mxu0 %v1273_v6  ;;  %1909 = vmatprep.subr.bf16.mxu1 %v1275_v7  ;;  %v1344_v6 = vunpack.c.l.s8.bf16 %v984_v3  ;;  %v1346_v7 = vunpack.c.l.s8.bf16 %v986_v4 }
 0x240   : > { %1775 = vmatprep.mubr.bf16.mxu0 %v6942_v10  ;;  %1939 = vmatprep.mubr.bf16.mxu1 %v6942_v10 }
 0x242   : > { %1746 = vmatpush1.bf16.msra.mxu0 %v1272_v61  ;;  %1910 = vmatpush1.bf16.msra.mxu1 %v1274_v11  ;;  %v993_v61 = vld [vmem:[%s6835_s7 + $0x388] sm:$0xff]  ;;  %v995_v11 = vld [vmem:[%s6835_s7 + $0x398] sm:$0xff] }
 0x243   : > { %1747 = vmatprep.subr.bf16.mxu0 %v1281_v12  ;;  %1911 = vmatprep.subr.bf16.mxu1 %v1283_v13  ;;  %v1352_v12 = vunpack.c.h.s8.bf16 %v984_v3  ;;  %v1354_v13 = vunpack.c.h.s8.bf16 %v986_v4  ;;  %v1361_v14 = vunpack.c.l.s8.bf16 %v993_v61  ;;  %v1363_v15 = vunpack.c.l.s8.bf16 %v995_v11  ;;  %v1025_v3 = vld [vmem:[%s6835_s7 + $0x488] sm:$0xff]  ;;  %v1027_v4 = vld [vmem:[%s6835_s7 + $0x498] sm:$0xff] }
 0x244   : > { %v1369_v20 = vunpack.c.h.s8.bf16 %v993_v61  ;;  %v1371_v21 = vunpack.c.h.s8.bf16 %v995_v11  ;;  %v1024_v61 = vld [vmem:[%s6835_s7 + $0x480] sm:$0xff]  ;;  %v1026_v11 = vld [vmem:[%s6835_s7 + $0x490] sm:$0xff] }
 0x246   : > { %1748 = vmatpush1.bf16.msra.mxu0 %v1280_v16  ;;  %1912 = vmatpush1.bf16.msra.mxu1 %v1282_v17  ;;  %v992_v16 = vld [vmem:[%s6835_s7 + $0x380] sm:$0xff]  ;;  %v994_v17 = vld [vmem:[%s6835_s7 + $0x390] sm:$0xff] }
 0x247   : > { %1749 = vmatprep.subr.bf16.mxu0 %v1289_v18  ;;  %1913 = vmatprep.subr.bf16.mxu1 %v1291_v19  ;;  %v1360_v18 = vunpack.c.l.s8.bf16 %v992_v16  ;;  %v1362_v19 = vunpack.c.l.s8.bf16 %v994_v17 }
 0x24a   : > { %1750 = vmatpush1.bf16.msra.mxu0 %v1288_v22  ;;  %1914 = vmatpush1.bf16.msra.mxu1 %v1290_v23  ;;  %v1001_v22 = vld [vmem:[%s6835_s7 + $0x3c8] sm:$0xff]  ;;  %v1003_v23 = vld [vmem:[%s6835_s7 + $0x3d8] sm:$0xff] }
 0x24b   : > { %1751 = vmatprep.subr.bf16.mxu0 %v1297_v24  ;;  %1915 = vmatprep.subr.bf16.mxu1 %v1299_v25  ;;  %v1368_v24 = vunpack.c.h.s8.bf16 %v992_v16  ;;  %v1370_v25 = vunpack.c.h.s8.bf16 %v994_v17  ;;  %v1377_v26 = vunpack.c.l.s8.bf16 %v1001_v22  ;;  %v1379_v27 = vunpack.c.l.s8.bf16 %v1003_v23  ;;  %v1033_v16 = vld [vmem:[%s6835_s7 + $0x4c8] sm:$0xff]  ;;  %v1035_v17 = vld [vmem:[%s6835_s7 + $0x4d8] sm:$0xff] }
 0x24c   : > { %v1385_v33 = vunpack.c.h.s8.bf16 %v1001_v22  ;;  %v1032_v22 = vld [vmem:[%s6835_s7 + $0x4c0] sm:$0xff] }
 0x24e   : > { %1752 = vmatpush1.bf16.msra.mxu0 %v1296_v28  ;;  %1916 = vmatpush1.bf16.msra.mxu1 %v1298_v29  ;;  %v1000_v28 = vld [vmem:[%s6835_s7 + $0x3c0] sm:$0xff]  ;;  %v1002_v29 = vld [vmem:[%s6835_s7 + $0x3d0] sm:$0xff] }
 0x24f   : > { %1753 = vmatprep.subr.bf16.mxu0 %v1305_v30  ;;  %1917 = vmatprep.subr.bf16.mxu1 %v1307_v31  ;;  %v6974_v30 = vld [vmem:[#allocation2 + $0x8] sm:$0xff]  ;;  %v1376_v31 = vunpack.c.l.s8.bf16 %v1000_v28  ;;  %v1378_v32 = vunpack.c.l.s8.bf16 %v1002_v29  ;;  %v1384_v38 = vunpack.c.h.s8.bf16 %v1000_v28  ;;  %v1386_v39 = vunpack.c.h.s8.bf16 %v1002_v29  ;;  %v1043_v29 = vld [vmem:[%s6835_s7 + $0x518] sm:$0xff] }
 0x250   : > { %v1041_v28 = vld [vmem:[%s6835_s7 + $0x508] sm:$0xff] }
 0x252   : > { %1754 = vmatpush1.bf16.msra.mxu0 %v1304_v34  ;;  %1918 = vmatpush1.bf16.msra.mxu1 %v1306_v35  ;;  %v1387_v34 = vunpack.c.h.s8.bf16 %v1003_v23  ;;  %v1009_v35 = vld [vmem:[%s6835_s7 + $0x408] sm:$0xff]  ;;  %v1034_v23 = vld [vmem:[%s6835_s7 + $0x4d0] sm:$0xff] }
 0x253   : > { %1755 = vmatprep.subr.bf16.mxu0 %v1313_v36  ;;  %1919 = vmatprep.subr.bf16.mxu1 %v1315_v37  ;;  %v1011_v36 = vld [vmem:[%s6835_s7 + $0x418] sm:$0xff]  ;;  %v6980_v37 = vrot.slane %v6974_v30, %v6897_v60 }
 0x255   : > { %v1684_v44 = vcombine.high %v6980_v37, %v6980_v37 }
 0x256   : > { %1756 = vmatpush1.bf16.msra.mxu0 %v1312_v40  ;;  %1920 = vmatpush1.bf16.msra.mxu1 %v1314_v41  ;;  %v1393_v40 = vunpack.c.l.s8.bf16 %v1009_v35  ;;  %v1395_v41 = vunpack.c.l.s8.bf16 %v1011_v36 }
 0x257   : > { %1757 = vmatprep.subr.bf16.mxu0 %v1321_v42  ;;  %1921 = vmatprep.subr.bf16.mxu1 %v1323_v43  ;;  %v1008_v42 = vld [vmem:[%s6835_s7 + $0x400] sm:$0xff]  ;;  %v1010_v43 = vld [vmem:[%s6835_s7 + $0x410] sm:$0xff] }
 0x258   : > { %v1400_v57 = vunpack.c.h.s8.bf16 %v1008_v42 }
 0x25a   : > { %1758 = vmatpush1.bf16.msra.mxu0 %v1320_v46  ;;  %1922 = vmatpush1.bf16.msra.mxu1 %v1322_v47  ;;  %v1392_v46 = vunpack.c.l.s8.bf16 %v1008_v42  ;;  %v1394_v47 = vunpack.c.l.s8.bf16 %v1010_v43  ;;  %v1049_v42 = vld [vmem:[%s6835_s7 + $0x548] sm:$0xff] }
 0x25b   : > { %1759 = vmatprep.subr.bf16.mxu0 %v1329_v48  ;;  %1923 = vmatprep.subr.bf16.mxu1 %v1331_v50  ;;  %v1401_v48 = vunpack.c.h.s8.bf16 %v1009_v35  ;;  %v1403_v50 = vunpack.c.h.s8.bf16 %v1011_v36  ;;  %v1040_v35 = vld [vmem:[%s6835_s7 + $0x500] sm:$0xff]  ;;  %v1042_v36 = vld [vmem:[%s6835_s7 + $0x510] sm:$0xff] }
 0x25e   : > { %1760 = vmatpush1.bf16.msra.mxu0 %v1328_v53  ;;  %1924 = vmatpush1.bf16.msra.mxu1 %v1330_v54  ;;  %v6992_v53 = vpack.c.bf16 %v1684_v44, %v1684_v44  ;;  %v1402_v54 = vunpack.c.h.s8.bf16 %v1010_v43  ;;  %v1051_v43 = vld [vmem:[%s6835_s7 + $0x558] sm:$0xff]  ;;  %v1464_v44 = vunpack.c.h.s8.bf16 %v1040_v35 }
 0x25f   : > { %1761 = vmatprep.subr.bf16.mxu0 %v1337_v56  ;;  %1925 = vmatprep.subr.bf16.mxu1 %v1339_v58  ;;  %v1409_v56 = vunpack.c.l.s8.bf16 %v1017_v51  ;;  %v1411_v58 = vunpack.c.l.s8.bf16 %v1019_v52 }
 0x262   : > { %1762 = vmatpush1.bf16.msra.mxu0 %v1336_v62  ;;  %1926 = vmatpush1.bf16.msra.mxu1 %v1338_v63  ;;  %v1408_v62 = vunpack.c.l.s8.bf16 %v1016_v59  ;;  %v1410_v63 = vunpack.c.l.s8.bf16 %v1018_v55 }
 0x263   : > { %1763 = vmatprep.subr.bf16.mxu0 %v1345_v0  ;;  %1927 = vmatprep.subr.bf16.mxu1 %v1347_v1  ;;  %v1417_v0 = vunpack.c.h.s8.bf16 %v1017_v51  ;;  %v1419_v1 = vunpack.c.h.s8.bf16 %v1019_v52  ;;  %v1050_v51 = vld [vmem:[%s6835_s7 + $0x550] sm:$0xff] }
 0x266   : > { %1764 = vmatpush1.bf16.msra.mxu0 %v1344_v6  ;;  %1928 = vmatpush1.bf16.msra.mxu1 %v1346_v7  ;;  %v1416_v6 = vunpack.c.h.s8.bf16 %v1016_v59  ;;  %v1418_v7 = vunpack.c.h.s8.bf16 %v1018_v55  ;;  %v1059_v59 = vld [vmem:[%s6835_s7 + $0x598] sm:$0xff] }
 0x267   : > { %1765 = vmatprep.subr.bf16.mxu0 %v1353_v8  ;;  %1929 = vmatprep.subr.bf16.mxu1 %v1355_v9  ;;  %v1425_v8 = vunpack.c.l.s8.bf16 %v1025_v3  ;;  %v1427_v9 = vunpack.c.l.s8.bf16 %v1027_v4 }
 0x26a   : > { %1766 = vmatpush1.bf16.msra.mxu0 %v1352_v12  ;;  %1930 = vmatpush1.bf16.msra.mxu1 %v1354_v13  ;;  %v1424_v12 = vunpack.c.l.s8.bf16 %v1024_v61  ;;  %v1426_v13 = vunpack.c.l.s8.bf16 %v1026_v11 }
 0x26b   : > { %1767 = vmatprep.subr.bf16.mxu0 %v1361_v14  ;;  %1931 = vmatprep.subr.bf16.mxu1 %v1363_v15  ;;  %v1433_v14 = vunpack.c.h.s8.bf16 %v1025_v3  ;;  %v1435_v15 = vunpack.c.h.s8.bf16 %v1027_v4  ;;  %v1058_v3 = vld [vmem:[%s6835_s7 + $0x590] sm:$0xff] }
 0x26e   : > { %1768 = vmatpush1.bf16.msra.mxu0 %v1360_v18  ;;  %1932 = vmatpush1.bf16.msra.mxu1 %v1362_v19  ;;  %v1432_v18 = vunpack.c.h.s8.bf16 %v1024_v61  ;;  %v1434_v19 = vunpack.c.h.s8.bf16 %v1026_v11  ;;  %v1067_v61 = vld [vmem:[%s6835_s7 + $0x5d8] sm:$0xff] }
 0x26f   : > { %1769 = vmatprep.subr.bf16.mxu0 %v1369_v20  ;;  %1933 = vmatprep.subr.bf16.mxu1 %v1371_v21  ;;  %v1441_v20 = vunpack.c.l.s8.bf16 %v1033_v16  ;;  %v1443_v21 = vunpack.c.l.s8.bf16 %v1035_v17 }
 0x272   : > { %1770 = vmatpush1.bf16.msra.mxu0 %v1368_v24  ;;  %1934 = vmatpush1.bf16.msra.mxu1 %v1370_v25  ;;  %v1440_v24 = vunpack.c.l.s8.bf16 %v1032_v22  ;;  %v1442_v25 = vunpack.c.l.s8.bf16 %v1034_v23 }
 0x273   : > { %1771 = vmatprep.subr.bf16.mxu0 %v1377_v26  ;;  %1935 = vmatprep.subr.bf16.mxu1 %v1379_v27  ;;  %v1449_v26 = vunpack.c.h.s8.bf16 %v1033_v16  ;;  %v1451_v27 = vunpack.c.h.s8.bf16 %v1035_v17  ;;  %v1066_v16 = vld [vmem:[%s6835_s7 + $0x5d0] sm:$0xff]  ;;  %v1669_v17 = vcombine.high %v6974_v30, %v6974_v30 }
 0x276   : > { %1772 = vmatpush1.bf16.msra.mxu0 %v1376_v31  ;;  %1936 = vmatpush1.bf16.msra.mxu1 %v1378_v32  ;;  %v1448_v31 = vunpack.c.h.s8.bf16 %v1032_v22  ;;  %v1450_v32 = vunpack.c.h.s8.bf16 %v1034_v23  ;;  %v1073_v22 = vld [vmem:[%s6835_s7 + $0x608] sm:$0xff]  ;;  %v1075_v23 = vld [vmem:[%s6835_s7 + $0x618] sm:$0xff] }
 0x277   : > { %1773 = vmatprep.subr.bf16.mxu0 %v1385_v33  ;;  %1937 = vmatprep.subr.bf16.mxu1 %v1387_v34  ;;  %v1457_v33 = vunpack.c.l.s8.bf16 %v1041_v28  ;;  %v1459_v34 = vunpack.c.l.s8.bf16 %v1043_v29  ;;  %v1521_v30 = vunpack.c.l.s8.bf16 %v1073_v22 }
 0x27a   : > { %1774 = vmatpush1.bf16.msra.mxu0 %v1384_v38  ;;  %1938 = vmatpush1.bf16.msra.mxu1 %v1386_v39  ;;  %v1456_v38 = vunpack.c.l.s8.bf16 %v1040_v35  ;;  %v1458_v39 = vunpack.c.l.s8.bf16 %v1042_v36  ;;  %v1529_v35 = vunpack.c.h.s8.bf16 %v1073_v22 }
 0x27b   : > { %1784 = vmatprep.subr.bf16.mxu0 %v1393_v40  ;;  %1948 = vmatprep.subr.bf16.mxu1 %v1395_v41  ;;  %v1465_v40 = vunpack.c.h.s8.bf16 %v1041_v28  ;;  %v1467_v41 = vunpack.c.h.s8.bf16 %v1043_v29  ;;  %v1072_v28 = vld [vmem:[%s6835_s7 + $0x600] sm:$0xff]  ;;  %v1074_v29 = vld [vmem:[%s6835_s7 + $0x610] sm:$0xff] }
 0x27d   : > { %1776 = vmatmul.mubr.bf16.vlgmr.msra.gmra.mrb[0].mxu0 %v6988_v45  ;;  %1940 = vmatmul.mubr.bf16.vlgmr.msra.gmra.mrb[0].mxu1 %v6988_v45 }
 0x27e   : > { %1785 = vmatpush1.bf16.msra.mxu0 %v1392_v46  ;;  %1949 = vmatpush1.bf16.msra.mxu1 %v1394_v47  ;;  %v1466_v46 = vunpack.c.h.s8.bf16 %v1042_v36  ;;  %v1473_v47 = vunpack.c.l.s8.bf16 %v1049_v42  ;;  %v1531_v36 = vunpack.c.h.s8.bf16 %v1075_v23 }
 0x27f   : > { %1786 = vmatprep.subr.bf16.mxu0 %v1401_v48  ;;  %1950 = vmatprep.subr.bf16.mxu1 %v1403_v50  ;;  %v1475_v48 = vunpack.c.l.s8.bf16 %v1051_v43  ;;  %v1048_v50 = vld [vmem:[%s6835_s7 + $0x540] sm:$0xff] }
 0x280   : > { %1816 = vmatprep.mubr.bf16.mxu0 %v6992_v53  ;;  %1980 = vmatprep.mubr.bf16.mxu1 %v6992_v53  ;;  %v1472_v52 = vunpack.c.l.s8.bf16 %v1048_v50  ;;  %v1480_v55 = vunpack.c.h.s8.bf16 %v1048_v50 }
 0x282   : > { %1787 = vmatpush1.bf16.msra.mxu0 %v1400_v57  ;;  %1951 = vmatpush1.bf16.msra.mxu1 %v1402_v54  ;;  %v1474_v57 = vunpack.c.l.s8.bf16 %v1050_v51  ;;  %v1481_v54 = vunpack.c.h.s8.bf16 %v1049_v42 }
 0x283   : > { %1788 = vmatprep.subr.bf16.mxu0 %v1409_v56  ;;  %1952 = vmatprep.subr.bf16.mxu1 %v1411_v58  ;;  %v1483_v56 = vunpack.c.h.s8.bf16 %v1051_v43  ;;  %v1057_v58 = vld [vmem:[%s6835_s7 + $0x588] sm:$0xff] }
 0x286   : > { %1789 = vmatpush1.bf16.msra.mxu0 %v1408_v62  ;;  %1953 = vmatpush1.bf16.msra.mxu1 %v1410_v63  ;;  %v1482_v62 = vunpack.c.h.s8.bf16 %v1050_v51  ;;  %v1489_v63 = vunpack.c.l.s8.bf16 %v1057_v58 }
 0x287   : > { %1790 = vmatprep.subr.bf16.mxu0 %v1417_v0  ;;  %1954 = vmatprep.subr.bf16.mxu1 %v1419_v1  ;;  %v1491_v0 = vunpack.c.l.s8.bf16 %v1059_v59  ;;  %v1056_v1 = vld [vmem:[%s6835_s7 + $0x580] sm:$0xff] }
 0x288   : > { %v1488_v4 = vunpack.c.l.s8.bf16 %v1056_v1  ;;  %v1496_v11 = vunpack.c.h.s8.bf16 %v1056_v1 }
 0x28a   : > { %1791 = vmatpush1.bf16.msra.mxu0 %v1416_v6  ;;  %1955 = vmatpush1.bf16.msra.mxu1 %v1418_v7  ;;  %v1490_v6 = vunpack.c.l.s8.bf16 %v1058_v3  ;;  %v1497_v7 = vunpack.c.h.s8.bf16 %v1057_v58 }
 0x28b   : > { %1792 = vmatprep.subr.bf16.mxu0 %v1425_v8  ;;  %1956 = vmatprep.subr.bf16.mxu1 %v1427_v9  ;;  %v1499_v8 = vunpack.c.h.s8.bf16 %v1059_v59  ;;  %v1065_v9 = vld [vmem:[%s6835_s7 + $0x5c8] sm:$0xff] }
 0x28e   : > { %1793 = vmatpush1.bf16.msra.mxu0 %v1424_v12  ;;  %1957 = vmatpush1.bf16.msra.mxu1 %v1426_v13  ;;  %v1498_v12 = vunpack.c.h.s8.bf16 %v1058_v3  ;;  %v1505_v13 = vunpack.c.l.s8.bf16 %v1065_v9 }
 0x28f   : > { %1794 = vmatprep.subr.bf16.mxu0 %v1433_v14  ;;  %1958 = vmatprep.subr.bf16.mxu1 %v1435_v15  ;;  %v1507_v14 = vunpack.c.l.s8.bf16 %v1067_v61  ;;  %v1064_v15 = vld [vmem:[%s6835_s7 + $0x5c0] sm:$0xff] }
 0x292   : > { %1795 = vmatpush1.bf16.msra.mxu0 %v1432_v18  ;;  %1959 = vmatpush1.bf16.msra.mxu1 %v1434_v19  ;;  %v1504_v18 = vunpack.c.l.s8.bf16 %v1064_v15  ;;  %v1506_v19 = vunpack.c.l.s8.bf16 %v1066_v16 }
 0x293   : > { %1796 = vmatprep.subr.bf16.mxu0 %v1441_v20  ;;  %1960 = vmatprep.subr.bf16.mxu1 %v1443_v21  ;;  %v1513_v20 = vunpack.c.h.s8.bf16 %v1065_v9  ;;  %v1515_v21 = vunpack.c.h.s8.bf16 %v1067_v61 }
 0x296   : > { %1797 = vmatpush1.bf16.msra.mxu0 %v1440_v24  ;;  %1961 = vmatpush1.bf16.msra.mxu1 %v1442_v25  ;;  %v7029_v24 = vrot.slane %v1669_v17, %v6897_v60  ;;  %v1512_v25 = vunpack.c.h.s8.bf16 %v1064_v15  ;;  %v1105_v17 = vld [vmem:[%s6835_s7 + $0x708] sm:$0xff] }
 0x297   : > { %1798 = vmatprep.subr.bf16.mxu0 %v1449_v26  ;;  %1962 = vmatprep.subr.bf16.mxu1 %v1451_v27  ;;  %v1514_v26 = vunpack.c.h.s8.bf16 %v1066_v16  ;;  %v1523_v27 = vunpack.c.l.s8.bf16 %v1075_v23  ;;  %v1104_v23 = vld [vmem:[%s6835_s7 + $0x700] sm:$0xff] }
 0x29a   : > { %1799 = vmatpush1.bf16.msra.mxu0 %v1448_v31  ;;  %1963 = vmatpush1.bf16.msra.mxu1 %v1450_v32  ;;  %v1685_v31 = vcombine.high %v7029_v24, %v7029_v24  ;;  %v7037_v32 = vpack.c.bf16 %v6980_v37, %v6980_v37  ;;  %v1528_v37 = vunpack.c.h.s8.bf16 %v1072_v28 }
 0x29b   : > { %1800 = vmatprep.subr.bf16.mxu0 %v1457_v33  ;;  %1964 = vmatprep.subr.bf16.mxu1 %v1459_v34  ;;  %v1520_v33 = vunpack.c.l.s8.bf16 %v1072_v28  ;;  %v1522_v34 = vunpack.c.l.s8.bf16 %v1074_v29 }
 0x29e   : > { %1801 = vmatpush1.bf16.msra.mxu0 %v1456_v38  ;;  %1965 = vmatpush1.bf16.msra.mxu1 %v1458_v39  ;;  %v1081_v38 = vld [vmem:[%s6835_s7 + $0x648] sm:$0xff]  ;;  %v1083_v39 = vld [vmem:[%s6835_s7 + $0x658] sm:$0xff] }
 0x29f   : > { %1802 = vmatprep.subr.bf16.mxu0 %v1465_v40  ;;  %1966 = vmatprep.subr.bf16.mxu1 %v1467_v41  ;;  %v7041_v40 = vpack.c.bf16 %v1685_v31, %v1685_v31  ;;  %v1530_v41 = vunpack.c.h.s8.bf16 %v1074_v29  ;;  %v1537_v42 = vunpack.c.l.s8.bf16 %v1081_v38  ;;  %v1539_v43 = vunpack.c.l.s8.bf16 %v1083_v39  ;;  %v1113_v29 = vld [vmem:[%s6835_s7 + $0x748] sm:$0xff]  ;;  %v1115_v31 = vld [vmem:[%s6835_s7 + $0x758] sm:$0xff] }
 0x2a0   : > { %v1545_v50 = vunpack.c.h.s8.bf16 %v1081_v38  ;;  %v1547_v51 = vunpack.c.h.s8.bf16 %v1083_v39  ;;  %v1112_v38 = vld [vmem:[%s6835_s7 + $0x740] sm:$0xff]  ;;  %v1114_v39 = vld [vmem:[%s6835_s7 + $0x750] sm:$0xff] }
 0x2a2   : > { %1803 = vmatpush1.bf16.msra.mxu0 %v1464_v44  ;;  %1967 = vmatpush1.bf16.msra.mxu1 %v1466_v46  ;;  %v1080_v44 = vld [vmem:[%s6835_s7 + $0x640] sm:$0xff]  ;;  %v1082_v46 = vld [vmem:[%s6835_s7 + $0x650] sm:$0xff] }
 0x2a3   : > { %1804 = vmatprep.subr.bf16.mxu0 %v1473_v47  ;;  %1968 = vmatprep.subr.bf16.mxu1 %v1475_v48  ;;  %v1536_v47 = vunpack.c.l.s8.bf16 %v1080_v44  ;;  %v1538_v48 = vunpack.c.l.s8.bf16 %v1082_v46 }
 0x2a6   : > { %1805 = vmatpush1.bf16.msra.mxu0 %v1472_v52  ;;  %1969 = vmatpush1.bf16.msra.mxu1 %v1474_v57  ;;  %v1089_v52 = vld [vmem:[%s6835_s7 + $0x688] sm:$0xff]  ;;  %v1091_v57 = vld [vmem:[%s6835_s7 + $0x698] sm:$0xff] }
 0x2a7   : > { %1806 = vmatprep.subr.bf16.mxu0 %v1481_v54  ;;  %1970 = vmatprep.subr.bf16.mxu1 %v1483_v56  ;;  %v1544_v54 = vunpack.c.h.s8.bf16 %v1080_v44  ;;  %v1546_v56 = vunpack.c.h.s8.bf16 %v1082_v46  ;;  %v1553_v58 = vunpack.c.l.s8.bf16 %v1089_v52  ;;  %v1555_v59 = vunpack.c.l.s8.bf16 %v1091_v57  ;;  %v1121_v44 = vld [vmem:[%s6835_s7 + $0x788] sm:$0xff]  ;;  %v1123_v46 = vld [vmem:[%s6835_s7 + $0x798] sm:$0xff] }
 0x2a8   : > { %v1561_v1 = vunpack.c.h.s8.bf16 %v1089_v52  ;;  %v1563_v3 = vunpack.c.h.s8.bf16 %v1091_v57  ;;  %v1120_v52 = vld [vmem:[%s6835_s7 + $0x780] sm:$0xff]  ;;  %v1122_v57 = vld [vmem:[%s6835_s7 + $0x790] sm:$0xff] }
 0x2aa   : > { %1807 = vmatpush1.bf16.msra.mxu0 %v1480_v55  ;;  %1971 = vmatpush1.bf16.msra.mxu1 %v1482_v62  ;;  %v1088_v55 = vld [vmem:[%s6835_s7 + $0x680] sm:$0xff]  ;;  %v1090_v62 = vld [vmem:[%s6835_s7 + $0x690] sm:$0xff] }
 0x2ab   : > { %1808 = vmatprep.subr.bf16.mxu0 %v1489_v63  ;;  %1972 = vmatprep.subr.bf16.mxu1 %v1491_v0  ;;  %v1552_v63 = vunpack.c.l.s8.bf16 %v1088_v55  ;;  %v1554_v0 = vunpack.c.l.s8.bf16 %v1090_v62 }
 0x2ae   : > { %1809 = vmatpush1.bf16.msra.mxu0 %v1488_v4  ;;  %1973 = vmatpush1.bf16.msra.mxu1 %v1490_v6  ;;  %v1097_v4 = vld [vmem:[%s6835_s7 + $0x6c8] sm:$0xff]  ;;  %v1099_v6 = vld [vmem:[%s6835_s7 + $0x6d8] sm:$0xff] }
 0x2af   : > { %1810 = vmatprep.subr.bf16.mxu0 %v1497_v7  ;;  %1974 = vmatprep.subr.bf16.mxu1 %v1499_v8  ;;  %v1560_v7 = vunpack.c.h.s8.bf16 %v1088_v55  ;;  %v1562_v8 = vunpack.c.h.s8.bf16 %v1090_v62  ;;  %v1569_v9 = vunpack.c.l.s8.bf16 %v1097_v4  ;;  %v1571_v61 = vunpack.c.l.s8.bf16 %v1099_v6  ;;  %v1129_v55 = vld [vmem:[%s6835_s7 + $0x7c8] sm:$0xff]  ;;  %v1131_v62 = vld [vmem:[%s6835_s7 + $0x7d8] sm:$0xff] }
 0x2b0   : > { %v1577_v15 = vunpack.c.h.s8.bf16 %v1097_v4  ;;  %v1579_v16 = vunpack.c.h.s8.bf16 %v1099_v6  ;;  %v1128_v4 = vld [vmem:[%s6835_s7 + $0x7c0] sm:$0xff]  ;;  %v1130_v6 = vld [vmem:[%s6835_s7 + $0x7d0] sm:$0xff] }
 0x2b2   : > { %1811 = vmatpush1.bf16.msra.mxu0 %v1496_v11  ;;  %1975 = vmatpush1.bf16.msra.mxu1 %v1498_v12  ;;  %v1096_v11 = vld [vmem:[%s6835_s7 + $0x6c0] sm:$0xff]  ;;  %v1098_v12 = vld [vmem:[%s6835_s7 + $0x6d0] sm:$0xff] }
 0x2b3   : > { %1812 = vmatprep.subr.bf16.mxu0 %v1505_v13  ;;  %1976 = vmatprep.subr.bf16.mxu1 %v1507_v14  ;;  %v1568_v13 = vunpack.c.l.s8.bf16 %v1096_v11  ;;  %v1570_v14 = vunpack.c.l.s8.bf16 %v1098_v12 }
 0x2b6   : > { %1813 = vmatpush1.bf16.msra.mxu0 %v1504_v18  ;;  %1977 = vmatpush1.bf16.msra.mxu1 %v1506_v19  ;;  %v1107_v18 = vld [vmem:[%s6835_s7 + $0x718] sm:$0xff]  ;;  %v1576_v19 = vunpack.c.h.s8.bf16 %v1096_v11  ;;  %v885_v11 = vld [vmem:[%s6835_s7 + $0x28] sm:$0xff] }
 0x2b7   : > { %1814 = vmatprep.subr.bf16.mxu0 %v1513_v20  ;;  %1978 = vmatprep.subr.bf16.mxu1 %v1515_v21  ;;  %v1578_v20 = vunpack.c.h.s8.bf16 %v1098_v12  ;;  %v1585_v21 = vunpack.c.l.s8.bf16 %v1105_v17  ;;  %v1587_v22 = vunpack.c.l.s8.bf16 %v1107_v18  ;;  %v1595_v28 = vunpack.c.h.s8.bf16 %v1107_v18  ;;  %v887_v12 = vld [vmem:[%s6835_s7 + $0x38] sm:$0xff]  ;;  %v886_v18 = vld [vmem:[%s6835_s7 + $0x30] sm:$0xff] }
 0x2ba   : > { %1815 = vmatpush1.bf16.msra.mxu0 %v1512_v25  ;;  %1979 = vmatpush1.bf16.msra.mxu1 %v1514_v26  ;;  %v1106_v25 = vld [vmem:[%s6835_s7 + $0x710] sm:$0xff]  ;;  %v1584_v26 = vunpack.c.l.s8.bf16 %v1104_v23 }
 0x2bb   : > { %1825 = vmatprep.subr.bf16.mxu0 %v1521_v30  ;;  %1989 = vmatprep.subr.bf16.mxu1 %v1523_v27  ;;  %v1586_v30 = vunpack.c.l.s8.bf16 %v1106_v25  ;;  %v1593_v27 = vunpack.c.h.s8.bf16 %v1105_v17  ;;  %v884_v17 = vld [vmem:[%s6835_s7 + $0x20] sm:$0xff] }
 0x2bd   : > { %1817 = vmatmul.mubr.bf16.vlgmr.msra.gmra.mrb[0].mxu0 %v7037_v32  ;;  %1981 = vmatmul.mubr.bf16.vlgmr.msra.gmra.mrb[0].mxu1 %v7037_v32 }
 0x2be   : > { %1826 = vmatpush1.bf16.msra.mxu0 %v1520_v33  ;;  %1990 = vmatpush1.bf16.msra.mxu1 %v1522_v34  ;;  %v1592_v33 = vunpack.c.h.s8.bf16 %v1104_v23  ;;  %v1594_v34 = vunpack.c.h.s8.bf16 %v1106_v25  ;;  %v1151_v23 = vunpack.c.h.s8.bf16 %v887_v12  ;;  %v893_v25 = vld [vmem:[%s6835_s7 + $0x68] sm:$0xff] }
 0x2bf   : > { %1827 = vmatprep.subr.bf16.mxu0 %v1529_v35  ;;  %1991 = vmatprep.subr.bf16.mxu1 %v1531_v36  ;;  %v1601_v35 = vunpack.c.l.s8.bf16 %v1113_v29  ;;  %v1603_v36 = vunpack.c.l.s8.bf16 %v1115_v31 }
 0x2c0   : > { %1857 = vmatprep.mubr.bf16.mxu0 %v7041_v40  ;;  %2021 = vmatprep.mubr.bf16.mxu1 %v7041_v40 }
 0x2c2   : > { %1828 = vmatpush1.bf16.msra.mxu0 %v1528_v37  ;;  %1992 = vmatpush1.bf16.msra.mxu1 %v1530_v41  ;;  %v1600_v37 = vunpack.c.l.s8.bf16 %v1112_v38  ;;  %v1602_v41 = vunpack.c.l.s8.bf16 %v1114_v39 }
 0x2c3   : > { %1829 = vmatprep.subr.bf16.mxu0 %v1537_v42  ;;  %1993 = vmatprep.subr.bf16.mxu1 %v1539_v43  ;;  %v1609_v42 = vunpack.c.h.s8.bf16 %v1113_v29  ;;  %v1611_v43 = vunpack.c.h.s8.bf16 %v1115_v31  ;;  %v892_v29 = vld [vmem:[%s6835_s7 + $0x60] sm:$0xff]  ;;  %v894_v31 = vld [vmem:[%s6835_s7 + $0x70] sm:$0xff] }
 0x2c6   : > { %1830 = vmatpush1.bf16.msra.mxu0 %v1536_v47  ;;  %1994 = vmatpush1.bf16.msra.mxu1 %v1538_v48  ;;  %v1608_v47 = vunpack.c.h.s8.bf16 %v1112_v38  ;;  %v1610_v48 = vunpack.c.h.s8.bf16 %v1114_v39  ;;  %v901_v38 = vld [vmem:[%s6835_s7 + $0xa8] sm:$0xff]  ;;  %v903_v39 = vld [vmem:[%s6835_s7 + $0xb8] sm:$0xff] }
 0x2c7   : > { %1831 = vmatprep.subr.bf16.mxu0 %v1545_v50  ;;  %1995 = vmatprep.subr.bf16.mxu1 %v1547_v51  ;;  %v1617_v50 = vunpack.c.l.s8.bf16 %v1121_v44  ;;  %v1619_v51 = vunpack.c.l.s8.bf16 %v1123_v46 }
 0x2ca   : > { %1832 = vmatpush1.bf16.msra.mxu0 %v1544_v54  ;;  %1996 = vmatpush1.bf16.msra.mxu1 %v1546_v56  ;;  %v1616_v54 = vunpack.c.l.s8.bf16 %v1120_v52  ;;  %v1618_v56 = vunpack.c.l.s8.bf16 %v1122_v57 }
 0x2cb   : > { %1833 = vmatprep.subr.bf16.mxu0 %v1553_v58  ;;  %1997 = vmatprep.subr.bf16.mxu1 %v1555_v59  ;;  %v1625_v58 = vunpack.c.h.s8.bf16 %v1121_v44  ;;  %v1627_v59 = vunpack.c.h.s8.bf16 %v1123_v46  ;;  %v902_v44 = vld [vmem:[%s6835_s7 + $0xb0] sm:$0xff] }
 0x2ce   : > { %1834 = vmatpush1.bf16.msra.mxu0 %v1552_v63  ;;  %1998 = vmatpush1.bf16.msra.mxu1 %v1554_v0  ;;  %v1624_v63 = vunpack.c.h.s8.bf16 %v1120_v52  ;;  %v1626_v0 = vunpack.c.h.s8.bf16 %v1122_v57  ;;  %v911_v52 = vld [vmem:[%s6835_s7 + $0xf8] sm:$0xff] }
 0x2cf   : > { %1835 = vmatprep.subr.bf16.mxu0 %v1561_v1  ;;  %1999 = vmatprep.subr.bf16.mxu1 %v1563_v3  ;;  %v1633_v1 = vunpack.c.l.s8.bf16 %v1129_v55  ;;  %v1635_v3 = vunpack.c.l.s8.bf16 %v1131_v62 }
 0x2d2   : > { %1836 = vmatpush1.bf16.msra.mxu0 %v1560_v7  ;;  %2000 = vmatpush1.bf16.msra.mxu1 %v1562_v8  ;;  %v1632_v7 = vunpack.c.l.s8.bf16 %v1128_v4  ;;  %v1634_v8 = vunpack.c.l.s8.bf16 %v1130_v6 }
 0x2d3   : > { %1837 = vmatprep.subr.bf16.mxu0 %v1569_v9  ;;  %2001 = vmatprep.subr.bf16.mxu1 %v1571_v61  ;;  %v1641_v9 = vunpack.c.h.s8.bf16 %v1129_v55  ;;  %v1643_v61 = vunpack.c.h.s8.bf16 %v1131_v62  ;;  %v910_v55 = vld [vmem:[%s6835_s7 + $0xf0] sm:$0xff] }
 0x2d6   : > { %1838 = vmatpush1.bf16.msra.mxu0 %v1568_v13  ;;  %2002 = vmatpush1.bf16.msra.mxu1 %v1570_v14  ;;  %v1640_v13 = vunpack.c.h.s8.bf16 %v1128_v4  ;;  %v1642_v14 = vunpack.c.h.s8.bf16 %v1130_v6  ;;  %v919_v4 = vld [vmem:[%s6835_s7 + $0x138] sm:$0xff] }
 0x2d7   : > { %1839 = vmatprep.subr.bf16.mxu0 %v1577_v15  ;;  %2003 = vmatprep.subr.bf16.mxu1 %v1579_v16  ;;  %v1141_v15 = vunpack.c.l.s8.bf16 %v885_v11  ;;  %v1143_v16 = vunpack.c.l.s8.bf16 %v887_v12 }
 0x2da   : > { %1840 = vmatpush1.bf16.msra.mxu0 %v1576_v19  ;;  %2004 = vmatpush1.bf16.msra.mxu1 %v1578_v20  ;;  %v7079_v19 = vpack.c.bf16 %v7029_v24, %v7029_v24  ;;  %v1140_v20 = vunpack.c.l.s8.bf16 %v884_v17  ;;  %v1148_v24 = vunpack.c.h.s8.bf16 %v884_v17  ;;  %v927_v17 = vld [vmem:[%s6835_s7 + $0x178] sm:$0xff] }
 0x2db   : > { %1841 = vmatprep.subr.bf16.mxu0 %v1585_v21  ;;  %2005 = vmatprep.subr.bf16.mxu1 %v1587_v22  ;;  %v1142_v21 = vunpack.c.l.s8.bf16 %v886_v18  ;;  %v1149_v22 = vunpack.c.h.s8.bf16 %v885_v11  ;;  %v918_v11 = vld [vmem:[%s6835_s7 + $0x130] sm:$0xff] }
 0x2de   : > { %1842 = vmatpush1.bf16.msra.mxu0 %v1584_v26  ;;  %2006 = vmatpush1.bf16.msra.mxu1 %v1586_v30  ;;  %v895_v26 = vld [vmem:[%s6835_s7 + $0x78] sm:$0xff]  ;;  %v1150_v30 = vunpack.c.h.s8.bf16 %v886_v18 }
 0x2df   : > { %1843 = vmatprep.subr.bf16.mxu0 %v1593_v27  ;;  %2007 = vmatprep.subr.bf16.mxu1 %v1595_v28  ;;  %v1157_v27 = vunpack.c.l.s8.bf16 %v893_v25  ;;  %v1159_v28 = vunpack.c.l.s8.bf16 %v895_v26 }
 0x2e2   : > { %1844 = vmatpush1.bf16.msra.mxu0 %v1592_v33  ;;  %2008 = vmatpush1.bf16.msra.mxu1 %v1594_v34  ;;  %v1156_v33 = vunpack.c.l.s8.bf16 %v892_v29  ;;  %v1158_v34 = vunpack.c.l.s8.bf16 %v894_v31 }
 0x2e3   : > { %1845 = vmatprep.subr.bf16.mxu0 %v1601_v35  ;;  %2009 = vmatprep.subr.bf16.mxu1 %v1603_v36  ;;  %v1165_v35 = vunpack.c.h.s8.bf16 %v893_v25  ;;  %v1167_v36 = vunpack.c.h.s8.bf16 %v895_v26  ;;  %v926_v25 = vld [vmem:[%s6835_s7 + $0x170] sm:$0xff] }
 0x2e6   : > { %1846 = vmatpush1.bf16.msra.mxu0 %v1600_v37  ;;  %2010 = vmatpush1.bf16.msra.mxu1 %v1602_v41  ;;  %v1164_v37 = vunpack.c.h.s8.bf16 %v892_v29  ;;  %v1166_v41 = vunpack.c.h.s8.bf16 %v894_v31  ;;  %v935_v29 = vld [vmem:[%s6835_s7 + $0x1b8] sm:$0xff] }
 0x2e7   : > { %1847 = vmatprep.subr.bf16.mxu0 %v1609_v42  ;;  %2011 = vmatprep.subr.bf16.mxu1 %v1611_v43  ;;  %v1175_v42 = vunpack.c.l.s8.bf16 %v903_v39  ;;  %v900_v43 = vld [vmem:[%s6835_s7 + $0xa0] sm:$0xff] }
 0x2e8   : > { %v1172_v46 = vunpack.c.l.s8.bf16 %v900_v43  ;;  %v1180_v57 = vunpack.c.h.s8.bf16 %v900_v43  ;;  %v943_v43 = vld [vmem:[%s6835_s7 + $0x1f8] sm:$0xff] }
 0x2ea   : > { %1848 = vmatpush1.bf16.msra.mxu0 %v1608_v47  ;;  %2012 = vmatpush1.bf16.msra.mxu1 %v1610_v48  ;;  %v1174_v47 = vunpack.c.l.s8.bf16 %v902_v44  ;;  %v1181_v48 = vunpack.c.h.s8.bf16 %v901_v38 }
 0x2eb   : > { %1849 = vmatprep.subr.bf16.mxu0 %v1617_v50  ;;  %2013 = vmatprep.subr.bf16.mxu1 %v1619_v51  ;;  %v1183_v50 = vunpack.c.h.s8.bf16 %v903_v39  ;;  %v909_v51 = vld [vmem:[%s6835_s7 + $0xe8] sm:$0xff] }
 0x2ee   : > { %1850 = vmatpush1.bf16.msra.mxu0 %v1616_v54  ;;  %2014 = vmatpush1.bf16.msra.mxu1 %v1618_v56  ;;  %v1182_v54 = vunpack.c.h.s8.bf16 %v902_v44  ;;  %v1189_v56 = vunpack.c.l.s8.bf16 %v909_v51 }
 0x2ef   : > { %1851 = vmatprep.subr.bf16.mxu0 %v1625_v58  ;;  %2015 = vmatprep.subr.bf16.mxu1 %v1627_v59  ;;  %v1191_v58 = vunpack.c.l.s8.bf16 %v911_v52  ;;  %v908_v59 = vld [vmem:[%s6835_s7 + $0xe0] sm:$0xff] }
 0x2f0   : > { %v1188_v62 = vunpack.c.l.s8.bf16 %v908_v59  ;;  %v1196_v6 = vunpack.c.h.s8.bf16 %v908_v59  ;;  %v951_v59 = vld [vmem:[%s6835_s7 + $0x238] sm:$0xff] }
 0x2f2   : > { %1852 = vmatpush1.bf16.msra.mxu0 %v1624_v63  ;;  %2016 = vmatpush1.bf16.msra.mxu1 %v1626_v0  ;;  %v1190_v63 = vunpack.c.l.s8.bf16 %v910_v55  ;;  %v1197_v0 = vunpack.c.h.s8.bf16 %v909_v51  ;;  %v942_v51 = vld [vmem:[%s6835_s7 + $0x1f0] sm:$0xff] }
 0x2f3   : > { %1853 = vmatprep.subr.bf16.mxu0 %v1633_v1  ;;  %2017 = vmatprep.subr.bf16.mxu1 %v1635_v3  ;;  %v1199_v1 = vunpack.c.h.s8.bf16 %v911_v52  ;;  %v917_v3 = vld [vmem:[%s6835_s7 + $0x128] sm:$0xff] }
 0x2f6   : > { %1854 = vmatpush1.bf16.msra.mxu0 %v1632_v7  ;;  %2018 = vmatpush1.bf16.msra.mxu1 %v1634_v8  ;;  %v1198_v7 = vunpack.c.h.s8.bf16 %v910_v55  ;;  %v1205_v8 = vunpack.c.l.s8.bf16 %v917_v3 }
 0x2f7   : > { %1855 = vmatprep.subr.bf16.mxu0 %v1641_v9  ;;  %2019 = vmatprep.subr.bf16.mxu1 %v1643_v61  ;;  %v1207_v9 = vunpack.c.l.s8.bf16 %v919_v4  ;;  %v916_v61 = vld [vmem:[%s6835_s7 + $0x120] sm:$0xff] }
 0x2f8   : > { %v1204_v12 = vunpack.c.l.s8.bf16 %v916_v61  ;;  %v1212_v18 = vunpack.c.h.s8.bf16 %v916_v61  ;;  %v959_v61 = vld [vmem:[%s6835_s7 + $0x278] sm:$0xff] }
 0x2fa   : > { %1856 = vmatpush1.bf16.msra.mxu0 %v1640_v13  ;;  %2020 = vmatpush1.bf16.msra.mxu1 %v1642_v14  ;;  %v1206_v13 = vunpack.c.l.s8.bf16 %v918_v11  ;;  %v1213_v14 = vunpack.c.h.s8.bf16 %v917_v3  ;;  %v950_v3 = vld [vmem:[%s6835_s7 + $0x230] sm:$0xff] }
 0x2fb   : > { %2030 = vmatprep.subr.bf16.mxu0 %v1141_v15  ;;  %2194 = vmatprep.subr.bf16.mxu1 %v1143_v16  ;;  %v1215_v15 = vunpack.c.h.s8.bf16 %v919_v4  ;;  %v925_v16 = vld [vmem:[%s6835_s7 + $0x168] sm:$0xff] }
 0x2fd   : > { %1858 = vmatmul.mubr.bf16.vlgmr.msra.gmra.mrb[0].mxu0 %v7079_v19  ;;  %2022 = vmatmul.mubr.bf16.vlgmr.msra.gmra.mrb[0].mxu1 %v7079_v19 }
 0x2fe   : > { %2031 = vmatpush1.bf16.msra.mxu0 %v1140_v20  ;;  %2195 = vmatpush1.bf16.msra.mxu1 %v1142_v21  ;;  %v1214_v20 = vunpack.c.h.s8.bf16 %v918_v11  ;;  %v1221_v21 = vunpack.c.l.s8.bf16 %v925_v16 }
 0x2ff   : > { %2032 = vmatprep.subr.bf16.mxu0 %v1149_v22  ;;  %2196 = vmatprep.subr.bf16.mxu1 %v1151_v23  ;;  %v1223_v22 = vunpack.c.l.s8.bf16 %v927_v17  ;;  %v924_v23 = vld [vmem:[%s6835_s7 + $0x160] sm:$0xff] }
 0x300   : > { %2062 = vmatprep.mubr.bf16.mxu0 %v6907_v5  ;;  %2226 = vmatprep.mubr.bf16.mxu1 %v6907_v5  ;;  %v1173_v5 = vunpack.c.l.s8.bf16 %v901_v38  ;;  %v1220_v26 = vunpack.c.l.s8.bf16 %v924_v23  ;;  %v1228_v31 = vunpack.c.h.s8.bf16 %v924_v23  ;;  %v934_v38 = vld [vmem:[%s6835_s7 + $0x1b0] sm:$0xff] }
 0x302   : > { %2033 = vmatpush1.bf16.msra.mxu0 %v1148_v24  ;;  %2197 = vmatpush1.bf16.msra.mxu1 %v1150_v30  ;;  %v1222_v24 = vunpack.c.l.s8.bf16 %v926_v25  ;;  %v1229_v30 = vunpack.c.h.s8.bf16 %v925_v16  ;;  %v958_v16 = vld [vmem:[%s6835_s7 + $0x270] sm:$0xff] }
 0x303   : > { %2034 = vmatprep.subr.bf16.mxu0 %v1157_v27  ;;  %2198 = vmatprep.subr.bf16.mxu1 %v1159_v28  ;;  %v1231_v27 = vunpack.c.h.s8.bf16 %v927_v17  ;;  %v933_v28 = vld [vmem:[%s6835_s7 + $0x1a8] sm:$0xff] }
 0x306   : > { %2035 = vmatpush1.bf16.msra.mxu0 %v1156_v33  ;;  %2199 = vmatpush1.bf16.msra.mxu1 %v1158_v34  ;;  %v1230_v33 = vunpack.c.h.s8.bf16 %v926_v25  ;;  %v1237_v34 = vunpack.c.l.s8.bf16 %v933_v28  ;;  %v1294_v25 = vunpack.c.h.s8.bf16 %v958_v16 }
 0x307   : > { %2036 = vmatprep.subr.bf16.mxu0 %v1165_v35  ;;  %2200 = vmatprep.subr.bf16.mxu1 %v1167_v36  ;;  %v1239_v35 = vunpack.c.l.s8.bf16 %v935_v29  ;;  %v932_v36 = vld [vmem:[%s6835_s7 + $0x1a0] sm:$0xff] }
 0x308   : > { %v1236_v39 = vunpack.c.l.s8.bf16 %v932_v36  ;;  %v1244_v44 = vunpack.c.h.s8.bf16 %v932_v36 }
 0x30a   : > { %2037 = vmatpush1.bf16.msra.mxu0 %v1164_v37  ;;  %2201 = vmatpush1.bf16.msra.mxu1 %v1166_v41  ;;  %v1238_v37 = vunpack.c.l.s8.bf16 %v934_v38  ;;  %v1245_v41 = vunpack.c.h.s8.bf16 %v933_v28 }
 0x30b   : > { %2038 = vmatprep.subr.bf16.mxu0 %v1173_v5  ;;  %2202 = vmatprep.subr.bf16.mxu1 %v1175_v42  ;;  %v1247_v5 = vunpack.c.h.s8.bf16 %v935_v29  ;;  %v941_v42 = vld [vmem:[%s6835_s7 + $0x1e8] sm:$0xff] }
 0x30e   : > { %2039 = vmatpush1.bf16.msra.mxu0 %v1172_v46  ;;  %2203 = vmatpush1.bf16.msra.mxu1 %v1174_v47  ;;  %v1246_v46 = vunpack.c.h.s8.bf16 %v934_v38  ;;  %v1253_v47 = vunpack.c.l.s8.bf16 %v941_v42 }
 0x30f   : > { %2040 = vmatprep.subr.bf16.mxu0 %v1181_v48  ;;  %2204 = vmatprep.subr.bf16.mxu1 %v1183_v50  ;;  %v1255_v48 = vunpack.c.l.s8.bf16 %v943_v43  ;;  %v940_v50 = vld [vmem:[%s6835_s7 + $0x1e0] sm:$0xff] }
 0x310   : > { %v1252_v52 = vunpack.c.l.s8.bf16 %v940_v50  ;;  %v1260_v55 = vunpack.c.h.s8.bf16 %v940_v50 }
 0x312   : > { %2041 = vmatpush1.bf16.msra.mxu0 %v1180_v57  ;;  %2205 = vmatpush1.bf16.msra.mxu1 %v1182_v54  ;;  %v1254_v57 = vunpack.c.l.s8.bf16 %v942_v51  ;;  %v1261_v54 = vunpack.c.h.s8.bf16 %v941_v42 }
 0x313   : > { %2042 = vmatprep.subr.bf16.mxu0 %v1189_v56  ;;  %2206 = vmatprep.subr.bf16.mxu1 %v1191_v58  ;;  %v1263_v56 = vunpack.c.h.s8.bf16 %v943_v43  ;;  %v949_v58 = vld [vmem:[%s6835_s7 + $0x228] sm:$0xff] }
 0x316   : > { %2043 = vmatpush1.bf16.msra.mxu0 %v1188_v62  ;;  %2207 = vmatpush1.bf16.msra.mxu1 %v1190_v63  ;;  %v1262_v62 = vunpack.c.h.s8.bf16 %v942_v51  ;;  %v1269_v63 = vunpack.c.l.s8.bf16 %v949_v58 }
 0x317   : > { %2044 = vmatprep.subr.bf16.mxu0 %v1197_v0  ;;  %2208 = vmatprep.subr.bf16.mxu1 %v1199_v1  ;;  %v1271_v0 = vunpack.c.l.s8.bf16 %v951_v59  ;;  %v948_v1 = vld [vmem:[%s6835_s7 + $0x220] sm:$0xff] }
 0x318   : > { %v1268_v4 = vunpack.c.l.s8.bf16 %v948_v1  ;;  %v1276_v11 = vunpack.c.h.s8.bf16 %v948_v1 }
 0x31a   : > { %2045 = vmatpush1.bf16.msra.mxu0 %v1196_v6  ;;  %2209 = vmatpush1.bf16.msra.mxu1 %v1198_v7  ;;  %v1270_v6 = vunpack.c.l.s8.bf16 %v950_v3  ;;  %v1277_v7 = vunpack.c.h.s8.bf16 %v949_v58 }
 0x31b   : > { %2046 = vmatprep.subr.bf16.mxu0 %v1205_v8  ;;  %2210 = vmatprep.subr.bf16.mxu1 %v1207_v9  ;;  %v1279_v8 = vunpack.c.h.s8.bf16 %v951_v59  ;;  %v957_v9 = vld [vmem:[%s6835_s7 + $0x268] sm:$0xff] }
 0x31e   : > { %2047 = vmatpush1.bf16.msra.mxu0 %v1204_v12  ;;  %2211 = vmatpush1.bf16.msra.mxu1 %v1206_v13  ;;  %v1278_v12 = vunpack.c.h.s8.bf16 %v950_v3  ;;  %v1285_v13 = vunpack.c.l.s8.bf16 %v957_v9 }
 0x31f   : > { %2048 = vmatprep.subr.bf16.mxu0 %v1213_v14  ;;  %2212 = vmatprep.subr.bf16.mxu1 %v1215_v15  ;;  %v1287_v14 = vunpack.c.l.s8.bf16 %v959_v61  ;;  %v956_v15 = vld [vmem:[%s6835_s7 + $0x260] sm:$0xff] }
 0x320   : > { %v1284_v17 = vunpack.c.l.s8.bf16 %v956_v15  ;;  %v1292_v23 = vunpack.c.h.s8.bf16 %v956_v15 }
 0x322   : > { %2049 = vmatpush1.bf16.msra.mxu0 %v1212_v18  ;;  %2213 = vmatpush1.bf16.msra.mxu1 %v1214_v20  ;;  %v1293_v18 = vunpack.c.h.s8.bf16 %v957_v9  ;;  %v1295_v20 = vunpack.c.h.s8.bf16 %v959_v61 }
 0x323   : > { %2050 = vmatprep.subr.bf16.mxu0 %v1221_v21  ;;  %2214 = vmatprep.subr.bf16.mxu1 %v1223_v22  ;;  %v965_v21 = vld [vmem:[%s6835_s7 + $0x2a8] sm:$0xff]  ;;  %v967_v22 = vld [vmem:[%s6835_s7 + $0x2b8] sm:$0xff] }
 0x324   : > { %v1309_v29 = vunpack.c.h.s8.bf16 %v965_v21 }
 0x326   : > { %2051 = vmatpush1.bf16.msra.mxu0 %v1220_v26  ;;  %2215 = vmatpush1.bf16.msra.mxu1 %v1222_v24  ;;  %v1303_v26 = vunpack.c.l.s8.bf16 %v967_v22  ;;  %v964_v24 = vld [vmem:[%s6835_s7 + $0x2a0] sm:$0xff] }
 0x327   : > { %2052 = vmatprep.subr.bf16.mxu0 %v1229_v30  ;;  %2216 = vmatprep.subr.bf16.mxu1 %v1231_v27  ;;  %v966_v30 = vld [vmem:[%s6835_s7 + $0x2b0] sm:$0xff]  ;;  %v1300_v27 = vunpack.c.l.s8.bf16 %v964_v24 }
 0x328   : > { %v1302_v28 = vunpack.c.l.s8.bf16 %v966_v30  ;;  %v1310_v36 = vunpack.c.h.s8.bf16 %v966_v30 }
 0x32a   : > { %2053 = vmatpush1.bf16.msra.mxu0 %v1228_v31  ;;  %2217 = vmatpush1.bf16.msra.mxu1 %v1230_v33  ;;  %v1311_v31 = vunpack.c.h.s8.bf16 %v967_v22  ;;  %v973_v33 = vld [vmem:[%s6835_s7 + $0x2e8] sm:$0xff] }
 0x32b   : > { %2054 = vmatprep.subr.bf16.mxu0 %v1237_v34  ;;  %2218 = vmatprep.subr.bf16.mxu1 %v1239_v35  ;;  %v975_v34 = vld [vmem:[%s6835_s7 + $0x2f8] sm:$0xff]  ;;  %v1308_v35 = vunpack.c.h.s8.bf16 %v964_v24  ;;  %v1317_v38 = vunpack.c.l.s8.bf16 %v973_v33  ;;  %v1325_v43 = vunpack.c.h.s8.bf16 %v973_v33 }
 0x32e   : > { %2055 = vmatpush1.bf16.msra.mxu0 %v1236_v39  ;;  %2219 = vmatpush1.bf16.msra.mxu1 %v1238_v37  ;;  %v1319_v39 = vunpack.c.l.s8.bf16 %v975_v34  ;;  %v972_v37 = vld [vmem:[%s6835_s7 + $0x2e0] sm:$0xff] }
 0x32f   : > { %2056 = vmatprep.subr.bf16.mxu0 %v1245_v41  ;;  %2220 = vmatprep.subr.bf16.mxu1 %v1247_v5  ;;  %v974_v41 = vld [vmem:[%s6835_s7 + $0x2f0] sm:$0xff]  ;;  %v1316_v5 = vunpack.c.l.s8.bf16 %v972_v37 }
 0x330   : > { %v1318_v42 = vunpack.c.l.s8.bf16 %v974_v41  ;;  %v1326_v50 = vunpack.c.h.s8.bf16 %v974_v41 }
 0x332   : > { %2057 = vmatpush1.bf16.msra.mxu0 %v1244_v44  ;;  %2221 = vmatpush1.bf16.msra.mxu1 %v1246_v46  ;;  %v1327_v44 = vunpack.c.h.s8.bf16 %v975_v34  ;;  %v981_v46 = vld [vmem:[%s6835_s7 + $0x328] sm:$0xff] }
 0x333   : > { %2058 = vmatprep.subr.bf16.mxu0 %v1253_v47  ;;  %2222 = vmatprep.subr.bf16.mxu1 %v1255_v48  ;;  %v983_v47 = vld [vmem:[%s6835_s7 + $0x338] sm:$0xff]  ;;  %v1324_v48 = vunpack.c.h.s8.bf16 %v972_v37  ;;  %v1333_v51 = vunpack.c.l.s8.bf16 %v981_v46  ;;  %v1341_v59 = vunpack.c.h.s8.bf16 %v981_v46 }
 0x336   : > { %2059 = vmatpush1.bf16.msra.mxu0 %v1252_v52  ;;  %2223 = vmatpush1.bf16.msra.mxu1 %v1254_v57  ;;  %v1335_v52 = vunpack.c.l.s8.bf16 %v983_v47  ;;  %v980_v57 = vld [vmem:[%s6835_s7 + $0x320] sm:$0xff] }
 0x337   : > { %2060 = vmatprep.subr.bf16.mxu0 %v1261_v54  ;;  %2224 = vmatprep.subr.bf16.mxu1 %v1263_v56  ;;  %v982_v54 = vld [vmem:[%s6835_s7 + $0x330] sm:$0xff]  ;;  %v1332_v56 = vunpack.c.l.s8.bf16 %v980_v57 }
 0x338   : > { %v1334_v58 = vunpack.c.l.s8.bf16 %v982_v54  ;;  %v1342_v1 = vunpack.c.h.s8.bf16 %v982_v54 }
 0x33a   : > { %2061 = vmatpush1.bf16.msra.mxu0 %v1260_v55  ;;  %2225 = vmatpush1.bf16.msra.mxu1 %v1262_v62  ;;  %v1343_v55 = vunpack.c.h.s8.bf16 %v983_v47  ;;  %v989_v62 = vld [vmem:[%s6835_s7 + $0x368] sm:$0xff] }
 0x33b   : > { %2071 = vmatprep.subr.bf16.mxu0 %v1269_v63  ;;  %2235 = vmatprep.subr.bf16.mxu1 %v1271_v0  ;;  %v991_v63 = vld [vmem:[%s6835_s7 + $0x378] sm:$0xff]  ;;  %v1340_v0 = vunpack.c.h.s8.bf16 %v980_v57  ;;  %v1349_v3 = vunpack.c.l.s8.bf16 %v989_v62  ;;  %v1357_v61 = vunpack.c.h.s8.bf16 %v989_v62 }
 0x33d   : > { %2063 = vmatmul.mubr.bf16.vlgmr.msra.gmra.mrb[4].mxu0 %v6938_v2  ;;  %2227 = vmatmul.mubr.bf16.vlgmr.msra.gmra.mrb[4].mxu1 %v6938_v2  ;;  %v1286_v2 = vunpack.c.l.s8.bf16 %v958_v16 }
 0x33e   : > { %2072 = vmatpush1.bf16.msra.mxu0 %v1268_v4  ;;  %2236 = vmatpush1.bf16.msra.mxu1 %v1270_v6  ;;  %v1351_v4 = vunpack.c.l.s8.bf16 %v991_v63  ;;  %v988_v6 = vld [vmem:[%s6835_s7 + $0x360] sm:$0xff] }
 0x33f   : > { %2073 = vmatprep.subr.bf16.mxu0 %v1277_v7  ;;  %2237 = vmatprep.subr.bf16.mxu1 %v1279_v8  ;;  %v990_v7 = vld [vmem:[%s6835_s7 + $0x370] sm:$0xff]  ;;  %v1348_v8 = vunpack.c.l.s8.bf16 %v988_v6 }
 0x340   : > { %2103 = vmatprep.mubr.bf16.mxu0 %v6942_v10  ;;  %2267 = vmatprep.mubr.bf16.mxu1 %v6942_v10  ;;  %v1301_v10 = vunpack.c.l.s8.bf16 %v965_v21  ;;  %v1350_v9 = vunpack.c.l.s8.bf16 %v990_v7  ;;  %v1358_v15 = vunpack.c.h.s8.bf16 %v990_v7  ;;  %v1028_v7 = vld [vmem:[%s6835_s7 + $0x4a0] sm:$0xff] }
 0x342   : > { %2074 = vmatpush1.bf16.msra.mxu0 %v1276_v11  ;;  %2238 = vmatpush1.bf16.msra.mxu1 %v1278_v12  ;;  %v1359_v11 = vunpack.c.h.s8.bf16 %v991_v63  ;;  %v997_v12 = vld [vmem:[%s6835_s7 + $0x3a8] sm:$0xff] }
 0x343   : > { %2075 = vmatprep.subr.bf16.mxu0 %v1285_v13  ;;  %2239 = vmatprep.subr.bf16.mxu1 %v1287_v14  ;;  %v999_v13 = vld [vmem:[%s6835_s7 + $0x3b8] sm:$0xff]  ;;  %v1356_v14 = vunpack.c.h.s8.bf16 %v988_v6  ;;  %v1365_v16 = vunpack.c.l.s8.bf16 %v997_v12  ;;  %v1373_v22 = vunpack.c.h.s8.bf16 %v997_v12 }
 0x346   : > { %2076 = vmatpush1.bf16.msra.mxu0 %v1284_v17  ;;  %2240 = vmatpush1.bf16.msra.mxu1 %v1286_v2  ;;  %v1367_v17 = vunpack.c.l.s8.bf16 %v999_v13  ;;  %v996_v2 = vld [vmem:[%s6835_s7 + $0x3a0] sm:$0xff] }
 0x347   : > { %2077 = vmatprep.subr.bf16.mxu0 %v1293_v18  ;;  %2241 = vmatprep.subr.bf16.mxu1 %v1295_v20  ;;  %v998_v18 = vld [vmem:[%s6835_s7 + $0x3b0] sm:$0xff]  ;;  %v1364_v20 = vunpack.c.l.s8.bf16 %v996_v2 }
 0x348   : > { %v1366_v21 = vunpack.c.l.s8.bf16 %v998_v18  ;;  %v1374_v24 = vunpack.c.h.s8.bf16 %v998_v18  ;;  %v1036_v18 = vld [vmem:[%s6835_s7 + $0x4e0] sm:$0xff] }
 0x34a   : > { %2078 = vmatpush1.bf16.msra.mxu0 %v1292_v23  ;;  %2242 = vmatpush1.bf16.msra.mxu1 %v1294_v25  ;;  %v1375_v23 = vunpack.c.h.s8.bf16 %v999_v13  ;;  %v1005_v25 = vld [vmem:[%s6835_s7 + $0x3e8] sm:$0xff] }
 0x34b   : > { %2079 = vmatprep.subr.bf16.mxu0 %v1301_v10  ;;  %2243 = vmatprep.subr.bf16.mxu1 %v1303_v26  ;;  %v1007_v10 = vld [vmem:[%s6835_s7 + $0x3f8] sm:$0xff]  ;;  %v1372_v26 = vunpack.c.h.s8.bf16 %v996_v2  ;;  %v1381_v30 = vunpack.c.l.s8.bf16 %v1005_v25  ;;  %v1389_v34 = vunpack.c.h.s8.bf16 %v1005_v25  ;;  %v1037_v13 = vld [vmem:[%s6835_s7 + $0x4e8] sm:$0xff] }
 0x34e   : > { %2080 = vmatpush1.bf16.msra.mxu0 %v1300_v27  ;;  %2244 = vmatpush1.bf16.msra.mxu1 %v1302_v28  ;;  %v1383_v27 = vunpack.c.l.s8.bf16 %v1007_v10  ;;  %v1004_v28 = vld [vmem:[%s6835_s7 + $0x3e0] sm:$0xff] }
 0x34f   : > { %2081 = vmatprep.subr.bf16.mxu0 %v1309_v29  ;;  %2245 = vmatprep.subr.bf16.mxu1 %v1311_v31  ;;  %v1006_v29 = vld [vmem:[%s6835_s7 + $0x3f0] sm:$0xff]  ;;  %v1380_v31 = vunpack.c.l.s8.bf16 %v1004_v28 }
 0x350   : > { %v1382_v33 = vunpack.c.l.s8.bf16 %v1006_v29  ;;  %v1390_v37 = vunpack.c.h.s8.bf16 %v1006_v29  ;;  %v1044_v29 = vld [vmem:[%s6835_s7 + $0x520] sm:$0xff] }
 0x352   : > { %2082 = vmatpush1.bf16.msra.mxu0 %v1308_v35  ;;  %2246 = vmatpush1.bf16.msra.mxu1 %v1310_v36  ;;  %v1391_v35 = vunpack.c.h.s8.bf16 %v1007_v10  ;;  %v1013_v36 = vld [vmem:[%s6835_s7 + $0x428] sm:$0xff] }
 0x353   : > { %2083 = vmatprep.subr.bf16.mxu0 %v1317_v38  ;;  %2247 = vmatprep.subr.bf16.mxu1 %v1319_v39  ;;  %v1015_v38 = vld [vmem:[%s6835_s7 + $0x438] sm:$0xff]  ;;  %v1388_v39 = vunpack.c.h.s8.bf16 %v1004_v28  ;;  %v1397_v41 = vunpack.c.l.s8.bf16 %v1013_v36  ;;  %v1405_v47 = vunpack.c.h.s8.bf16 %v1013_v36  ;;  %v1045_v10 = vld [vmem:[%s6835_s7 + $0x528] sm:$0xff] }
 0x356   : > { %2084 = vmatpush1.bf16.msra.mxu0 %v1316_v5  ;;  %2248 = vmatpush1.bf16.msra.mxu1 %v1318_v42  ;;  %v1399_v5 = vunpack.c.l.s8.bf16 %v1015_v38  ;;  %v1012_v42 = vld [vmem:[%s6835_s7 + $0x420] sm:$0xff] }
 0x357   : > { %2085 = vmatprep.subr.bf16.mxu0 %v1325_v43  ;;  %2249 = vmatprep.subr.bf16.mxu1 %v1327_v44  ;;  %v1014_v43 = vld [vmem:[%s6835_s7 + $0x430] sm:$0xff]  ;;  %v1396_v44 = vunpack.c.l.s8.bf16 %v1012_v42 }
 0x358   : > { %v1398_v46 = vunpack.c.l.s8.bf16 %v1014_v43  ;;  %v1406_v57 = vunpack.c.h.s8.bf16 %v1014_v43  ;;  %v1052_v43 = vld [vmem:[%s6835_s7 + $0x560] sm:$0xff] }
 0x35a   : > { %2086 = vmatpush1.bf16.msra.mxu0 %v1324_v48  ;;  %2250 = vmatpush1.bf16.msra.mxu1 %v1326_v50  ;;  %v1407_v48 = vunpack.c.h.s8.bf16 %v1015_v38  ;;  %v1021_v50 = vld [vmem:[%s6835_s7 + $0x468] sm:$0xff] }
 0x35b   : > { %2087 = vmatprep.subr.bf16.mxu0 %v1333_v51  ;;  %2251 = vmatprep.subr.bf16.mxu1 %v1335_v52  ;;  %v1023_v51 = vld [vmem:[%s6835_s7 + $0x478] sm:$0xff]  ;;  %v1404_v52 = vunpack.c.h.s8.bf16 %v1012_v42  ;;  %v1413_v54 = vunpack.c.l.s8.bf16 %v1021_v50  ;;  %v1421_v62 = vunpack.c.h.s8.bf16 %v1021_v50  ;;  %v1053_v38 = vld [vmem:[%s6835_s7 + $0x568] sm:$0xff] }
 0x35c   : > { %v1423_v63 = vunpack.c.h.s8.bf16 %v1023_v51 }
 0x35e   : > { %2088 = vmatpush1.bf16.msra.mxu0 %v1332_v56  ;;  %2252 = vmatpush1.bf16.msra.mxu1 %v1334_v58  ;;  %v1415_v56 = vunpack.c.l.s8.bf16 %v1023_v51  ;;  %v1020_v58 = vld [vmem:[%s6835_s7 + $0x460] sm:$0xff]  ;;  %v1061_v51 = vld [vmem:[%s6835_s7 + $0x5a8] sm:$0xff] }
 0x35f   : > { %2089 = vmatprep.subr.bf16.mxu0 %v1341_v59  ;;  %2253 = vmatprep.subr.bf16.mxu1 %v1343_v55  ;;  %v1022_v59 = vld [vmem:[%s6835_s7 + $0x470] sm:$0xff]  ;;  %v1412_v55 = vunpack.c.l.s8.bf16 %v1020_v58 }
 0x362   : > { %2090 = vmatpush1.bf16.msra.mxu0 %v1340_v0  ;;  %2254 = vmatpush1.bf16.msra.mxu1 %v1342_v1  ;;  %v1029_v0 = vld [vmem:[%s6835_s7 + $0x4a8] sm:$0xff]  ;;  %v1031_v1 = vld [vmem:[%s6835_s7 + $0x4b8] sm:$0xff] }
 0x363   : > { %2091 = vmatprep.subr.bf16.mxu0 %v1349_v3  ;;  %2255 = vmatprep.subr.bf16.mxu1 %v1351_v4  ;;  %v1420_v3 = vunpack.c.h.s8.bf16 %v1020_v58  ;;  %v1422_v4 = vunpack.c.h.s8.bf16 %v1022_v59  ;;  %v1431_v6 = vunpack.c.l.s8.bf16 %v1031_v1  ;;  %v1439_v12 = vunpack.c.h.s8.bf16 %v1031_v1  ;;  %v1069_v1 = vld [vmem:[%s6835_s7 + $0x5e8] sm:$0xff] }
 0x366   : > { %2092 = vmatpush1.bf16.msra.mxu0 %v1348_v8  ;;  %2256 = vmatpush1.bf16.msra.mxu1 %v1350_v9  ;;  %v1030_v8 = vld [vmem:[%s6835_s7 + $0x4b0] sm:$0xff]  ;;  %v1428_v9 = vunpack.c.l.s8.bf16 %v1028_v7 }
 0x367   : > { %2093 = vmatprep.subr.bf16.mxu0 %v1357_v61  ;;  %2257 = vmatprep.subr.bf16.mxu1 %v1359_v11  ;;  %v1430_v61 = vunpack.c.l.s8.bf16 %v1030_v8  ;;  %v1437_v11 = vunpack.c.h.s8.bf16 %v1029_v0 }
 0x36a   : > { %2094 = vmatpush1.bf16.msra.mxu0 %v1356_v14  ;;  %2258 = vmatpush1.bf16.msra.mxu1 %v1358_v15  ;;  %v1039_v14 = vld [vmem:[%s6835_s7 + $0x4f8] sm:$0xff]  ;;  %v1436_v15 = vunpack.c.h.s8.bf16 %v1028_v7 }
 0x36b   : > { %2095 = vmatprep.subr.bf16.mxu0 %v1365_v16  ;;  %2259 = vmatprep.subr.bf16.mxu1 %v1367_v17  ;;  %v1438_v16 = vunpack.c.h.s8.bf16 %v1030_v8  ;;  %v1445_v17 = vunpack.c.l.s8.bf16 %v1037_v13  ;;  %v1447_v2 = vunpack.c.l.s8.bf16 %v1039_v14  ;;  %v1455_v25 = vunpack.c.h.s8.bf16 %v1039_v14  ;;  %v1068_v8 = vld [vmem:[%s6835_s7 + $0x5e0] sm:$0xff]  ;;  %v1077_v14 = vld [vmem:[%s6835_s7 + $0x628] sm:$0xff] }
 0x36e   : > { %2096 = vmatpush1.bf16.msra.mxu0 %v1364_v20  ;;  %2260 = vmatpush1.bf16.msra.mxu1 %v1366_v21  ;;  %v1038_v20 = vld [vmem:[%s6835_s7 + $0x4f0] sm:$0xff]  ;;  %v1444_v21 = vunpack.c.l.s8.bf16 %v1036_v18 }
 0x36f   : > { %2097 = vmatprep.subr.bf16.mxu0 %v1373_v22  ;;  %2261 = vmatprep.subr.bf16.mxu1 %v1375_v23  ;;  %v1446_v22 = vunpack.c.l.s8.bf16 %v1038_v20  ;;  %v1453_v23 = vunpack.c.h.s8.bf16 %v1037_v13 }
 0x372   : > { %2098 = vmatpush1.bf16.msra.mxu0 %v1372_v26  ;;  %2262 = vmatpush1.bf16.msra.mxu1 %v1374_v24  ;;  %v1047_v26 = vld [vmem:[%s6835_s7 + $0x538] sm:$0xff]  ;;  %v1452_v24 = vunpack.c.h.s8.bf16 %v1036_v18 }
 0x373   : > { %2099 = vmatprep.subr.bf16.mxu0 %v1381_v30  ;;  %2263 = vmatprep.subr.bf16.mxu1 %v1383_v27  ;;  %v1454_v30 = vunpack.c.h.s8.bf16 %v1038_v20  ;;  %v1461_v27 = vunpack.c.l.s8.bf16 %v1045_v10  ;;  %v1463_v28 = vunpack.c.l.s8.bf16 %v1047_v26  ;;  %v1471_v36 = vunpack.c.h.s8.bf16 %v1047_v26  ;;  %v1076_v20 = vld [vmem:[%s6835_s7 + $0x620] sm:$0xff]  ;;  %v1085_v26 = vld [vmem:[%s6835_s7 + $0x668] sm:$0xff] }
 0x376   : > { %2100 = vmatpush1.bf16.msra.mxu0 %v1380_v31  ;;  %2264 = vmatpush1.bf16.msra.mxu1 %v1382_v33  ;;  %v1046_v31 = vld [vmem:[%s6835_s7 + $0x530] sm:$0xff]  ;;  %v1460_v33 = vunpack.c.l.s8.bf16 %v1044_v29 }
 0x377   : > { %2101 = vmatprep.subr.bf16.mxu0 %v1389_v34  ;;  %2265 = vmatprep.subr.bf16.mxu1 %v1391_v35  ;;  %v1462_v34 = vunpack.c.l.s8.bf16 %v1046_v31  ;;  %v1469_v35 = vunpack.c.h.s8.bf16 %v1045_v10 }
 0x37a   : > { %2102 = vmatpush1.bf16.msra.mxu0 %v1388_v39  ;;  %2266 = vmatpush1.bf16.msra.mxu1 %v1390_v37  ;;  %v1055_v39 = vld [vmem:[%s6835_s7 + $0x578] sm:$0xff]  ;;  %v1468_v37 = vunpack.c.h.s8.bf16 %v1044_v29 }
 0x37b   : > { %2112 = vmatprep.subr.bf16.mxu0 %v1397_v41  ;;  %2276 = vmatprep.subr.bf16.mxu1 %v1399_v5  ;;  %v1470_v41 = vunpack.c.h.s8.bf16 %v1046_v31  ;;  %v1477_v5 = vunpack.c.l.s8.bf16 %v1053_v38  ;;  %v1479_v42 = vunpack.c.l.s8.bf16 %v1055_v39  ;;  %v1487_v50 = vunpack.c.h.s8.bf16 %v1055_v39  ;;  %v1084_v31 = vld [vmem:[%s6835_s7 + $0x660] sm:$0xff]  ;;  %v1095_v39 = vld [vmem:[%s6835_s7 + $0x6b8] sm:$0xff] }
 0x37d   : > { %2104 = vmatmul.mubr.bf16.vlgmr.msra.gmra.mrb[4].mxu0 %v6988_v45  ;;  %2268 = vmatmul.mubr.bf16.vlgmr.msra.gmra.mrb[4].mxu1 %v6988_v45  ;;  %v1414_v45 = vunpack.c.l.s8.bf16 %v1022_v59  ;;  %v1060_v59 = vld [vmem:[%s6835_s7 + $0x5a0] sm:$0xff] }
 0x37e   : > { %2113 = vmatpush1.bf16.msra.mxu0 %v1396_v44  ;;  %2277 = vmatpush1.bf16.msra.mxu1 %v1398_v46  ;;  %v1054_v44 = vld [vmem:[%s6835_s7 + $0x570] sm:$0xff]  ;;  %v1476_v46 = vunpack.c.l.s8.bf16 %v1052_v43 }
 0x37f   : > { %2114 = vmatprep.subr.bf16.mxu0 %v1405_v47  ;;  %2278 = vmatprep.subr.bf16.mxu1 %v1407_v48  ;;  %v1478_v47 = vunpack.c.l.s8.bf16 %v1054_v44  ;;  %v1485_v48 = vunpack.c.h.s8.bf16 %v1053_v38  ;;  %v1093_v38 = vld [vmem:[%s6835_s7 + $0x6a8] sm:$0xff] }
 0x380   : > { %2144 = vmatprep.mubr.bf16.mxu0 %v6992_v53  ;;  %2308 = vmatprep.mubr.bf16.mxu1 %v6992_v53  ;;  %v1429_v53 = vunpack.c.l.s8.bf16 %v1029_v0 }
 0x382   : > { %2115 = vmatpush1.bf16.msra.mxu0 %v1404_v52  ;;  %2279 = vmatpush1.bf16.msra.mxu1 %v1406_v57  ;;  %v1063_v52 = vld [vmem:[%s6835_s7 + $0x5b8] sm:$0xff]  ;;  %v1484_v57 = vunpack.c.h.s8.bf16 %v1052_v43  ;;  %v7207_v43 = vsub.s32 2, %v6888_v49 }
 0x383   : > { %2116 = vmatprep.subr.bf16.mxu0 %v1413_v54  ;;  %2280 = vmatprep.subr.bf16.mxu1 %v1415_v56  ;;  %v1486_v54 = vunpack.c.h.s8.bf16 %v1054_v44  ;;  %v1493_v56 = vunpack.c.l.s8.bf16 %v1061_v51  ;;  %v1495_v58 = vunpack.c.l.s8.bf16 %v1063_v52  ;;  %v1503_v0 = vunpack.c.h.s8.bf16 %v1063_v52 }
 0x384   : > { %v7210_v44 = vsub.s32 6, %v6888_v49  ;;  %v7218_v52 = vsub.s32 5, %v6888_v49 }
 0x386   : > { %2117 = vmatpush1.bf16.msra.mxu0 %v1412_v55  ;;  %2281 = vmatpush1.bf16.msra.mxu1 %v1414_v45  ;;  %v1062_v55 = vld [vmem:[%s6835_s7 + $0x5b0] sm:$0xff]  ;;  %v1492_v45 = vunpack.c.l.s8.bf16 %v1060_v59 }
 0x387   : > { %2118 = vmatprep.subr.bf16.mxu0 %v1421_v62  ;;  %2282 = vmatprep.subr.bf16.mxu1 %v1423_v63  ;;  %v1494_v62 = vunpack.c.l.s8.bf16 %v1062_v55  ;;  %v1501_v63 = vunpack.c.h.s8.bf16 %v1061_v51  ;;  %v7215_v51 = vsub.s32 1, %v6888_v49 }
 0x38a   : > { %2119 = vmatpush1.bf16.msra.mxu0 %v1420_v3  ;;  %2283 = vmatpush1.bf16.msra.mxu1 %v1422_v4  ;;  %v1071_v3 = vld [vmem:[%s6835_s7 + $0x5f8] sm:$0xff]  ;;  %v1500_v4 = vunpack.c.h.s8.bf16 %v1060_v59 }
 0x38b   : > { %2120 = vmatprep.subr.bf16.mxu0 %v1429_v53  ;;  %2284 = vmatprep.subr.bf16.mxu1 %v1431_v6  ;;  %v1502_v53 = vunpack.c.h.s8.bf16 %v1062_v55  ;;  %v1509_v6 = vunpack.c.l.s8.bf16 %v1069_v1  ;;  %v1511_v7 = vunpack.c.l.s8.bf16 %v1071_v3  ;;  %v1519_v13 = vunpack.c.h.s8.bf16 %v1071_v3 }
 0x38e   : > { %2121 = vmatpush1.bf16.msra.mxu0 %v1428_v9  ;;  %2285 = vmatpush1.bf16.msra.mxu1 %v1430_v61  ;;  %v1070_v9 = vld [vmem:[%s6835_s7 + $0x5f0] sm:$0xff]  ;;  %v1508_v61 = vunpack.c.l.s8.bf16 %v1068_v8 }
 0x38f   : > { %2122 = vmatprep.subr.bf16.mxu0 %v1437_v11  ;;  %2286 = vmatprep.subr.bf16.mxu1 %v1439_v12  ;;  %v1510_v11 = vunpack.c.l.s8.bf16 %v1070_v9  ;;  %v1517_v12 = vunpack.c.h.s8.bf16 %v1069_v1  ;;  %v1567_v1 = vunpack.c.h.s8.bf16 %v1095_v39 }
 0x392   : > { %2123 = vmatpush1.bf16.msra.mxu0 %v1436_v15  ;;  %2287 = vmatpush1.bf16.msra.mxu1 %v1438_v16  ;;  %v1079_v15 = vld [vmem:[%s6835_s7 + $0x638] sm:$0xff]  ;;  %v1516_v16 = vunpack.c.h.s8.bf16 %v1068_v8 }
 0x393   : > { %2124 = vmatprep.subr.bf16.mxu0 %v1445_v17  ;;  %2288 = vmatprep.subr.bf16.mxu1 %v1447_v2  ;;  %v1518_v17 = vunpack.c.h.s8.bf16 %v1070_v9  ;;  %v1525_v2 = vunpack.c.l.s8.bf16 %v1077_v14  ;;  %v1527_v18 = vunpack.c.l.s8.bf16 %v1079_v15  ;;  %v1535_v10 = vunpack.c.h.s8.bf16 %v1079_v15 }
 0x396   : > { %2125 = vmatpush1.bf16.msra.mxu0 %v1444_v21  ;;  %2289 = vmatpush1.bf16.msra.mxu1 %v1446_v22  ;;  %v1078_v21 = vld [vmem:[%s6835_s7 + $0x630] sm:$0xff]  ;;  %v1524_v22 = vunpack.c.l.s8.bf16 %v1076_v20 }
 0x397   : > { %2126 = vmatprep.subr.bf16.mxu0 %v1453_v23  ;;  %2290 = vmatprep.subr.bf16.mxu1 %v1455_v25  ;;  %v1526_v23 = vunpack.c.l.s8.bf16 %v1078_v21  ;;  %v1533_v25 = vunpack.c.h.s8.bf16 %v1077_v14 }
 0x39a   : > { %2127 = vmatpush1.bf16.msra.mxu0 %v1452_v24  ;;  %2291 = vmatpush1.bf16.msra.mxu1 %v1454_v30  ;;  %v1087_v24 = vld [vmem:[%s6835_s7 + $0x678] sm:$0xff]  ;;  %v1532_v30 = vunpack.c.h.s8.bf16 %v1076_v20 }
 0x39b   : > { %2128 = vmatprep.subr.bf16.mxu0 %v1461_v27  ;;  %2292 = vmatprep.subr.bf16.mxu1 %v1463_v28  ;;  %v1534_v27 = vunpack.c.h.s8.bf16 %v1078_v21  ;;  %v1541_v28 = vunpack.c.l.s8.bf16 %v1085_v26  ;;  %v1543_v29 = vunpack.c.l.s8.bf16 %v1087_v24 }
 0x39e   : > { %2129 = vmatpush1.bf16.msra.mxu0 %v1460_v33  ;;  %2293 = vmatpush1.bf16.msra.mxu1 %v1462_v34  ;;  %v1086_v33 = vld [vmem:[%s6835_s7 + $0x670] sm:$0xff] }
 0x39f   : > { %2130 = vmatprep.subr.bf16.mxu0 %v1469_v35  ;;  %2294 = vmatprep.subr.bf16.mxu1 %v1471_v36  ;;  %v1542_v34 = vunpack.c.l.s8.bf16 %v1086_v33  ;;  %v1549_v35 = vunpack.c.h.s8.bf16 %v1085_v26  ;;  %v1551_v36 = vunpack.c.h.s8.bf16 %v1087_v24 }
 0x3a2   : > { %2131 = vmatpush1.bf16.msra.mxu0 %v1468_v37  ;;  %2295 = vmatpush1.bf16.msra.mxu1 %v1470_v41  ;;  %v7200_v37 = vsub.s32 0, %v6888_v49  ;;  %v7203_v41 = vsub.s32 4, %v6888_v49 }
 0x3a3   : > { %2132 = vmatprep.subr.bf16.mxu0 %v1477_v5  ;;  %2296 = vmatprep.subr.bf16.mxu1 %v1479_v42  ;;  %v1550_v5 = vunpack.c.h.s8.bf16 %v1086_v33  ;;  %v1648_v42 = vld [vmem:[%s6863_s0] sm:$0xff] }
 0x3a6   : > { %2133 = vmatpush1.bf16.msra.mxu0 %v1476_v46  ;;  %2297 = vmatpush1.bf16.msra.mxu1 %v1478_v47  ;;  %v1557_v46 = vunpack.c.l.s8.bf16 %v1093_v38  ;;  %v1559_v47 = vunpack.c.l.s8.bf16 %v1095_v39 }
 0x3a7   : > { %2134 = vmatprep.subr.bf16.mxu0 %v1485_v48  ;;  %2298 = vmatprep.subr.bf16.mxu1 %v1487_v50  ;;  %v1092_v48 = vld [vmem:[%s6835_s7 + $0x6a0] sm:$0xff]  ;;  %v1094_v50 = vld [vmem:[%s6835_s7 + $0x6b0] sm:$0xff] }
 0x3a8   : > { %v1556_v59 = vunpack.c.l.s8.bf16 %v1092_v48  ;;  %v1558_v55 = vunpack.c.l.s8.bf16 %v1094_v50 }
 0x3aa   : > { %2135 = vmatpush1.bf16.msra.mxu0 %v1484_v57  ;;  %2299 = vmatpush1.bf16.msra.mxu1 %v1486_v54  ;;  %v7221_v57 = vsub.s32 3, %v6888_v49  ;;  %v7224_v54 = vsub.s32 7, %v6888_v49  ;;  %v2451_v49 = vrot.slane %v1648_v42, %v7218_v52 }
 0x3ab   : > { %2136 = vmatprep.subr.bf16.mxu0 %v1493_v56  ;;  %2300 = vmatprep.subr.bf16.mxu1 %v1495_v58  ;;  %v2363_v56 = vrot.slane %v1648_v42, %v7200_v37  ;;  %v2371_v58 = vrot.slane %v1648_v42, %v7203_v41 }
 0x3ac   : > { %v2447_v3 = vrot.slane %v1648_v42, %v7221_v57  ;;  %v2491_v14 = vrot.slane %v2451_v49, %v7215_v51 }
 0x3ad   : > { %v2411_v8 = vrot.slane %v2371_v58, %v7200_v37 }
 0x3ae   : > { %2137 = vmatpush1.bf16.msra.mxu0 %v1492_v45  ;;  %2301 = vmatpush1.bf16.msra.mxu1 %v1494_v62  ;;  %v2367_v45 = vrot.slane %v1648_v42, %v7207_v43  ;;  %v2375_v62 = vrot.slane %v1648_v42, %v7210_v44  ;;  %v2487_v21 = vrot.slane %v2447_v3, %v7215_v51 }
 0x3af   : > { %2138 = vmatprep.subr.bf16.mxu0 %v1501_v63  ;;  %2302 = vmatprep.subr.bf16.mxu1 %v1503_v0  ;;  %v2443_v63 = vrot.slane %v1648_v42, %v7215_v51  ;;  %v1565_v0 = vunpack.c.h.s8.bf16 %v1093_v38 }
 0x3b0   : > { %v2407_v9 = vrot.slane %v2367_v45, %v7200_v37  ;;  %v1108_v45 = vld [vmem:[%s6835_s7 + $0x720] sm:$0xff] }
 0x3b1   : > { %v1588_v3 = vunpack.c.l.s8.bf16 %v1108_v45 }
 0x3b2   : > { %2139 = vmatpush1.bf16.msra.mxu0 %v1500_v4  ;;  %2303 = vmatpush1.bf16.msra.mxu1 %v1502_v53  ;;  %v2455_v4 = vrot.slane %v1648_v42, %v7224_v54  ;;  %v1101_v53 = vld [vmem:[%s6835_s7 + $0x6e8] sm:$0xff]  ;;  %v1111_v42 = vld [vmem:[%s6835_s7 + $0x738] sm:$0xff] }
 0x3b3   : > { %2140 = vmatprep.subr.bf16.mxu0 %v1509_v6  ;;  %2304 = vmatprep.subr.bf16.mxu1 %v1511_v7  ;;  %v1103_v6 = vld [vmem:[%s6835_s7 + $0x6f8] sm:$0xff]  ;;  %v2403_v7 = vrot.slane %v2363_v56, %v7200_v37  ;;  %v1573_v15 = vunpack.c.l.s8.bf16 %v1101_v53 }
 0x3b4   : > { %v1583_v38 = vunpack.c.h.s8.bf16 %v1103_v6 }
 0x3b6   : > { %2141 = vmatpush1.bf16.msra.mxu0 %v1508_v61  ;;  %2305 = vmatpush1.bf16.msra.mxu1 %v1510_v11  ;;  %v2415_v61 = vrot.slane %v2375_v62, %v7200_v37  ;;  %v1564_v11 = vunpack.c.h.s8.bf16 %v1092_v48  ;;  %v1110_v62 = vld [vmem:[%s6835_s7 + $0x730] sm:$0xff] }
 0x3b7   : > { %2142 = vmatprep.subr.bf16.mxu0 %v1517_v12  ;;  %2306 = vmatprep.subr.bf16.mxu1 %v1519_v13  ;;  %v1566_v12 = vunpack.c.h.s8.bf16 %v1094_v50  ;;  %v2483_v13 = vrot.slane %v2443_v63, %v7215_v51 }
 0x3ba   : > { %2143 = vmatpush1.bf16.msra.mxu0 %v1516_v16  ;;  %2307 = vmatpush1.bf16.msra.mxu1 %v1518_v17  ;;  %v1575_v16 = vunpack.c.l.s8.bf16 %v1103_v6  ;;  %v1100_v17 = vld [vmem:[%s6835_s7 + $0x6e0] sm:$0xff]  ;;  %v1599_v6 = vunpack.c.h.s8.bf16 %v1111_v42 }
 0x3bb   : > { %2153 = vmatprep.subr.bf16.mxu0 %v1525_v2  ;;  %2317 = vmatprep.subr.bf16.mxu1 %v1527_v18  ;;  %v1102_v2 = vld [vmem:[%s6835_s7 + $0x6f0] sm:$0xff]  ;;  %v1580_v56 = vunpack.c.h.s8.bf16 %v1100_v17 }
 0x3bc   : > { %v1582_v58 = vunpack.c.h.s8.bf16 %v1102_v2 }
 0x3bd   : > { %2145 = vmatmul.mubr.bf16.vlgmr.msra.gmra.mrb[4].mxu0 %v7037_v32  ;;  %2309 = vmatmul.mubr.bf16.vlgmr.msra.gmra.mrb[4].mxu1 %v7037_v32  ;;  %v1540_v32 = vunpack.c.l.s8.bf16 %v1084_v31 }
 0x3be   : > { %2154 = vmatpush1.bf16.msra.mxu0 %v1524_v22  ;;  %2318 = vmatpush1.bf16.msra.mxu1 %v1526_v23  ;;  %v2495_v22 = vrot.slane %v2455_v4, %v7215_v51  ;;  %v1590_v4 = vunpack.c.l.s8.bf16 %v1110_v62 }
 0x3bf   : > { %2155 = vmatprep.subr.bf16.mxu0 %v1533_v25  ;;  %2319 = vmatprep.subr.bf16.mxu1 %v1535_v10 }
 0x3c0   : > { %2185 = vmatprep.mubr.bf16.mxu0 %v7041_v40  ;;  %2349 = vmatprep.mubr.bf16.mxu1 %v7041_v40  ;;  %v1548_v40 = vunpack.c.h.s8.bf16 %v1084_v31  ;;  %v1574_v31 = vunpack.c.l.s8.bf16 %v1102_v2 }
 0x3c2   : > { %2156 = vmatpush1.bf16.msra.mxu0 %v1532_v30  ;;  %2320 = vmatpush1.bf16.msra.mxu1 %v1534_v27 }
 0x3c3   : > { %2157 = vmatprep.subr.bf16.mxu0 %v1541_v28  ;;  %2321 = vmatprep.subr.bf16.mxu1 %v1543_v29  ;;  %v1572_v29 = vunpack.c.l.s8.bf16 %v1100_v17 }
 0x3c6   : > { %2158 = vmatpush1.bf16.msra.mxu0 %v1540_v32  ;;  %2322 = vmatpush1.bf16.msra.mxu1 %v1542_v34 }
 0x3c7   : > { %2159 = vmatprep.subr.bf16.mxu0 %v1549_v35  ;;  %2323 = vmatprep.subr.bf16.mxu1 %v1551_v36  ;;  %v1581_v36 = vunpack.c.h.s8.bf16 %v1101_v53 }
 0x3ca   : > { %2160 = vmatpush1.bf16.msra.mxu0 %v1548_v40  ;;  %2324 = vmatpush1.bf16.msra.mxu1 %v1550_v5  ;;  %v1109_v5 = vld [vmem:[%s6835_s7 + $0x728] sm:$0xff] }
 0x3cb   : > { %2161 = vmatprep.subr.bf16.mxu0 %v1557_v46  ;;  %2325 = vmatprep.subr.bf16.mxu1 %v1559_v47  ;;  %v1597_v53 = vunpack.c.h.s8.bf16 %v1109_v5 }
 0x3ce   : > { %2162 = vmatpush1.bf16.msra.mxu0 %v1556_v59  ;;  %2326 = vmatpush1.bf16.msra.mxu1 %v1558_v55  ;;  %v1589_v59 = vunpack.c.l.s8.bf16 %v1109_v5  ;;  %v1591_v55 = vunpack.c.l.s8.bf16 %v1111_v42 }
 0x3cf   : > { %2163 = vmatprep.subr.bf16.mxu0 %v1565_v0  ;;  %2327 = vmatprep.subr.bf16.mxu1 %v1567_v1 }
 0x3d0   : > { %v1859_v18 = vpop.f32.mrb[0].mxu0  ;;  %v2023_v20 = vpop.f32.mrb[0].mxu1 }
 0x3d1   : > { %v2432_v23 = vmul.f32 %v2403_v7, %v1859_v18  ;;  %v2434_v25 = vmul.f32 %v2411_v8, %v2023_v20  ;;  %v1861_v10 = vpop.f32.mrb[1].mxu0  ;;  %v2025_v26 = vpop.f32.mrb[1].mxu1  ;;  %v1117_v8 = vld [vmem:[%s6835_s7 + $0x768] sm:$0xff] }
 0x3d2   : > { %v2433_v24 = vmul.f32 %v2407_v9, %v1861_v10  ;;  %v2435_v30 = vmul.f32 %v2415_v61, %v2025_v26  ;;  %v1863_v27 = vpop.f32.mrb[2].mxu0  ;;  %v2027_v28 = vpop.f32.mrb[2].mxu1  ;;  %2164 = vmatpush1.bf16.msra.mxu0 %v1564_v11  ;;  %2328 = vmatpush1.bf16.msra.mxu1 %v1566_v12  ;;  %v1119_v9 = vld [vmem:[%s6835_s7 + $0x778] sm:$0xff]  ;;  %v1596_v61 = vunpack.c.h.s8.bf16 %v1108_v45  ;;  %v1598_v11 = vunpack.c.h.s8.bf16 %v1110_v62  ;;  %v1125_v20 = vld [vmem:[%s6835_s7 + $0x7a8] sm:$0xff]  ;;  %v1124_v26 = vld [vmem:[%s6835_s7 + $0x7a0] sm:$0xff] }
 0x3d3   : > { %v2512_v33 = vadd.f32 %v2483_v13, %v2432_v23  ;;  %v2514_v32 = vadd.f32 %v2491_v14, %v2434_v25  ;;  %v1864_v34 = vpop.f32.mrb[3].mxu0  ;;  %v2028_v35 = vpop.f32.mrb[3].mxu1  ;;  %2165 = vmatprep.subr.bf16.mxu0 %v1573_v15  ;;  %2329 = vmatprep.subr.bf16.mxu1 %v1575_v16  ;;  %v1605_v12 = vunpack.c.l.s8.bf16 %v1117_v8  ;;  %v1607_v13 = vunpack.c.l.s8.bf16 %v1119_v9  ;;  %v1116_v14 = vld [vmem:[%s6835_s7 + $0x760] sm:$0xff]  ;;  %v1118_v15 = vld [vmem:[%s6835_s7 + $0x770] sm:$0xff] }
 0x3d4   : > { %v2513_v39 = vadd.f32 %v2487_v21, %v2433_v24  ;;  %v2515_v40 = vadd.f32 %v2495_v22, %v2435_v30  ;;  %v1604_v16 = vunpack.c.l.s8.bf16 %v1116_v14  ;;  %v1606_v17 = vunpack.c.l.s8.bf16 %v1118_v15  ;;  %v1127_v21 = vld [vmem:[%s6835_s7 + $0x7b8] sm:$0xff]  ;;  %v1126_v24 = vld [vmem:[%s6835_s7 + $0x7b0] sm:$0xff] }
 0x3d5   : > { %v2520_v46 = vmax.f32 %v2512_v33, 0.0  ;;  %v2522_v47 = vmax.f32 %v2514_v32, 0.0  ;;  %v1613_v2 = vunpack.c.h.s8.bf16 %v1117_v8  ;;  %v1615_v18 = vunpack.c.h.s8.bf16 %v1119_v9  ;;  %v1135_v33 = vld [vmem:[%s6835_s7 + $0x7f8] sm:$0xff] }
 0x3d6   : > { %v2521_v48 = vmax.f32 %v2513_v39, 0.0  ;;  %v2523_v50 = vmax.f32 %v2515_v40, 0.0  ;;  %2166 = vmatpush1.bf16.msra.mxu0 %v1572_v29  ;;  %2330 = vmatpush1.bf16.msra.mxu1 %v1574_v31  ;;  %v1612_v22 = vunpack.c.h.s8.bf16 %v1116_v14  ;;  %v1614_v23 = vunpack.c.h.s8.bf16 %v1118_v15  ;;  %v1133_v31 = vld [vmem:[%s6835_s7 + $0x7e8] sm:$0xff]  ;;  %v1134_v39 = vld [vmem:[%s6835_s7 + $0x7f0] sm:$0xff]  ;;  %v6080_v40 = vld [vmem:[#allocation2] sm:$0xff] }
 0x3d7   : > { %2167 = vmatprep.subr.bf16.mxu0 %v1581_v36  ;;  %2331 = vmatprep.subr.bf16.mxu1 %v1583_v38  ;;  %v1621_v25 = vunpack.c.l.s8.bf16 %v1125_v20  ;;  %v1623_v10 = vunpack.c.l.s8.bf16 %v1127_v21  ;;  %v1620_v30 = vunpack.c.l.s8.bf16 %v1124_v26  ;;  %v1622_v27 = vunpack.c.l.s8.bf16 %v1126_v24  ;;  %v1132_v38 = vld [vmem:[%s6835_s7 + $0x7e0] sm:$0xff]  ;;  %v5423_v8 = vld [vmem:[%s6835_s7 + $0x858] sm:$0xff]  ;;  %v5422_v14 = vld [vmem:[%s6835_s7 + $0x850] sm:$0xff] }
 0x3d8   : > { %v2536_v63 = vcombine.low %v2520_v46, %v2521_v48  ;;  %v2537_v49 = vcombine.low %v2522_v47, %v2523_v50  ;;  %v1629_v28 = vunpack.c.h.s8.bf16 %v1125_v20  ;;  %v1631_v29 = vunpack.c.h.s8.bf16 %v1127_v21  ;;  %v5413_v50 = vld [vmem:[%s6835_s7 + $0x808] sm:$0xff] }
 0x3d9   : > { %v1628_v32 = vunpack.c.h.s8.bf16 %v1124_v26  ;;  %v1630_v34 = vunpack.c.h.s8.bf16 %v1126_v24  ;;  %v1637_v35 = vunpack.c.l.s8.bf16 %v1133_v31  ;;  %v1639_v36 = vunpack.c.l.s8.bf16 %v1135_v33 }
 0x3da   : > { %v2544_v0 = vrot.slane %v2536_v63, %v6897_v60  ;;  %v2551_v1 = vrot.slane %v2537_v49, %v6897_v60  ;;  %2168 = vmatpush1.bf16.msra.mxu0 %v1580_v56  ;;  %2332 = vmatpush1.bf16.msra.mxu1 %v1582_v58  ;;  %v1636_v42 = vunpack.c.l.s8.bf16 %v1132_v38  ;;  %v1638_v46 = vunpack.c.l.s8.bf16 %v1134_v39  ;;  %v5415_v56 = vld [vmem:[%s6835_s7 + $0x818] sm:$0xff]  ;;  %v5412_v63 = vld [vmem:[%s6835_s7 + $0x800] sm:$0xff] }
 0x3db   : > { %2169 = vmatprep.subr.bf16.mxu0 %v1589_v59  ;;  %2333 = vmatprep.subr.bf16.mxu1 %v1591_v55  ;;  %v1645_v47 = vunpack.c.h.s8.bf16 %v1133_v31  ;;  %v1647_v48 = vunpack.c.h.s8.bf16 %v1135_v33  ;;  %v1644_v59 = vunpack.c.h.s8.bf16 %v1132_v38  ;;  %v1646_v55 = vunpack.c.h.s8.bf16 %v1134_v39 }
 0x3dc   : > { %v2552_v7 = vcombine.low %v2544_v0, %v2551_v1  ;;  %v2832_v45 = vunpack.c.l.s8.bf16 %v5413_v50  ;;  %v2834_v62 = vunpack.c.l.s8.bf16 %v5415_v56  ;;  %v5414_v0 = vld [vmem:[%s6835_s7 + $0x810] sm:$0xff]  ;;  %v2831_v1 = vunpack.c.l.s8.bf16 %v5412_v63 }
 0x3dd   : > { %v2839_v9 = vunpack.c.h.s8.bf16 %v5412_v63  ;;  %v2849_v15 = vunpack.c.l.s8.bf16 %v5422_v14  ;;  %v2857_v21 = vunpack.c.h.s8.bf16 %v5422_v14 }
 0x3de   : > { %2170 = vmatpush1.bf16.msra.mxu0 %v1588_v3  ;;  %2334 = vmatpush1.bf16.msra.mxu1 %v1590_v4  ;;  %v7264_v5 = vadd.f32 %v6080_v40, %v2552_v7  ;;  %v2833_v3 = vunpack.c.l.s8.bf16 %v5414_v0  ;;  %v5421_v7 = vld [vmem:[%s6835_s7 + $0x848] sm:$0xff] }
 0x3df   : > { %2171 = vmatprep.subr.bf16.mxu0 %v1597_v53  ;;  %2335 = vmatprep.subr.bf16.mxu1 %v1599_v6  ;;  %v2840_v53 = vunpack.c.h.s8.bf16 %v5413_v50  ;;  %v2842_v6 = vunpack.c.h.s8.bf16 %v5415_v56 }
 0x3e0   : > { %v7270_v58 = vrot.slane %v7264_v5, %v6897_v60 }
 0x3e2   : > { %2172 = vmatpush1.bf16.msra.mxu0 %v1596_v61  ;;  %2336 = vmatpush1.bf16.msra.mxu1 %v1598_v11  ;;  %v3363_v49 = vcombine.high %v7270_v58, %v7270_v58  ;;  %v2841_v61 = vunpack.c.h.s8.bf16 %v5414_v0  ;;  %v2848_v11 = vunpack.c.l.s8.bf16 %v5421_v7 }
 0x3e3   : > { %2173 = vmatprep.subr.bf16.mxu0 %v1605_v12  ;;  %2337 = vmatprep.subr.bf16.mxu1 %v1607_v13  ;;  %v5420_v12 = vld [vmem:[%s6835_s7 + $0x840] sm:$0xff]  ;;  %v2850_v13 = vunpack.c.l.s8.bf16 %v5423_v8 }
 0x3e4   : > { %v7276_v4 = vpack.c.bf16 %v3363_v49, %v3363_v49  ;;  %v2855_v20 = vunpack.c.h.s8.bf16 %v5420_v12 }
 0x3e6   : > { %2174 = vmatpush1.bf16.msra.mxu0 %v1604_v16  ;;  %2338 = vmatpush1.bf16.msra.mxu1 %v1606_v17  ;;  %v2856_v16 = vunpack.c.h.s8.bf16 %v5421_v7  ;;  %v2858_v17 = vunpack.c.h.s8.bf16 %v5423_v8  ;;  %v5452_v8 = vld [vmem:[%s6835_s7 + $0x940] sm:$0xff] }
 0x3e7   : > { %2175 = vmatprep.subr.bf16.mxu0 %v1613_v2  ;;  %2339 = vmatprep.subr.bf16.mxu1 %v1615_v18  ;;  %v5429_v2 = vld [vmem:[%s6835_s7 + $0x888] sm:$0xff]  ;;  %v5431_v18 = vld [vmem:[%s6835_s7 + $0x898] sm:$0xff] }
 0x3ea   : > { %2176 = vmatpush1.bf16.msra.mxu0 %v1612_v22  ;;  %2340 = vmatpush1.bf16.msra.mxu1 %v1614_v23  ;;  %v2864_v22 = vunpack.c.l.s8.bf16 %v5429_v2  ;;  %v5428_v23 = vld [vmem:[%s6835_s7 + $0x880] sm:$0xff] }
 0x3eb   : > { %2177 = vmatprep.subr.bf16.mxu0 %v1621_v25  ;;  %2341 = vmatprep.subr.bf16.mxu1 %v1623_v10  ;;  %v2866_v25 = vunpack.c.l.s8.bf16 %v5431_v18  ;;  %v5430_v10 = vld [vmem:[%s6835_s7 + $0x890] sm:$0xff]  ;;  %v2863_v26 = vunpack.c.l.s8.bf16 %v5428_v23  ;;  %v2871_v31 = vunpack.c.h.s8.bf16 %v5428_v23 }
 0x3ec   : > { %v2865_v24 = vunpack.c.l.s8.bf16 %v5430_v10  ;;  %v2873_v33 = vunpack.c.h.s8.bf16 %v5430_v10 }
 0x3ee   : > { %2178 = vmatpush1.bf16.msra.mxu0 %v1620_v30  ;;  %2342 = vmatpush1.bf16.msra.mxu1 %v1622_v27  ;;  %v2872_v30 = vunpack.c.h.s8.bf16 %v5429_v2  ;;  %v2874_v27 = vunpack.c.h.s8.bf16 %v5431_v18  ;;  %v5460_v18 = vld [vmem:[%s6835_s7 + $0x980] sm:$0xff] }
 0x3ef   : > { %2179 = vmatprep.subr.bf16.mxu0 %v1629_v28  ;;  %2343 = vmatprep.subr.bf16.mxu1 %v1631_v29  ;;  %v5437_v28 = vld [vmem:[%s6835_s7 + $0x8c8] sm:$0xff]  ;;  %v5439_v29 = vld [vmem:[%s6835_s7 + $0x8d8] sm:$0xff] }
 0x3f0   : > { %v2888_v40 = vunpack.c.h.s8.bf16 %v5437_v28 }
 0x3f2   : > { %2180 = vmatpush1.bf16.msra.mxu0 %v1628_v32  ;;  %2344 = vmatpush1.bf16.msra.mxu1 %v1630_v34  ;;  %v2880_v32 = vunpack.c.l.s8.bf16 %v5437_v28  ;;  %v5436_v34 = vld [vmem:[%s6835_s7 + $0x8c0] sm:$0xff] }
 0x3f3   : > { %2181 = vmatprep.subr.bf16.mxu0 %v1637_v35  ;;  %2345 = vmatprep.subr.bf16.mxu1 %v1639_v36  ;;  %v2882_v35 = vunpack.c.l.s8.bf16 %v5439_v29  ;;  %v5438_v36 = vld [vmem:[%s6835_s7 + $0x8d0] sm:$0xff]  ;;  %v2879_v38 = vunpack.c.l.s8.bf16 %v5436_v34 }
 0x3f4   : > { %v2881_v39 = vunpack.c.l.s8.bf16 %v5438_v36  ;;  %v2889_v50 = vunpack.c.h.s8.bf16 %v5438_v36 }
 0x3f6   : > { %2182 = vmatpush1.bf16.msra.mxu0 %v1636_v42  ;;  %2346 = vmatpush1.bf16.msra.mxu1 %v1638_v46  ;;  %v2890_v42 = vunpack.c.h.s8.bf16 %v5439_v29  ;;  %v5445_v46 = vld [vmem:[%s6835_s7 + $0x908] sm:$0xff]  ;;  %v5468_v29 = vld [vmem:[%s6835_s7 + $0x9c0] sm:$0xff] }
 0x3f7   : > { %2183 = vmatprep.subr.bf16.mxu0 %v1645_v47  ;;  %2347 = vmatprep.subr.bf16.mxu1 %v1647_v48  ;;  %v5447_v47 = vld [vmem:[%s6835_s7 + $0x918] sm:$0xff]  ;;  %v2887_v48 = vunpack.c.h.s8.bf16 %v5436_v34  ;;  %v2896_v56 = vunpack.c.l.s8.bf16 %v5445_v46  ;;  %v2904_v49 = vunpack.c.h.s8.bf16 %v5445_v46  ;;  %v2943_v34 = vunpack.c.l.s8.bf16 %v5468_v29 }
 0x3f8   : > { %v2906_v0 = vunpack.c.h.s8.bf16 %v5447_v47  ;;  %v2951_v46 = vunpack.c.h.s8.bf16 %v5468_v29  ;;  %v5500_v29 = vld [vmem:[%s6835_s7 + $0xac0] sm:$0xff] }
 0x3fa   : > { %2184 = vmatpush1.bf16.msra.mxu0 %v1644_v59  ;;  %2348 = vmatpush1.bf16.msra.mxu1 %v1646_v55  ;;  %v5444_v59 = vld [vmem:[%s6835_s7 + $0x900] sm:$0xff]  ;;  %v2898_v55 = vunpack.c.l.s8.bf16 %v5447_v47 }
 0x3fb   : > { %3398 = vmatprep.subr.bf16.mxu0 %v2832_v45  ;;  %3562 = vmatprep.subr.bf16.mxu1 %v2834_v62  ;;  %v5446_v45 = vld [vmem:[%s6835_s7 + $0x910] sm:$0xff]  ;;  %v2895_v62 = vunpack.c.l.s8.bf16 %v5444_v59 }
 0x3fc   : > { %v2897_v63 = vunpack.c.l.s8.bf16 %v5446_v45 }
 0x3fd   : > { %2186 = vmatmul.mubr.bf16.vlgmr.msra.gmra.mrb[4].mxu0 %v7079_v19  ;;  %2350 = vmatmul.mubr.bf16.vlgmr.msra.gmra.mrb[4].mxu1 %v7079_v19  ;;  %v2847_v19 = vunpack.c.l.s8.bf16 %v5420_v12 }
 0x3fe   : > { %3399 = vmatpush1.bf16.msra.mxu0 %v2831_v1  ;;  %3430 = vmatprep.mubr.bf16.mxu0 %v7276_v4  ;;  %v5453_v1 = vld [vmem:[%s6835_s7 + $0x948] sm:$0xff] }
 0x3ff   : > { %3563 = vmatpush1.bf16.msra.mxu1 %v2833_v3  ;;  %3594 = vmatprep.mubr.bf16.mxu1 %v7276_v4  ;;  %v5455_v3 = vld [vmem:[%s6835_s7 + $0x958] sm:$0xff]  ;;  %v2912_v7 = vunpack.c.l.s8.bf16 %v5453_v1 }
 0x400   : > { %3400 = vmatprep.subr.bf16.mxu0 %v2840_v53  ;;  %3564 = vmatprep.subr.bf16.mxu1 %v2842_v6  ;;  %v2903_v53 = vunpack.c.h.s8.bf16 %v5444_v59  ;;  %v2905_v6 = vunpack.c.h.s8.bf16 %v5446_v45  ;;  %v2922_v14 = vunpack.c.h.s8.bf16 %v5455_v3  ;;  %v5478_v59 = vld [vmem:[%s6835_s7 + $0xa10] sm:$0xff] }
 0x402   : > { %3401 = vmatpush1.bf16.msra.mxu0 %v2839_v9  ;;  %v2914_v9 = vunpack.c.l.s8.bf16 %v5455_v3 }
 0x403   : > { %3565 = vmatpush1.bf16.msra.mxu1 %v2841_v61  ;;  %3402 = vmatprep.subr.bf16.mxu0 %v2848_v11  ;;  %v5454_v61 = vld [vmem:[%s6835_s7 + $0x950] sm:$0xff]  ;;  %v2911_v11 = vunpack.c.l.s8.bf16 %v5452_v8 }
 0x404   : > { %3566 = vmatprep.subr.bf16.mxu1 %v2850_v13  ;;  %v2913_v12 = vunpack.c.l.s8.bf16 %v5454_v61  ;;  %v2920_v13 = vunpack.c.h.s8.bf16 %v5453_v1 }
 0x406   : > { %3403 = vmatpush1.bf16.msra.mxu0 %v2847_v19  ;;  %v5461_v19 = vld [vmem:[%s6835_s7 + $0x988] sm:$0xff] }
 0x407   : > { %3567 = vmatpush1.bf16.msra.mxu1 %v2849_v15  ;;  %3404 = vmatprep.subr.bf16.mxu0 %v2856_v16  ;;  %v5463_v15 = vld [vmem:[%s6835_s7 + $0x998] sm:$0xff]  ;;  %v2919_v16 = vunpack.c.h.s8.bf16 %v5452_v8  ;;  %v2928_v2 = vunpack.c.l.s8.bf16 %v5461_v19  ;;  %v5484_v8 = vld [vmem:[%s6835_s7 + $0xa40] sm:$0xff] }
 0x408   : > { %3568 = vmatprep.subr.bf16.mxu1 %v2858_v17  ;;  %v2921_v17 = vunpack.c.h.s8.bf16 %v5454_v61  ;;  %v2938_v10 = vunpack.c.h.s8.bf16 %v5463_v15  ;;  %v5486_v61 = vld [vmem:[%s6835_s7 + $0xa50] sm:$0xff] }
 0x40a   : > { %3405 = vmatpush1.bf16.msra.mxu0 %v2855_v20  ;;  %v2930_v20 = vunpack.c.l.s8.bf16 %v5463_v15  ;;  %v5495_v15 = vld [vmem:[%s6835_s7 + $0xa98] sm:$0xff] }
 0x40b   : > { %3569 = vmatpush1.bf16.msra.mxu1 %v2857_v21  ;;  %3406 = vmatprep.subr.bf16.mxu0 %v2864_v22  ;;  %v5462_v21 = vld [vmem:[%s6835_s7 + $0x990] sm:$0xff]  ;;  %v2927_v22 = vunpack.c.l.s8.bf16 %v5460_v18 }
 0x40c   : > { %3570 = vmatprep.subr.bf16.mxu1 %v2866_v25  ;;  %v2929_v23 = vunpack.c.l.s8.bf16 %v5462_v21  ;;  %v2936_v25 = vunpack.c.h.s8.bf16 %v5461_v19  ;;  %v5493_v19 = vld [vmem:[%s6835_s7 + $0xa88] sm:$0xff] }
 0x40e   : > { %3407 = vmatpush1.bf16.msra.mxu0 %v2863_v26  ;;  %v5469_v26 = vld [vmem:[%s6835_s7 + $0x9c8] sm:$0xff] }
 0x40f   : > { %3571 = vmatpush1.bf16.msra.mxu1 %v2865_v24  ;;  %3408 = vmatprep.subr.bf16.mxu0 %v2872_v30  ;;  %v5471_v24 = vld [vmem:[%s6835_s7 + $0x9d8] sm:$0xff]  ;;  %v2935_v30 = vunpack.c.h.s8.bf16 %v5460_v18  ;;  %v2944_v28 = vunpack.c.l.s8.bf16 %v5469_v26  ;;  %v2952_v36 = vunpack.c.h.s8.bf16 %v5469_v26  ;;  %v5492_v18 = vld [vmem:[%s6835_s7 + $0xa80] sm:$0xff]  ;;  %v5501_v26 = vld [vmem:[%s6835_s7 + $0xac8] sm:$0xff] }
 0x410   : > { %3572 = vmatprep.subr.bf16.mxu1 %v2874_v27  ;;  %v2937_v27 = vunpack.c.h.s8.bf16 %v5462_v21  ;;  %v5494_v21 = vld [vmem:[%s6835_s7 + $0xa90] sm:$0xff] }
 0x412   : > { %3409 = vmatpush1.bf16.msra.mxu0 %v2871_v31  ;;  %v2946_v31 = vunpack.c.l.s8.bf16 %v5471_v24 }
 0x413   : > { %3573 = vmatpush1.bf16.msra.mxu1 %v2873_v33  ;;  %3410 = vmatprep.subr.bf16.mxu0 %v2880_v32  ;;  %v5470_v33 = vld [vmem:[%s6835_s7 + $0x9d0] sm:$0xff]  ;;  %v3348_v32 = vcombine.high %v7264_v5, %v7264_v5 }
 0x414   : > { %3574 = vmatprep.subr.bf16.mxu1 %v2882_v35  ;;  %v2945_v35 = vunpack.c.l.s8.bf16 %v5470_v33  ;;  %v2953_v47 = vunpack.c.h.s8.bf16 %v5470_v33  ;;  %v5502_v33 = vld [vmem:[%s6835_s7 + $0xad0] sm:$0xff] }
 0x416   : > { %3411 = vmatpush1.bf16.msra.mxu0 %v2879_v38  ;;  %v2954_v38 = vunpack.c.h.s8.bf16 %v5471_v24  ;;  %v5503_v24 = vld [vmem:[%s6835_s7 + $0xad8] sm:$0xff] }
 0x417   : > { %3575 = vmatpush1.bf16.msra.mxu1 %v2881_v39  ;;  %3412 = vmatprep.subr.bf16.mxu0 %v2888_v40  ;;  %v5477_v39 = vld [vmem:[%s6835_s7 + $0xa08] sm:$0xff]  ;;  %v5479_v40 = vld [vmem:[%s6835_s7 + $0xa18] sm:$0xff] }
 0x418   : > { %3576 = vmatprep.subr.bf16.mxu1 %v2890_v42  ;;  %v7315_v42 = vrot.slane %v3348_v32, %v6897_v60  ;;  %v2970_v3 = vunpack.c.h.s8.bf16 %v5479_v40  ;;  %v3007_v32 = vunpack.c.l.s8.bf16 %v5500_v29 }
 0x41a   : > { %3413 = vmatpush1.bf16.msra.mxu0 %v2887_v48  ;;  %v2960_v48 = vunpack.c.l.s8.bf16 %v5477_v39 }
 0x41b   : > { %3577 = vmatpush1.bf16.msra.mxu1 %v2889_v50  ;;  %3414 = vmatprep.subr.bf16.mxu0 %v2896_v56  ;;  %v5476_v50 = vld [vmem:[%s6835_s7 + $0xa00] sm:$0xff]  ;;  %v2962_v56 = vunpack.c.l.s8.bf16 %v5479_v40  ;;  %v3015_v40 = vunpack.c.h.s8.bf16 %v5500_v29  ;;  %v5534_v29 = vld [vmem:[%s6835_s7 + $0xbd0] sm:$0xff] }
 0x41c   : > { %3578 = vmatprep.subr.bf16.mxu1 %v2898_v55  ;;  %v3364_v55 = vcombine.high %v7315_v42, %v7315_v42  ;;  %v2959_v45 = vunpack.c.l.s8.bf16 %v5476_v50 }
 0x41e   : > { %3415 = vmatpush1.bf16.msra.mxu0 %v2895_v62  ;;  %v7323_v62 = vpack.c.bf16 %v7270_v58, %v7270_v58  ;;  %v7327_v1 = vpack.c.bf16 %v3364_v55, %v3364_v55  ;;  %v2969_v58 = vunpack.c.h.s8.bf16 %v5478_v59 }
 0x41f   : > { %3579 = vmatpush1.bf16.msra.mxu1 %v2897_v63  ;;  %3416 = vmatprep.subr.bf16.mxu0 %v2904_v49  ;;  %v2961_v63 = vunpack.c.l.s8.bf16 %v5478_v59  ;;  %v2968_v49 = vunpack.c.h.s8.bf16 %v5477_v39  ;;  %v5511_v39 = vld [vmem:[%s6835_s7 + $0xb18] sm:$0xff] }
 0x420   : > { %3580 = vmatprep.subr.bf16.mxu1 %v2906_v0  ;;  %v5485_v0 = vld [vmem:[%s6835_s7 + $0xa48] sm:$0xff] }
 0x422   : > { %3417 = vmatpush1.bf16.msra.mxu0 %v2903_v53  ;;  %v5487_v53 = vld [vmem:[%s6835_s7 + $0xa58] sm:$0xff] }
 0x423   : > { %3581 = vmatpush1.bf16.msra.mxu1 %v2905_v6  ;;  %3418 = vmatprep.subr.bf16.mxu0 %v2912_v7  ;;  %v2967_v6 = vunpack.c.h.s8.bf16 %v5476_v50  ;;  %v2976_v7 = vunpack.c.l.s8.bf16 %v5485_v0  ;;  %v3026_v50 = vunpack.c.l.s8.bf16 %v5511_v39 }
 0x424   : > { %3582 = vmatprep.subr.bf16.mxu1 %v2914_v9  ;;  %v2978_v9 = vunpack.c.l.s8.bf16 %v5487_v53 }
 0x426   : > { %3419 = vmatpush1.bf16.msra.mxu0 %v2911_v11  ;;  %v2975_v11 = vunpack.c.l.s8.bf16 %v5484_v8 }
 0x427   : > { %3583 = vmatpush1.bf16.msra.mxu1 %v2913_v12  ;;  %3420 = vmatprep.subr.bf16.mxu0 %v2920_v13  ;;  %v2977_v12 = vunpack.c.l.s8.bf16 %v5486_v61  ;;  %v2984_v13 = vunpack.c.h.s8.bf16 %v5485_v0  ;;  %v5519_v0 = vld [vmem:[%s6835_s7 + $0xb58] sm:$0xff] }
 0x428   : > { %3584 = vmatprep.subr.bf16.mxu1 %v2922_v14  ;;  %v2986_v14 = vunpack.c.h.s8.bf16 %v5487_v53 }
 0x42a   : > { %3421 = vmatpush1.bf16.msra.mxu0 %v2919_v16  ;;  %v2983_v16 = vunpack.c.h.s8.bf16 %v5484_v8  ;;  %v5518_v8 = vld [vmem:[%s6835_s7 + $0xb50] sm:$0xff] }
 0x42b   : > { %3585 = vmatpush1.bf16.msra.mxu1 %v2921_v17  ;;  %3422 = vmatprep.subr.bf16.mxu0 %v2928_v2  ;;  %v2985_v17 = vunpack.c.h.s8.bf16 %v5486_v61  ;;  %v2992_v2 = vunpack.c.l.s8.bf16 %v5493_v19  ;;  %v3041_v61 = vunpack.c.l.s8.bf16 %v5518_v8 }
 0x42c   : > { %3586 = vmatprep.subr.bf16.mxu1 %v2930_v20  ;;  %v2994_v20 = vunpack.c.l.s8.bf16 %v5495_v15 }
 0x42e   : > { %3423 = vmatpush1.bf16.msra.mxu0 %v2927_v22  ;;  %v2991_v22 = vunpack.c.l.s8.bf16 %v5492_v18 }
 0x42f   : > { %3587 = vmatpush1.bf16.msra.mxu1 %v2929_v23  ;;  %3424 = vmatprep.subr.bf16.mxu0 %v2936_v25  ;;  %v2993_v23 = vunpack.c.l.s8.bf16 %v5494_v21  ;;  %v3000_v25 = vunpack.c.h.s8.bf16 %v5493_v19 }
 0x430   : > { %3588 = vmatprep.subr.bf16.mxu1 %v2938_v10  ;;  %v3002_v10 = vunpack.c.h.s8.bf16 %v5495_v15  ;;  %v3049_v15 = vunpack.c.h.s8.bf16 %v5518_v8 }
 0x432   : > { %3425 = vmatpush1.bf16.msra.mxu0 %v2935_v30  ;;  %v2999_v30 = vunpack.c.h.s8.bf16 %v5492_v18  ;;  %v5526_v18 = vld [vmem:[%s6835_s7 + $0xb90] sm:$0xff] }
 0x433   : > { %3589 = vmatpush1.bf16.msra.mxu1 %v2937_v27  ;;  %3426 = vmatprep.subr.bf16.mxu0 %v2944_v28  ;;  %v3001_v27 = vunpack.c.h.s8.bf16 %v5494_v21  ;;  %v3008_v28 = vunpack.c.l.s8.bf16 %v5501_v26  ;;  %v3057_v21 = vunpack.c.l.s8.bf16 %v5526_v18 }
 0x434   : > { %3590 = vmatprep.subr.bf16.mxu1 %v2946_v31  ;;  %v3010_v31 = vunpack.c.l.s8.bf16 %v5503_v24 }
 0x436   : > { %3427 = vmatpush1.bf16.msra.mxu0 %v2943_v34  ;;  %v3009_v34 = vunpack.c.l.s8.bf16 %v5502_v33 }
 0x437   : > { %3591 = vmatpush1.bf16.msra.mxu1 %v2945_v35  ;;  %3428 = vmatprep.subr.bf16.mxu0 %v2952_v36  ;;  %v3016_v35 = vunpack.c.h.s8.bf16 %v5501_v26  ;;  %v3018_v36 = vunpack.c.h.s8.bf16 %v5503_v24  ;;  %v3065_v24 = vunpack.c.h.s8.bf16 %v5526_v18 }
 0x438   : > { %3592 = vmatprep.subr.bf16.mxu1 %v2954_v38  ;;  %v5509_v38 = vld [vmem:[%s6835_s7 + $0xb08] sm:$0xff] }
 0x43a   : > { %3429 = vmatpush1.bf16.msra.mxu0 %v2951_v46  ;;  %v3017_v46 = vunpack.c.h.s8.bf16 %v5502_v33  ;;  %v3073_v33 = vunpack.c.l.s8.bf16 %v5534_v29 }
 0x43b   : > { %3593 = vmatpush1.bf16.msra.mxu1 %v2953_v47  ;;  %3439 = vmatprep.subr.bf16.mxu0 %v2960_v48  ;;  %v3024_v47 = vunpack.c.l.s8.bf16 %v5509_v38  ;;  %v5508_v48 = vld [vmem:[%s6835_s7 + $0xb00] sm:$0xff] }
 0x43c   : > { %3603 = vmatprep.subr.bf16.mxu1 %v2962_v56  ;;  %v5510_v56 = vld [vmem:[%s6835_s7 + $0xb10] sm:$0xff]  ;;  %v3023_v59 = vunpack.c.l.s8.bf16 %v5508_v48 }
 0x43d   : > { %3431 = vmatmul.mubr.bf16.vlgmr.msra.gmra.mrb[8].mxu0 %v7323_v62  ;;  %v3025_v55 = vunpack.c.l.s8.bf16 %v5510_v56  ;;  %v3033_v53 = vunpack.c.h.s8.bf16 %v5510_v56  ;;  %v7365_v56 = vpack.c.bf16 %v7315_v42, %v7315_v42 }
 0x43e   : > { %3595 = vmatmul.mubr.bf16.vlgmr.msra.gmra.mrb[8].mxu1 %v7323_v62  ;;  %3440 = vmatpush1.bf16.msra.mxu0 %v2959_v45  ;;  %v3032_v45 = vunpack.c.h.s8.bf16 %v5509_v38 }
 0x43f   : > { %3471 = vmatprep.mubr.bf16.mxu0 %v7327_v1  ;;  %3604 = vmatpush1.bf16.msra.mxu1 %v2961_v63  ;;  %v3034_v63 = vunpack.c.h.s8.bf16 %v5511_v39  ;;  %v3081_v39 = vunpack.c.h.s8.bf16 %v5534_v29 }
 0x440   : > { %3635 = vmatprep.mubr.bf16.mxu1 %v7327_v1  ;;  %3441 = vmatprep.subr.bf16.mxu0 %v2968_v49  ;;  %v5517_v49 = vld [vmem:[%s6835_s7 + $0xb48] sm:$0xff] }
 0x441   : > { %3605 = vmatprep.subr.bf16.mxu1 %v2970_v3  ;;  %v3031_v3 = vunpack.c.h.s8.bf16 %v5508_v48  ;;  %v5542_v48 = vld [vmem:[%s6835_s7 + $0xc10] sm:$0xff] }
 0x442   : > { %3442 = vmatpush1.bf16.msra.mxu0 %v2967_v6  ;;  %v3040_v6 = vunpack.c.l.s8.bf16 %v5517_v49  ;;  %v3097_v42 = vunpack.c.h.s8.bf16 %v5542_v48 }
 0x443   : > { %3606 = vmatpush1.bf16.msra.mxu1 %v2969_v58  ;;  %3443 = vmatprep.subr.bf16.mxu0 %v2976_v7  ;;  %v5516_v58 = vld [vmem:[%s6835_s7 + $0xb40] sm:$0xff]  ;;  %v3042_v7 = vunpack.c.l.s8.bf16 %v5519_v0 }
 0x444   : > { %3607 = vmatprep.subr.bf16.mxu1 %v2978_v9  ;;  %v3039_v9 = vunpack.c.l.s8.bf16 %v5516_v58  ;;  %v3047_v19 = vunpack.c.h.s8.bf16 %v5516_v58  ;;  %v5550_v58 = vld [vmem:[%s6835_s7 + $0xc50] sm:$0xff] }
 0x445   : > { %v3105_v8 = vunpack.c.l.s8.bf16 %v5550_v58 }
 0x446   : > { %3444 = vmatpush1.bf16.msra.mxu0 %v2975_v11  ;;  %v3048_v11 = vunpack.c.h.s8.bf16 %v5517_v49  ;;  %v5551_v49 = vld [vmem:[%s6835_s7 + $0xc58] sm:$0xff] }
 0x447   : > { %3608 = vmatpush1.bf16.msra.mxu1 %v2977_v12  ;;  %3445 = vmatprep.subr.bf16.mxu0 %v2984_v13  ;;  %v3050_v12 = vunpack.c.h.s8.bf16 %v5519_v0  ;;  %v5525_v13 = vld [vmem:[%s6835_s7 + $0xb88] sm:$0xff] }
 0x448   : > { %3609 = vmatprep.subr.bf16.mxu1 %v2986_v14  ;;  %v5527_v14 = vld [vmem:[%s6835_s7 + $0xb98] sm:$0xff] }
 0x44a   : > { %3446 = vmatpush1.bf16.msra.mxu0 %v2983_v16  ;;  %v3056_v16 = vunpack.c.l.s8.bf16 %v5525_v13 }
 0x44b   : > { %3610 = vmatpush1.bf16.msra.mxu1 %v2985_v17  ;;  %3447 = vmatprep.subr.bf16.mxu0 %v2992_v2  ;;  %v5524_v17 = vld [vmem:[%s6835_s7 + $0xb80] sm:$0xff]  ;;  %v3058_v2 = vunpack.c.l.s8.bf16 %v5527_v14 }
 0x44c   : > { %3611 = vmatprep.subr.bf16.mxu1 %v2994_v20  ;;  %v3055_v20 = vunpack.c.l.s8.bf16 %v5524_v17  ;;  %v3063_v26 = vunpack.c.h.s8.bf16 %v5524_v17  ;;  %v5558_v17 = vld [vmem:[%s6835_s7 + $0xc90] sm:$0xff] }
 0x44d   : > { %v3121_v18 = vunpack.c.l.s8.bf16 %v5558_v17 }
 0x44e   : > { %3448 = vmatpush1.bf16.msra.mxu0 %v2991_v22  ;;  %v3064_v22 = vunpack.c.h.s8.bf16 %v5525_v13 }
 0x44f   : > { %3612 = vmatpush1.bf16.msra.mxu1 %v2993_v23  ;;  %3449 = vmatprep.subr.bf16.mxu0 %v3000_v25  ;;  %v3066_v23 = vunpack.c.h.s8.bf16 %v5527_v14  ;;  %v5533_v25 = vld [vmem:[%s6835_s7 + $0xbc8] sm:$0xff]  ;;  %v3113_v14 = vunpack.c.h.s8.bf16 %v5550_v58 }
 0x450   : > { %3613 = vmatprep.subr.bf16.mxu1 %v3002_v10  ;;  %v5535_v10 = vld [vmem:[%s6835_s7 + $0xbd8] sm:$0xff] }
 0x452   : > { %3450 = vmatpush1.bf16.msra.mxu0 %v2999_v30  ;;  %v3072_v30 = vunpack.c.l.s8.bf16 %v5533_v25 }
 0x453   : > { %3614 = vmatpush1.bf16.msra.mxu1 %v3001_v27  ;;  %3451 = vmatprep.subr.bf16.mxu0 %v3008_v28  ;;  %v5532_v27 = vld [vmem:[%s6835_s7 + $0xbc0] sm:$0xff]  ;;  %v3074_v28 = vunpack.c.l.s8.bf16 %v5535_v10 }
 0x454   : > { %3615 = vmatprep.subr.bf16.mxu1 %v3010_v31  ;;  %v3071_v31 = vunpack.c.l.s8.bf16 %v5532_v27  ;;  %v3079_v38 = vunpack.c.h.s8.bf16 %v5532_v27  ;;  %v5566_v27 = vld [vmem:[%s6835_s7 + $0xcd0] sm:$0xff] }
 0x455   : > { %v3137_v29 = vunpack.c.l.s8.bf16 %v5566_v27 }
 0x456   : > { %3452 = vmatpush1.bf16.msra.mxu0 %v3007_v32  ;;  %v3080_v32 = vunpack.c.h.s8.bf16 %v5533_v25 }
 0x457   : > { %3616 = vmatpush1.bf16.msra.mxu1 %v3009_v34  ;;  %3453 = vmatprep.subr.bf16.mxu0 %v3016_v35  ;;  %v3082_v34 = vunpack.c.h.s8.bf16 %v5535_v10  ;;  %v5541_v35 = vld [vmem:[%s6835_s7 + $0xc08] sm:$0xff]  ;;  %v3129_v10 = vunpack.c.h.s8.bf16 %v5558_v17 }
 0x458   : > { %3617 = vmatprep.subr.bf16.mxu1 %v3018_v36  ;;  %v5543_v36 = vld [vmem:[%s6835_s7 + $0xc18] sm:$0xff] }
 0x45a   : > { %3454 = vmatpush1.bf16.msra.mxu0 %v3015_v40  ;;  %v3088_v40 = vunpack.c.l.s8.bf16 %v5541_v35 }
 0x45b   : > { %3618 = vmatpush1.bf16.msra.mxu1 %v3017_v46  ;;  %3455 = vmatprep.subr.bf16.mxu0 %v3024_v47  ;;  %v5540_v46 = vld [vmem:[%s6835_s7 + $0xc00] sm:$0xff]  ;;  %v3090_v47 = vunpack.c.l.s8.bf16 %v5543_v36 }
 0x45c   : > { %3619 = vmatprep.subr.bf16.mxu1 %v3026_v50  ;;  %v3087_v50 = vunpack.c.l.s8.bf16 %v5540_v46  ;;  %v3095_v0 = vunpack.c.h.s8.bf16 %v5540_v46  ;;  %v5574_v46 = vld [vmem:[%s6835_s7 + $0xd10] sm:$0xff] }
 0x45e   : > { %3456 = vmatpush1.bf16.msra.mxu0 %v3023_v59  ;;  %v3089_v59 = vunpack.c.l.s8.bf16 %v5542_v48  ;;  %v3153_v48 = vunpack.c.l.s8.bf16 %v5574_v46 }
 0x45f   : > { %3620 = vmatpush1.bf16.msra.mxu1 %v3025_v55  ;;  %3457 = vmatprep.subr.bf16.mxu0 %v3032_v45  ;;  %v3096_v55 = vunpack.c.h.s8.bf16 %v5541_v35  ;;  %v3098_v45 = vunpack.c.h.s8.bf16 %v5543_v36  ;;  %v3145_v36 = vunpack.c.h.s8.bf16 %v5566_v27 }
 0x460   : > { %3621 = vmatprep.subr.bf16.mxu1 %v3034_v63  ;;  %v5549_v63 = vld [vmem:[%s6835_s7 + $0xc48] sm:$0xff] }
 0x462   : > { %3458 = vmatpush1.bf16.msra.mxu0 %v3031_v3  ;;  %v3104_v3 = vunpack.c.l.s8.bf16 %v5549_v63 }
 0x463   : > { %3622 = vmatpush1.bf16.msra.mxu1 %v3033_v53  ;;  %3459 = vmatprep.subr.bf16.mxu0 %v3040_v6  ;;  %v5548_v53 = vld [vmem:[%s6835_s7 + $0xc40] sm:$0xff]  ;;  %v3106_v6 = vunpack.c.l.s8.bf16 %v5551_v49 }
 0x464   : > { %3623 = vmatprep.subr.bf16.mxu1 %v3042_v7  ;;  %v3103_v7 = vunpack.c.l.s8.bf16 %v5548_v53  ;;  %v3111_v13 = vunpack.c.h.s8.bf16 %v5548_v53  ;;  %v5582_v53 = vld [vmem:[%s6835_s7 + $0xd50] sm:$0xff] }
 0x465   : > { %v3169_v58 = vunpack.c.l.s8.bf16 %v5582_v53 }
 0x466   : > { %3460 = vmatpush1.bf16.msra.mxu0 %v3039_v9  ;;  %v3112_v9 = vunpack.c.h.s8.bf16 %v5549_v63 }
 0x467   : > { %3624 = vmatpush1.bf16.msra.mxu1 %v3041_v61  ;;  %3461 = vmatprep.subr.bf16.mxu0 %v3048_v11  ;;  %v3114_v61 = vunpack.c.h.s8.bf16 %v5551_v49  ;;  %v5557_v11 = vld [vmem:[%s6835_s7 + $0xc88] sm:$0xff]  ;;  %v3161_v49 = vunpack.c.h.s8.bf16 %v5574_v46 }
 0x468   : > { %3625 = vmatprep.subr.bf16.mxu1 %v3050_v12  ;;  %v5559_v12 = vld [vmem:[%s6835_s7 + $0xc98] sm:$0xff] }
 0x46a   : > { %3462 = vmatpush1.bf16.msra.mxu0 %v3047_v19  ;;  %v3120_v19 = vunpack.c.l.s8.bf16 %v5557_v11 }
 0x46b   : > { %3626 = vmatpush1.bf16.msra.mxu1 %v3049_v15  ;;  %3463 = vmatprep.subr.bf16.mxu0 %v3056_v16  ;;  %v5556_v15 = vld [vmem:[%s6835_s7 + $0xc80] sm:$0xff]  ;;  %v3122_v16 = vunpack.c.l.s8.bf16 %v5559_v12 }
 0x46c   : > { %3627 = vmatprep.subr.bf16.mxu1 %v3058_v2  ;;  %v3119_v2 = vunpack.c.l.s8.bf16 %v5556_v15  ;;  %v3127_v25 = vunpack.c.h.s8.bf16 %v5556_v15  ;;  %v5590_v15 = vld [vmem:[%s6835_s7 + $0xd90] sm:$0xff] }
 0x46d   : > { %v3185_v17 = vunpack.c.l.s8.bf16 %v5590_v15 }
 0x46e   : > { %3464 = vmatpush1.bf16.msra.mxu0 %v3055_v20  ;;  %v3128_v20 = vunpack.c.h.s8.bf16 %v5557_v11 }
 0x46f   : > { %3628 = vmatpush1.bf16.msra.mxu1 %v3057_v21  ;;  %3465 = vmatprep.subr.bf16.mxu0 %v3064_v22  ;;  %v3130_v21 = vunpack.c.h.s8.bf16 %v5559_v12  ;;  %v5565_v22 = vld [vmem:[%s6835_s7 + $0xcc8] sm:$0xff]  ;;  %v3177_v12 = vunpack.c.h.s8.bf16 %v5582_v53 }
 0x470   : > { %3629 = vmatprep.subr.bf16.mxu1 %v3066_v23  ;;  %v5567_v23 = vld [vmem:[%s6835_s7 + $0xcd8] sm:$0xff] }
 0x472   : > { %3466 = vmatpush1.bf16.msra.mxu0 %v3063_v26  ;;  %v3136_v26 = vunpack.c.l.s8.bf16 %v5565_v22 }
 0x473   : > { %3630 = vmatpush1.bf16.msra.mxu1 %v3065_v24  ;;  %3467 = vmatprep.subr.bf16.mxu0 %v3072_v30  ;;  %v5564_v24 = vld [vmem:[%s6835_s7 + $0xcc0] sm:$0xff]  ;;  %v3138_v30 = vunpack.c.l.s8.bf16 %v5567_v23 }
 0x474   : > { %3631 = vmatprep.subr.bf16.mxu1 %v3074_v28  ;;  %v3135_v28 = vunpack.c.l.s8.bf16 %v5564_v24  ;;  %v3143_v35 = vunpack.c.h.s8.bf16 %v5564_v24  ;;  %v5598_v24 = vld [vmem:[%s6835_s7 + $0xdd0] sm:$0xff] }
 0x475   : > { %v3201_v27 = vunpack.c.l.s8.bf16 %v5598_v24 }
 0x476   : > { %3468 = vmatpush1.bf16.msra.mxu0 %v3071_v31  ;;  %v3144_v31 = vunpack.c.h.s8.bf16 %v5565_v22 }
 0x477   : > { %3632 = vmatpush1.bf16.msra.mxu1 %v3073_v33  ;;  %3469 = vmatprep.subr.bf16.mxu0 %v3080_v32  ;;  %v3146_v33 = vunpack.c.h.s8.bf16 %v5567_v23  ;;  %v5573_v32 = vld [vmem:[%s6835_s7 + $0xd08] sm:$0xff]  ;;  %v3193_v23 = vunpack.c.h.s8.bf16 %v5590_v15 }
 0x478   : > { %3633 = vmatprep.subr.bf16.mxu1 %v3082_v34  ;;  %v5575_v34 = vld [vmem:[%s6835_s7 + $0xd18] sm:$0xff] }
 0x47a   : > { %3470 = vmatpush1.bf16.msra.mxu0 %v3079_v38  ;;  %v3152_v38 = vunpack.c.l.s8.bf16 %v5573_v32 }
 0x47b   : > { %3634 = vmatpush1.bf16.msra.mxu1 %v3081_v39  ;;  %3480 = vmatprep.subr.bf16.mxu0 %v3088_v40  ;;  %v5572_v39 = vld [vmem:[%s6835_s7 + $0xd00] sm:$0xff]  ;;  %v3154_v40 = vunpack.c.l.s8.bf16 %v5575_v34 }
 0x47c   : > { %3644 = vmatprep.subr.bf16.mxu1 %v3090_v47  ;;  %v3151_v47 = vunpack.c.l.s8.bf16 %v5572_v39  ;;  %v3159_v63 = vunpack.c.h.s8.bf16 %v5572_v39 }
 0x47d   : > { %3472 = vmatmul.mubr.bf16.vlgmr.msra.gmra.mrb[8].mxu0 %v7365_v56 }
 0x47e   : > { %3636 = vmatmul.mubr.bf16.vlgmr.msra.gmra.mrb[8].mxu1 %v7365_v56  ;;  %3481 = vmatpush1.bf16.msra.mxu0 %v3087_v50  ;;  %v3160_v50 = vunpack.c.h.s8.bf16 %v5573_v32 }
 0x47f   : > { %3645 = vmatpush1.bf16.msra.mxu1 %v3089_v59  ;;  %3482 = vmatprep.subr.bf16.mxu0 %v3096_v55  ;;  %v3162_v59 = vunpack.c.h.s8.bf16 %v5575_v34  ;;  %v5581_v55 = vld [vmem:[%s6835_s7 + $0xd48] sm:$0xff]  ;;  %v3209_v34 = vunpack.c.h.s8.bf16 %v5598_v24 }
 0x480   : > { %3646 = vmatprep.subr.bf16.mxu1 %v3098_v45  ;;  %v5583_v45 = vld [vmem:[%s6835_s7 + $0xd58] sm:$0xff] }
 0x482   : > { %3483 = vmatpush1.bf16.msra.mxu0 %v3095_v0  ;;  %v3168_v0 = vunpack.c.l.s8.bf16 %v5581_v55 }
 0x483   : > { %3647 = vmatpush1.bf16.msra.mxu1 %v3097_v42  ;;  %3484 = vmatprep.subr.bf16.mxu0 %v3104_v3  ;;  %v5580_v42 = vld [vmem:[%s6835_s7 + $0xd40] sm:$0xff]  ;;  %v3170_v3 = vunpack.c.l.s8.bf16 %v5583_v45 }
 0x484   : > { %3648 = vmatprep.subr.bf16.mxu1 %v3106_v6  ;;  %v3167_v6 = vunpack.c.l.s8.bf16 %v5580_v42  ;;  %v3175_v11 = vunpack.c.h.s8.bf16 %v5580_v42 }
 0x486   : > { %3485 = vmatpush1.bf16.msra.mxu0 %v3103_v7  ;;  %v3176_v7 = vunpack.c.h.s8.bf16 %v5581_v55 }
 0x487   : > { %3649 = vmatpush1.bf16.msra.mxu1 %v3105_v8  ;;  %3486 = vmatprep.subr.bf16.mxu0 %v3112_v9  ;;  %v3178_v8 = vunpack.c.h.s8.bf16 %v5583_v45  ;;  %v5589_v9 = vld [vmem:[%s6835_s7 + $0xd88] sm:$0xff] }
 0x488   : > { %3650 = vmatprep.subr.bf16.mxu1 %v3114_v61  ;;  %v5591_v61 = vld [vmem:[%s6835_s7 + $0xd98] sm:$0xff] }
 0x48a   : > { %3487 = vmatpush1.bf16.msra.mxu0 %v3111_v13  ;;  %v3184_v13 = vunpack.c.l.s8.bf16 %v5589_v9 }
 0x48b   : > { %3651 = vmatpush1.bf16.msra.mxu1 %v3113_v14  ;;  %3488 = vmatprep.subr.bf16.mxu0 %v3120_v19  ;;  %v5588_v14 = vld [vmem:[%s6835_s7 + $0xd80] sm:$0xff]  ;;  %v3186_v19 = vunpack.c.l.s8.bf16 %v5591_v61 }
 0x48c   : > { %3652 = vmatprep.subr.bf16.mxu1 %v3122_v16  ;;  %v3183_v16 = vunpack.c.l.s8.bf16 %v5588_v14  ;;  %v3191_v22 = vunpack.c.h.s8.bf16 %v5588_v14 }
 0x48e   : > { %3489 = vmatpush1.bf16.msra.mxu0 %v3119_v2  ;;  %v3192_v2 = vunpack.c.h.s8.bf16 %v5589_v9 }
 0x48f   : > { %3653 = vmatpush1.bf16.msra.mxu1 %v3121_v18  ;;  %3490 = vmatprep.subr.bf16.mxu0 %v3128_v20  ;;  %v3194_v18 = vunpack.c.h.s8.bf16 %v5591_v61  ;;  %v5597_v20 = vld [vmem:[%s6835_s7 + $0xdc8] sm:$0xff] }
 0x490   : > { %3654 = vmatprep.subr.bf16.mxu1 %v3130_v21  ;;  %v5599_v21 = vld [vmem:[%s6835_s7 + $0xdd8] sm:$0xff] }
 0x492   : > { %3491 = vmatpush1.bf16.msra.mxu0 %v3127_v25  ;;  %v3200_v25 = vunpack.c.l.s8.bf16 %v5597_v20 }
 0x493   : > { %3655 = vmatpush1.bf16.msra.mxu1 %v3129_v10  ;;  %3492 = vmatprep.subr.bf16.mxu0 %v3136_v26  ;;  %v5596_v10 = vld [vmem:[%s6835_s7 + $0xdc0] sm:$0xff]  ;;  %v3202_v26 = vunpack.c.l.s8.bf16 %v5599_v21 }
 0x494   : > { %3656 = vmatprep.subr.bf16.mxu1 %v3138_v30  ;;  %v3199_v30 = vunpack.c.l.s8.bf16 %v5596_v10  ;;  %v3207_v32 = vunpack.c.h.s8.bf16 %v5596_v10 }
 0x496   : > { %3493 = vmatpush1.bf16.msra.mxu0 %v3135_v28  ;;  %v3208_v28 = vunpack.c.h.s8.bf16 %v5597_v20 }
 0x497   : > { %3657 = vmatpush1.bf16.msra.mxu1 %v3137_v29  ;;  %3494 = vmatprep.subr.bf16.mxu0 %v3144_v31  ;;  %v3210_v29 = vunpack.c.h.s8.bf16 %v5599_v21  ;;  %v7398_v31 = vld [vmem:[%s6835_s7 + $0xe08] sm:$0xff] }
 0x498   : > { %3658 = vmatprep.subr.bf16.mxu1 %v3146_v33  ;;  %v7401_v33 = vld [vmem:[%s6835_s7 + $0xe18] sm:$0xff] }
 0x49a   : > { %3495 = vmatpush1.bf16.msra.mxu0 %v3143_v35  ;;  %v3216_v35 = vunpack.c.l.s8.bf16 %v7398_v31 }
 0x49b   : > { %3659 = vmatpush1.bf16.msra.mxu1 %v3145_v36  ;;  %3496 = vmatprep.subr.bf16.mxu0 %v3152_v38  ;;  %v3218_v36 = vunpack.c.l.s8.bf16 %v7401_v33  ;;  %v1649_v38 = vld [vmem:[%s6863_s0 + $0x8] sm:$0xff] }
 0x49c   : > { %3660 = vmatprep.subr.bf16.mxu1 %v3154_v40  ;;  %v2379_v39 = vrot.slane %v1649_v38, %v7200_v37  ;;  %v2387_v40 = vrot.slane %v1649_v38, %v7203_v41  ;;  %v2383_v46 = vrot.slane %v1649_v38, %v7207_v43  ;;  %v2471_v55 = vrot.slane %v1649_v38, %v7224_v54 }
 0x49e   : > { %3497 = vmatpush1.bf16.msra.mxu0 %v3151_v47  ;;  %v2391_v47 = vrot.slane %v1649_v38, %v7210_v44  ;;  %v2419_v45 = vrot.slane %v2379_v39, %v7200_v37 }
 0x49f   : > { %3661 = vmatpush1.bf16.msra.mxu1 %v3153_v48  ;;  %3498 = vmatprep.subr.bf16.mxu0 %v3160_v50  ;;  %v2459_v48 = vrot.slane %v1649_v38, %v7215_v51  ;;  %v2467_v50 = vrot.slane %v1649_v38, %v7218_v52 }
 0x4a0   : > { %3662 = vmatprep.subr.bf16.mxu1 %v3162_v59  ;;  %v2463_v59 = vrot.slane %v1649_v38, %v7221_v57 }
 0x4a1   : > { %v2499_v42 = vrot.slane %v2459_v48, %v7215_v51 }
 0x4a2   : > { %3499 = vmatpush1.bf16.msra.mxu0 %v3159_v63  ;;  %v2427_v63 = vrot.slane %v2387_v40, %v7200_v37 }
 0x4a3   : > { %3663 = vmatpush1.bf16.msra.mxu1 %v3161_v49  ;;  %3500 = vmatprep.subr.bf16.mxu0 %v3168_v0  ;;  %v2423_v49 = vrot.slane %v2383_v46, %v7200_v37  ;;  %v2431_v0 = vrot.slane %v2391_v47, %v7200_v37 }
 0x4a4   : > { %3664 = vmatprep.subr.bf16.mxu1 %v3170_v3  ;;  %v2507_v3 = vrot.slane %v2467_v50, %v7215_v51 }
 0x4a6   : > { %3501 = vmatpush1.bf16.msra.mxu0 %v3167_v6 }
 0x4a7   : > { %3665 = vmatpush1.bf16.msra.mxu1 %v3169_v58  ;;  %3502 = vmatprep.subr.bf16.mxu0 %v3176_v7  ;;  %v2503_v58 = vrot.slane %v2463_v59, %v7215_v51  ;;  %v2511_v7 = vrot.slane %v2471_v55, %v7215_v51  ;;  %v3224_v55 = vunpack.c.h.s8.bf16 %v7398_v31 }
 0x4a8   : > { %3666 = vmatprep.subr.bf16.mxu1 %v3178_v8 }
 0x4aa   : > { %3503 = vmatpush1.bf16.msra.mxu0 %v3175_v11 }
 0x4ab   : > { %3667 = vmatpush1.bf16.msra.mxu1 %v3177_v12  ;;  %3504 = vmatprep.subr.bf16.mxu0 %v3184_v13 }
 0x4ac   : > { %3668 = vmatprep.subr.bf16.mxu1 %v3186_v19 }
 0x4ae   : > { %3505 = vmatpush1.bf16.msra.mxu0 %v3183_v16 }
 0x4af   : > { %3669 = vmatpush1.bf16.msra.mxu1 %v3185_v17  ;;  %3506 = vmatprep.subr.bf16.mxu0 %v3192_v2 }
 0x4b0   : > { %3670 = vmatprep.subr.bf16.mxu1 %v3194_v18 }
 0x4b2   : > { %3507 = vmatpush1.bf16.msra.mxu0 %v3191_v22 }
 0x4b3   : > { %3671 = vmatpush1.bf16.msra.mxu1 %v3193_v23  ;;  %3508 = vmatprep.subr.bf16.mxu0 %v3200_v25 }
 0x4b4   : > { %3672 = vmatprep.subr.bf16.mxu1 %v3202_v26 }
 0x4b6   : > { %3509 = vmatpush1.bf16.msra.mxu0 %v3199_v30 }
 0x4b7   : > { %3673 = vmatpush1.bf16.msra.mxu1 %v3201_v27  ;;  %3510 = vmatprep.subr.bf16.mxu0 %v3208_v28  ;;  %v6081_v28 = vld [vmem:[#allocation2 + $0x8] sm:$0xff] }
 0x4b8   : > { %3674 = vmatprep.subr.bf16.mxu1 %v3210_v29 }
 0x4ba   : > { %3511 = vmatpush1.bf16.msra.mxu0 %v3207_v32 }
 0x4bb   : > { %3675 = vmatpush1.bf16.msra.mxu1 %v3209_v34  ;;  %3521 = vmatprep.subr.bf16.mxu0 %v3216_v35  ;;  %v5604_v35 = vld [vmem:[%s6835_s7 + $0xe00] sm:$0xff] }
 0x4bc   : > { %3685 = vmatprep.subr.bf16.mxu1 %v3218_v36  ;;  %v5606_v36 = vld [vmem:[%s6835_s7 + $0xe10] sm:$0xff]  ;;  %v3215_v46 = vunpack.c.l.s8.bf16 %v5604_v35 }
 0x4bd   : > { %v3217_v47 = vunpack.c.l.s8.bf16 %v5606_v36 }
 0x4d0   : > { %v2187_v53 = vpop.f32.mrb[4].mxu0  ;;  %v2351_v6 = vpop.f32.mrb[4].mxu1 }
 0x4d1   : > { %v2436_v8 = vmul.f32 %v2419_v45, %v2187_v53  ;;  %v2438_v9 = vmul.f32 %v2427_v63, %v2351_v6  ;;  %v2189_v61 = vpop.f32.mrb[5].mxu0  ;;  %v2353_v11 = vpop.f32.mrb[5].mxu1  ;;  %v3226_v45 = vunpack.c.h.s8.bf16 %v7401_v33  ;;  %v5613_v63 = vld [vmem:[%s6835_s7 + $0xe48] sm:$0xff]  ;;  %v5612_v53 = vld [vmem:[%s6835_s7 + $0xe40] sm:$0xff]  ;;  %v5614_v33 = vld [vmem:[%s6835_s7 + $0xe50] sm:$0xff] }
 0x4d2   : > { %v2437_v12 = vmul.f32 %v2423_v49, %v2189_v61  ;;  %v2439_v13 = vmul.f32 %v2431_v0, %v2353_v11  ;;  %v2191_v14 = vpop.f32.mrb[6].mxu0  ;;  %v2355_v19 = vpop.f32.mrb[6].mxu1  ;;  %v5615_v49 = vld [vmem:[%s6835_s7 + $0xe58] sm:$0xff]  ;;  %v3223_v0 = vunpack.c.h.s8.bf16 %v5604_v35  ;;  %v3231_v6 = vunpack.c.l.s8.bf16 %v5612_v53 }
 0x4d3   : > { %v2516_v15 = vadd.f32 %v2499_v42, %v2436_v8  ;;  %v2518_v16 = vadd.f32 %v2507_v3, %v2438_v9  ;;  %v2192_v17 = vpop.f32.mrb[7].mxu0  ;;  %v2356_v2 = vpop.f32.mrb[7].mxu1  ;;  %v3225_v42 = vunpack.c.h.s8.bf16 %v5606_v36  ;;  %v3232_v3 = vunpack.c.l.s8.bf16 %v5613_v63  ;;  %v5621_v9 = vld [vmem:[%s6835_s7 + $0xe88] sm:$0xff]  ;;  %v5623_v61 = vld [vmem:[%s6835_s7 + $0xe98] sm:$0xff]  ;;  %v5620_v19 = vld [vmem:[%s6835_s7 + $0xe80] sm:$0xff] }
 0x4d4   : > { %v2517_v18 = vadd.f32 %v2503_v58, %v2437_v12  ;;  %v2519_v20 = vadd.f32 %v2511_v7, %v2439_v13  ;;  %v3234_v31 = vunpack.c.l.s8.bf16 %v5615_v49  ;;  %v3233_v58 = vunpack.c.l.s8.bf16 %v5614_v33  ;;  %v5639_v35 = vld [vmem:[%s6835_s7 + $0xf18] sm:$0xff] }
 0x4d5   : > { %v2524_v21 = vmax.f32 %v2516_v15, 0.0  ;;  %v2526_v22 = vmax.f32 %v2518_v16, 0.0  ;;  %v3240_v7 = vunpack.c.h.s8.bf16 %v5613_v63  ;;  %v3242_v8 = vunpack.c.h.s8.bf16 %v5615_v49  ;;  %v5622_v15 = vld [vmem:[%s6835_s7 + $0xe90] sm:$0xff] }
 0x4d6   : > { %v2525_v23 = vmax.f32 %v2517_v18, 0.0  ;;  %v2527_v25 = vmax.f32 %v2519_v20, 0.0  ;;  %v3239_v11 = vunpack.c.h.s8.bf16 %v5612_v53  ;;  %v3241_v12 = vunpack.c.h.s8.bf16 %v5614_v33  ;;  %v5629_v20 = vld [vmem:[%s6835_s7 + $0xec8] sm:$0xff] }
 0x4d7   : > { %v3248_v13 = vunpack.c.l.s8.bf16 %v5621_v9  ;;  %v3250_v14 = vunpack.c.l.s8.bf16 %v5623_v61  ;;  %v3247_v16 = vunpack.c.l.s8.bf16 %v5620_v19  ;;  %v3249_v17 = vunpack.c.l.s8.bf16 %v5622_v15 }
 0x4d8   : > { %v2553_v10 = vcombine.low %v2524_v21, %v2525_v23  ;;  %v2554_v26 = vcombine.low %v2526_v22, %v2527_v25  ;;  %v3256_v2 = vunpack.c.h.s8.bf16 %v5621_v9  ;;  %v3258_v18 = vunpack.c.h.s8.bf16 %v5623_v61  ;;  %v5631_v21 = vld [vmem:[%s6835_s7 + $0xed8] sm:$0xff] }
 0x4d9   : > { %v3255_v22 = vunpack.c.h.s8.bf16 %v5620_v19  ;;  %v3257_v23 = vunpack.c.h.s8.bf16 %v5622_v15  ;;  %v3264_v25 = vunpack.c.l.s8.bf16 %v5629_v20 }
 0x4da   : > { %v2561_v24 = vrot.slane %v2553_v10, %v6897_v60  ;;  %v2568_v30 = vrot.slane %v2554_v26, %v6897_v60  ;;  %v3266_v10 = vunpack.c.l.s8.bf16 %v5631_v21  ;;  %v5628_v26 = vld [vmem:[%s6835_s7 + $0xec0] sm:$0xff] }
 0x4db   : > { %v3271_v36 = vunpack.c.h.s8.bf16 %v5628_v26 }
 0x4dc   : > { %v2569_v27 = vcombine.low %v2561_v24, %v2568_v30  ;;  %v5630_v24 = vld [vmem:[%s6835_s7 + $0xed0] sm:$0xff]  ;;  %v3263_v30 = vunpack.c.l.s8.bf16 %v5628_v26 }
 0x4de   : > { %v7424_v29 = vadd.f32 %v6081_v28, %v2569_v27  ;;  %v3265_v27 = vunpack.c.l.s8.bf16 %v5630_v24  ;;  %v3272_v28 = vunpack.c.h.s8.bf16 %v5629_v20 }
 0x4e0   : > { %v3372_v32 = vrot.slane %v7424_v29, %v6897_v60  ;;  %v3365_v34 = vcombine.high %v7424_v29, %v7424_v29 }
 0x4e2   : > { %v3380_v38 = vcombine.high %v3372_v32, %v3372_v32  ;;  %v7433_v39 = vrot.slane %v3365_v34, %v6897_v60  ;;  %v7439_v50 = vpack.c.bf16 %v3372_v32, %v3372_v32  ;;  %v3274_v32 = vunpack.c.h.s8.bf16 %v5631_v21  ;;  %v5637_v34 = vld [vmem:[%s6835_s7 + $0xf08] sm:$0xff] }
 0x4e3   : > { %v3288_v49 = vunpack.c.h.s8.bf16 %v5637_v34 }
 0x4e4   : > { %v7435_v40 = vpack.c.bf16 %v3380_v38, %v3380_v38  ;;  %v3381_v48 = vcombine.high %v7433_v39, %v7433_v39  ;;  %v3273_v38 = vunpack.c.h.s8.bf16 %v5630_v24 }
 0x4e6   : > { %3512 = vmatprep.mubr.bf16.mxu0 %v7435_v40  ;;  %3676 = vmatprep.mubr.bf16.mxu1 %v7435_v40  ;;  %v7443_v59 = vpack.c.bf16 %v3381_v48, %v3381_v48  ;;  %v5636_v48 = vld [vmem:[%s6835_s7 + $0xf00] sm:$0xff] }
 0x4e7   : > { %3513 = vmatmul.mubr.bf16.vlgmr.msra.gmra.mrb[8].mxu0 %v7439_v50  ;;  %3677 = vmatmul.mubr.bf16.vlgmr.msra.gmra.mrb[8].mxu1 %v7439_v50 }
 0x4e8   : > { %3522 = vmatpush1.bf16.msra.mxu0 %v3215_v46  ;;  %3686 = vmatpush1.bf16.msra.mxu1 %v3217_v47  ;;  %v3280_v46 = vunpack.c.l.s8.bf16 %v5637_v34  ;;  %v3282_v47 = vunpack.c.l.s8.bf16 %v5639_v35 }
 0x4e9   : > { %3553 = vmatprep.mubr.bf16.mxu0 %v7443_v59  ;;  %3717 = vmatprep.mubr.bf16.mxu1 %v7443_v59 }
 0x4ea   : > { %3523 = vmatprep.subr.bf16.mxu0 %v3224_v55  ;;  %3687 = vmatprep.subr.bf16.mxu1 %v3226_v45  ;;  %v5638_v55 = vld [vmem:[%s6835_s7 + $0xf10] sm:$0xff]  ;;  %v3279_v45 = vunpack.c.l.s8.bf16 %v5636_v48 }
 0x4eb   : > { %v3281_v63 = vunpack.c.l.s8.bf16 %v5638_v55  ;;  %v3289_v53 = vunpack.c.h.s8.bf16 %v5638_v55 }
 0x4ec   : > { %3524 = vmatpush1.bf16.msra.mxu0 %v3223_v0  ;;  %3688 = vmatpush1.bf16.msra.mxu1 %v3225_v42  ;;  %v3290_v0 = vunpack.c.h.s8.bf16 %v5639_v35  ;;  %v5645_v42 = vld [vmem:[%s6835_s7 + $0xf48] sm:$0xff] }
 0x4ed   : > { %3525 = vmatprep.subr.bf16.mxu0 %v3232_v3  ;;  %3689 = vmatprep.subr.bf16.mxu1 %v3234_v31  ;;  %v5647_v3 = vld [vmem:[%s6835_s7 + $0xf58] sm:$0xff]  ;;  %v3287_v31 = vunpack.c.h.s8.bf16 %v5636_v48  ;;  %v3296_v33 = vunpack.c.l.s8.bf16 %v5645_v42  ;;  %v3304_v61 = vunpack.c.h.s8.bf16 %v5645_v42  ;;  %v7485_v42 = vpack.c.bf16 %v7433_v39, %v7433_v39 }
 0x4f0   : > { %3526 = vmatpush1.bf16.msra.mxu0 %v3231_v6  ;;  %3690 = vmatpush1.bf16.msra.mxu1 %v3233_v58  ;;  %v3298_v6 = vunpack.c.l.s8.bf16 %v5647_v3  ;;  %v5644_v58 = vld [vmem:[%s6835_s7 + $0xf40] sm:$0xff] }
 0x4f1   : > { %3527 = vmatprep.subr.bf16.mxu0 %v3240_v7  ;;  %3691 = vmatprep.subr.bf16.mxu1 %v3242_v8  ;;  %v5646_v7 = vld [vmem:[%s6835_s7 + $0xf50] sm:$0xff]  ;;  %v3295_v8 = vunpack.c.l.s8.bf16 %v5644_v58 }
 0x4f2   : > { %v3297_v9 = vunpack.c.l.s8.bf16 %v5646_v7  ;;  %v3305_v19 = vunpack.c.h.s8.bf16 %v5646_v7 }
 0x4f4   : > { %3528 = vmatpush1.bf16.msra.mxu0 %v3239_v11  ;;  %3692 = vmatpush1.bf16.msra.mxu1 %v3241_v12  ;;  %v3306_v11 = vunpack.c.h.s8.bf16 %v5647_v3  ;;  %v5653_v12 = vld [vmem:[%s6835_s7 + $0xf88] sm:$0xff] }
 0x4f5   : > { %3529 = vmatprep.subr.bf16.mxu0 %v3248_v13  ;;  %3693 = vmatprep.subr.bf16.mxu1 %v3250_v14  ;;  %v5655_v13 = vld [vmem:[%s6835_s7 + $0xf98] sm:$0xff]  ;;  %v3303_v14 = vunpack.c.h.s8.bf16 %v5644_v58  ;;  %v3312_v15 = vunpack.c.l.s8.bf16 %v5653_v12  ;;  %v3320_v21 = vunpack.c.h.s8.bf16 %v5653_v12 }
 0x4f8   : > { %3530 = vmatpush1.bf16.msra.mxu0 %v3247_v16  ;;  %3694 = vmatpush1.bf16.msra.mxu1 %v3249_v17  ;;  %v3314_v16 = vunpack.c.l.s8.bf16 %v5655_v13  ;;  %v5652_v17 = vld [vmem:[%s6835_s7 + $0xf80] sm:$0xff] }
 0x4f9   : > { %3531 = vmatprep.subr.bf16.mxu0 %v3256_v2  ;;  %3695 = vmatprep.subr.bf16.mxu1 %v3258_v18  ;;  %v5654_v2 = vld [vmem:[%s6835_s7 + $0xf90] sm:$0xff]  ;;  %v3311_v18 = vunpack.c.l.s8.bf16 %v5652_v17 }
 0x4fa   : > { %v3313_v20 = vunpack.c.l.s8.bf16 %v5654_v2  ;;  %v3321_v26 = vunpack.c.h.s8.bf16 %v5654_v2  ;;  %v5432_v2 = vld [vmem:[%s6835_s7 + $0x8a0] sm:$0xff] }
 0x4fc   : > { %3532 = vmatpush1.bf16.msra.mxu0 %v3255_v22  ;;  %3696 = vmatpush1.bf16.msra.mxu1 %v3257_v23  ;;  %v3322_v22 = vunpack.c.h.s8.bf16 %v5655_v13  ;;  %v5661_v23 = vld [vmem:[%s6835_s7 + $0xfc8] sm:$0xff] }
 0x4fd   : > { %3533 = vmatprep.subr.bf16.mxu0 %v3264_v25  ;;  %3697 = vmatprep.subr.bf16.mxu1 %v3266_v10  ;;  %v5663_v25 = vld [vmem:[%s6835_s7 + $0xfd8] sm:$0xff]  ;;  %v3319_v10 = vunpack.c.h.s8.bf16 %v5652_v17  ;;  %v3328_v24 = vunpack.c.l.s8.bf16 %v5661_v23  ;;  %v3336_v35 = vunpack.c.h.s8.bf16 %v5661_v23 }
 0x500   : > { %3534 = vmatpush1.bf16.msra.mxu0 %v3263_v30  ;;  %3698 = vmatpush1.bf16.msra.mxu1 %v3265_v27  ;;  %v3330_v30 = vunpack.c.l.s8.bf16 %v5663_v25  ;;  %v5660_v27 = vld [vmem:[%s6835_s7 + $0xfc0] sm:$0xff] }
 0x501   : > { %3535 = vmatprep.subr.bf16.mxu0 %v3272_v28  ;;  %3699 = vmatprep.subr.bf16.mxu1 %v3274_v32  ;;  %v5662_v28 = vld [vmem:[%s6835_s7 + $0xfd0] sm:$0xff]  ;;  %v3327_v32 = vunpack.c.l.s8.bf16 %v5660_v27 }
 0x502   : > { %v3329_v34 = vunpack.c.l.s8.bf16 %v5662_v28  ;;  %v3337_v48 = vunpack.c.h.s8.bf16 %v5662_v28  ;;  %v5440_v28 = vld [vmem:[%s6835_s7 + $0x8e0] sm:$0xff] }
 0x504   : > { %3536 = vmatpush1.bf16.msra.mxu0 %v3271_v36  ;;  %3700 = vmatpush1.bf16.msra.mxu1 %v3273_v38  ;;  %v3338_v36 = vunpack.c.h.s8.bf16 %v5663_v25  ;;  %v5417_v38 = vld [vmem:[%s6835_s7 + $0x828] sm:$0xff] }
 0x505   : > { %3537 = vmatprep.subr.bf16.mxu0 %v3280_v46  ;;  %3701 = vmatprep.subr.bf16.mxu1 %v3282_v47  ;;  %v5419_v46 = vld [vmem:[%s6835_s7 + $0x838] sm:$0xff]  ;;  %v3335_v47 = vunpack.c.h.s8.bf16 %v5660_v27  ;;  %v2836_v55 = vunpack.c.l.s8.bf16 %v5417_v38 }
 0x508   : > { %3538 = vmatpush1.bf16.msra.mxu0 %v3279_v45  ;;  %3702 = vmatpush1.bf16.msra.mxu1 %v3281_v63  ;;  %v2838_v45 = vunpack.c.l.s8.bf16 %v5419_v46  ;;  %v5416_v63 = vld [vmem:[%s6835_s7 + $0x820] sm:$0xff] }
 0x509   : > { %3539 = vmatprep.subr.bf16.mxu0 %v3288_v49  ;;  %3703 = vmatprep.subr.bf16.mxu1 %v3290_v0  ;;  %v5418_v49 = vld [vmem:[%s6835_s7 + $0x830] sm:$0xff]  ;;  %v2835_v0 = vunpack.c.l.s8.bf16 %v5416_v63  ;;  %v2843_v58 = vunpack.c.h.s8.bf16 %v5416_v63 }
 0x50a   : > { %v2837_v3 = vunpack.c.l.s8.bf16 %v5418_v49  ;;  %v2845_v39 = vunpack.c.h.s8.bf16 %v5418_v49  ;;  %v5448_v49 = vld [vmem:[%s6835_s7 + $0x920] sm:$0xff] }
 0x50c   : > { %3540 = vmatpush1.bf16.msra.mxu0 %v3287_v31  ;;  %3704 = vmatpush1.bf16.msra.mxu1 %v3289_v53  ;;  %v2844_v31 = vunpack.c.h.s8.bf16 %v5417_v38  ;;  %v2846_v53 = vunpack.c.h.s8.bf16 %v5419_v46 }
 0x50d   : > { %3541 = vmatprep.subr.bf16.mxu0 %v3296_v33  ;;  %3705 = vmatprep.subr.bf16.mxu1 %v3298_v6  ;;  %v5425_v33 = vld [vmem:[%s6835_s7 + $0x868] sm:$0xff]  ;;  %v5427_v6 = vld [vmem:[%s6835_s7 + $0x878] sm:$0xff] }
 0x50e   : > { %v2852_v7 = vunpack.c.l.s8.bf16 %v5425_v33  ;;  %v2860_v13 = vunpack.c.h.s8.bf16 %v5425_v33 }
 0x510   : > { %3542 = vmatpush1.bf16.msra.mxu0 %v3295_v8  ;;  %3706 = vmatpush1.bf16.msra.mxu1 %v3297_v9  ;;  %v5424_v8 = vld [vmem:[%s6835_s7 + $0x860] sm:$0xff]  ;;  %v2854_v9 = vunpack.c.l.s8.bf16 %v5427_v6 }
 0x511   : > { %3543 = vmatprep.subr.bf16.mxu0 %v3304_v61  ;;  %3707 = vmatprep.subr.bf16.mxu1 %v3306_v11  ;;  %v5426_v61 = vld [vmem:[%s6835_s7 + $0x870] sm:$0xff]  ;;  %v2851_v11 = vunpack.c.l.s8.bf16 %v5424_v8 }
 0x512   : > { %v2853_v12 = vunpack.c.l.s8.bf16 %v5426_v61 }
 0x514   : > { %3544 = vmatpush1.bf16.msra.mxu0 %v3303_v14  ;;  %3708 = vmatpush1.bf16.msra.mxu1 %v3305_v19  ;;  %v2862_v14 = vunpack.c.h.s8.bf16 %v5427_v6  ;;  %v5435_v19 = vld [vmem:[%s6835_s7 + $0x8b8] sm:$0xff] }
 0x515   : > { %3545 = vmatprep.subr.bf16.mxu0 %v3312_v15  ;;  %3709 = vmatprep.subr.bf16.mxu1 %v3314_v16  ;;  %v2859_v15 = vunpack.c.h.s8.bf16 %v5424_v8  ;;  %v2861_v16 = vunpack.c.h.s8.bf16 %v5426_v61  ;;  %v2878_v25 = vunpack.c.h.s8.bf16 %v5435_v19  ;;  %v5456_v61 = vld [vmem:[%s6835_s7 + $0x960] sm:$0xff] }
 0x518   : > { %3546 = vmatpush1.bf16.msra.mxu0 %v3311_v18  ;;  %3710 = vmatpush1.bf16.msra.mxu1 %v3313_v20  ;;  %v2870_v18 = vunpack.c.l.s8.bf16 %v5435_v19  ;;  %v5434_v20 = vld [vmem:[%s6835_s7 + $0x8b0] sm:$0xff] }
 0x519   : > { %3547 = vmatprep.subr.bf16.mxu0 %v3320_v21  ;;  %3711 = vmatprep.subr.bf16.mxu1 %v3322_v22  ;;  %v2867_v21 = vunpack.c.l.s8.bf16 %v5432_v2  ;;  %v2869_v22 = vunpack.c.l.s8.bf16 %v5434_v20 }
 0x51c   : > { %3548 = vmatpush1.bf16.msra.mxu0 %v3319_v10  ;;  %3712 = vmatpush1.bf16.msra.mxu1 %v3321_v26  ;;  %v5441_v10 = vld [vmem:[%s6835_s7 + $0x8e8] sm:$0xff]  ;;  %v5443_v26 = vld [vmem:[%s6835_s7 + $0x8f8] sm:$0xff] }
 0x51d   : > { %3549 = vmatprep.subr.bf16.mxu0 %v3328_v24  ;;  %3713 = vmatprep.subr.bf16.mxu1 %v3330_v30  ;;  %v2875_v24 = vunpack.c.h.s8.bf16 %v5432_v2  ;;  %v2877_v30 = vunpack.c.h.s8.bf16 %v5434_v20  ;;  %v2884_v27 = vunpack.c.l.s8.bf16 %v5441_v10  ;;  %v2892_v38 = vunpack.c.h.s8.bf16 %v5441_v10  ;;  %v5464_v20 = vld [vmem:[%s6835_s7 + $0x9a0] sm:$0xff] }
 0x51e   : > { %v2894_v46 = vunpack.c.h.s8.bf16 %v5443_v26 }
 0x520   : > { %3550 = vmatpush1.bf16.msra.mxu0 %v3327_v32  ;;  %3714 = vmatpush1.bf16.msra.mxu1 %v3329_v34  ;;  %v2886_v32 = vunpack.c.l.s8.bf16 %v5443_v26  ;;  %v5442_v34 = vld [vmem:[%s6835_s7 + $0x8f0] sm:$0xff] }
 0x521   : > { %3551 = vmatprep.subr.bf16.mxu0 %v3336_v35  ;;  %3715 = vmatprep.subr.bf16.mxu1 %v3338_v36  ;;  %v2883_v35 = vunpack.c.l.s8.bf16 %v5440_v28  ;;  %v2885_v36 = vunpack.c.l.s8.bf16 %v5442_v34 }
 0x524   : > { %3552 = vmatpush1.bf16.msra.mxu0 %v3335_v47  ;;  %3716 = vmatpush1.bf16.msra.mxu1 %v3337_v48  ;;  %v5449_v47 = vld [vmem:[%s6835_s7 + $0x928] sm:$0xff]  ;;  %v5451_v48 = vld [vmem:[%s6835_s7 + $0x938] sm:$0xff] }
 0x525   : > { %3726 = vmatprep.subr.bf16.mxu0 %v2836_v55  ;;  %3890 = vmatprep.subr.bf16.mxu1 %v2838_v45  ;;  %v2891_v55 = vunpack.c.h.s8.bf16 %v5440_v28  ;;  %v2893_v45 = vunpack.c.h.s8.bf16 %v5442_v34  ;;  %v2900_v63 = vunpack.c.l.s8.bf16 %v5449_v47  ;;  %v2908_v33 = vunpack.c.h.s8.bf16 %v5449_v47  ;;  %v5472_v34 = vld [vmem:[%s6835_s7 + $0x9e0] sm:$0xff] }
 0x526   : > { %v2910_v6 = vunpack.c.h.s8.bf16 %v5451_v48 }
 0x527   : > { %3554 = vmatmul.mubr.bf16.vlgmr.msra.gmra.mrb[8].mxu0 %v7485_v42  ;;  %3718 = vmatmul.mubr.bf16.vlgmr.msra.gmra.mrb[8].mxu1 %v7485_v42 }
 0x528   : > { %3727 = vmatpush1.bf16.msra.mxu0 %v2835_v0  ;;  %3758 = vmatprep.mubr.bf16.mxu0 %v7276_v4  ;;  %v2902_v0 = vunpack.c.l.s8.bf16 %v5451_v48 }
 0x529   : > { %3891 = vmatpush1.bf16.msra.mxu1 %v2837_v3  ;;  %3922 = vmatprep.mubr.bf16.mxu1 %v7276_v4  ;;  %v5433_v4 = vld [vmem:[%s6835_s7 + $0x8a8] sm:$0xff]  ;;  %v5450_v3 = vld [vmem:[%s6835_s7 + $0x930] sm:$0xff] }
 0x52a   : > { %3728 = vmatprep.subr.bf16.mxu0 %v2844_v31  ;;  %3892 = vmatprep.subr.bf16.mxu1 %v2846_v53  ;;  %v2868_v17 = vunpack.c.l.s8.bf16 %v5433_v4  ;;  %v2876_v23 = vunpack.c.h.s8.bf16 %v5433_v4  ;;  %v2899_v31 = vunpack.c.l.s8.bf16 %v5448_v49  ;;  %v2901_v53 = vunpack.c.l.s8.bf16 %v5450_v3 }
 0x52b   : > { %v2909_v8 = vunpack.c.h.s8.bf16 %v5450_v3  ;;  %v5480_v3 = vld [vmem:[%s6835_s7 + $0xa20] sm:$0xff] }
 0x52c   : > { %3729 = vmatpush1.bf16.msra.mxu0 %v2843_v58  ;;  %v5457_v58 = vld [vmem:[%s6835_s7 + $0x968] sm:$0xff] }
 0x52d   : > { %3893 = vmatpush1.bf16.msra.mxu1 %v2845_v39  ;;  %3730 = vmatprep.subr.bf16.mxu0 %v2852_v7  ;;  %v5459_v39 = vld [vmem:[%s6835_s7 + $0x978] sm:$0xff]  ;;  %v2907_v7 = vunpack.c.h.s8.bf16 %v5448_v49  ;;  %v2924_v4 = vunpack.c.h.s8.bf16 %v5457_v58 }
 0x52e   : > { %3894 = vmatprep.subr.bf16.mxu1 %v2854_v9  ;;  %v2916_v9 = vunpack.c.l.s8.bf16 %v5457_v58  ;;  %v2926_v19 = vunpack.c.h.s8.bf16 %v5459_v39 }
 0x530   : > { %3731 = vmatpush1.bf16.msra.mxu0 %v2851_v11  ;;  %v2918_v11 = vunpack.c.l.s8.bf16 %v5459_v39  ;;  %v5489_v39 = vld [vmem:[%s6835_s7 + $0xa68] sm:$0xff] }
 0x531   : > { %3895 = vmatpush1.bf16.msra.mxu1 %v2853_v12  ;;  %3732 = vmatprep.subr.bf16.mxu0 %v2860_v13  ;;  %v5458_v12 = vld [vmem:[%s6835_s7 + $0x970] sm:$0xff]  ;;  %v2915_v13 = vunpack.c.l.s8.bf16 %v5456_v61 }
 0x532   : > { %3896 = vmatprep.subr.bf16.mxu1 %v2862_v14  ;;  %v2917_v14 = vunpack.c.l.s8.bf16 %v5458_v12  ;;  %v2925_v2 = vunpack.c.h.s8.bf16 %v5458_v12  ;;  %v5488_v12 = vld [vmem:[%s6835_s7 + $0xa60] sm:$0xff] }
 0x534   : > { %3733 = vmatpush1.bf16.msra.mxu0 %v2859_v15  ;;  %v5465_v15 = vld [vmem:[%s6835_s7 + $0x9a8] sm:$0xff] }
 0x535   : > { %3897 = vmatpush1.bf16.msra.mxu1 %v2861_v16  ;;  %3734 = vmatprep.subr.bf16.mxu0 %v2868_v17  ;;  %v5467_v16 = vld [vmem:[%s6835_s7 + $0x9b8] sm:$0xff]  ;;  %v2923_v17 = vunpack.c.h.s8.bf16 %v5456_v61  ;;  %v2940_v10 = vunpack.c.h.s8.bf16 %v5465_v15 }
 0x536   : > { %3898 = vmatprep.subr.bf16.mxu1 %v2870_v18  ;;  %v2932_v18 = vunpack.c.l.s8.bf16 %v5465_v15  ;;  %v2942_v26 = vunpack.c.h.s8.bf16 %v5467_v16 }
 0x538   : > { %3735 = vmatpush1.bf16.msra.mxu0 %v2867_v21  ;;  %v2934_v21 = vunpack.c.l.s8.bf16 %v5467_v16  ;;  %v5497_v16 = vld [vmem:[%s6835_s7 + $0xaa8] sm:$0xff] }
 0x539   : > { %3899 = vmatpush1.bf16.msra.mxu1 %v2869_v22  ;;  %3736 = vmatprep.subr.bf16.mxu0 %v2876_v23  ;;  %v5466_v22 = vld [vmem:[%s6835_s7 + $0x9b0] sm:$0xff]  ;;  %v2931_v23 = vunpack.c.l.s8.bf16 %v5464_v20 }
 0x53a   : > { %3900 = vmatprep.subr.bf16.mxu1 %v2878_v25  ;;  %v2933_v25 = vunpack.c.l.s8.bf16 %v5466_v22  ;;  %v2941_v28 = vunpack.c.h.s8.bf16 %v5466_v22  ;;  %v5498_v22 = vld [vmem:[%s6835_s7 + $0xab0] sm:$0xff] }
 0x53c   : > { %3737 = vmatpush1.bf16.msra.mxu0 %v2875_v24  ;;  %v5473_v24 = vld [vmem:[%s6835_s7 + $0x9e8] sm:$0xff] }
 0x53d   : > { %3901 = vmatpush1.bf16.msra.mxu1 %v2877_v30  ;;  %3738 = vmatprep.subr.bf16.mxu0 %v2884_v27  ;;  %v5475_v30 = vld [vmem:[%s6835_s7 + $0x9f8] sm:$0xff]  ;;  %v2939_v27 = vunpack.c.h.s8.bf16 %v5464_v20  ;;  %v2956_v47 = vunpack.c.h.s8.bf16 %v5473_v24  ;;  %v5496_v20 = vld [vmem:[%s6835_s7 + $0xaa0] sm:$0xff] }
 0x53e   : > { %3902 = vmatprep.subr.bf16.mxu1 %v2886_v32  ;;  %v2948_v32 = vunpack.c.l.s8.bf16 %v5473_v24  ;;  %v2958_v48 = vunpack.c.h.s8.bf16 %v5475_v30  ;;  %v5505_v24 = vld [vmem:[%s6835_s7 + $0xae8] sm:$0xff] }
 0x540   : > { %3739 = vmatpush1.bf16.msra.mxu0 %v2883_v35  ;;  %v2950_v35 = vunpack.c.l.s8.bf16 %v5475_v30  ;;  %v5507_v30 = vld [vmem:[%s6835_s7 + $0xaf8] sm:$0xff] }
 0x541   : > { %3903 = vmatpush1.bf16.msra.mxu1 %v2885_v36  ;;  %3740 = vmatprep.subr.bf16.mxu0 %v2892_v38  ;;  %v5474_v36 = vld [vmem:[%s6835_s7 + $0x9f0] sm:$0xff]  ;;  %v2947_v38 = vunpack.c.l.s8.bf16 %v5472_v34 }
 0x542   : > { %3904 = vmatprep.subr.bf16.mxu1 %v2894_v46  ;;  %v2949_v46 = vunpack.c.l.s8.bf16 %v5474_v36  ;;  %v2957_v49 = vunpack.c.h.s8.bf16 %v5474_v36  ;;  %v5506_v36 = vld [vmem:[%s6835_s7 + $0xaf0] sm:$0xff] }
 0x544   : > { %3741 = vmatpush1.bf16.msra.mxu0 %v2891_v55  ;;  %v5481_v55 = vld [vmem:[%s6835_s7 + $0xa28] sm:$0xff] }
 0x545   : > { %3905 = vmatpush1.bf16.msra.mxu1 %v2893_v45  ;;  %3742 = vmatprep.subr.bf16.mxu0 %v2900_v63  ;;  %v5483_v45 = vld [vmem:[%s6835_s7 + $0xa38] sm:$0xff]  ;;  %v2955_v63 = vunpack.c.h.s8.bf16 %v5472_v34  ;;  %v2972_v58 = vunpack.c.h.s8.bf16 %v5481_v55  ;;  %v5504_v34 = vld [vmem:[%s6835_s7 + $0xae0] sm:$0xff] }
 0x546   : > { %3906 = vmatprep.subr.bf16.mxu1 %v2902_v0  ;;  %v2964_v0 = vunpack.c.l.s8.bf16 %v5481_v55  ;;  %v5513_v55 = vld [vmem:[%s6835_s7 + $0xb28] sm:$0xff] }
 0x548   : > { %3743 = vmatpush1.bf16.msra.mxu0 %v2899_v31  ;;  %v2966_v31 = vunpack.c.l.s8.bf16 %v5483_v45 }
 0x549   : > { %3907 = vmatpush1.bf16.msra.mxu1 %v2901_v53  ;;  %3744 = vmatprep.subr.bf16.mxu0 %v2908_v33  ;;  %v5482_v53 = vld [vmem:[%s6835_s7 + $0xa30] sm:$0xff]  ;;  %v2963_v33 = vunpack.c.l.s8.bf16 %v5480_v3 }
 0x54a   : > { %3908 = vmatprep.subr.bf16.mxu1 %v2910_v6  ;;  %v2965_v6 = vunpack.c.l.s8.bf16 %v5482_v53  ;;  %v2973_v61 = vunpack.c.h.s8.bf16 %v5482_v53  ;;  %v5514_v53 = vld [vmem:[%s6835_s7 + $0xb30] sm:$0xff] }
 0x54c   : > { %3745 = vmatpush1.bf16.msra.mxu0 %v2907_v7  ;;  %v2974_v7 = vunpack.c.h.s8.bf16 %v5483_v45  ;;  %v5515_v45 = vld [vmem:[%s6835_s7 + $0xb38] sm:$0xff] }
 0x54d   : > { %3909 = vmatpush1.bf16.msra.mxu1 %v2909_v8  ;;  %3746 = vmatprep.subr.bf16.mxu0 %v2916_v9  ;;  %v5491_v8 = vld [vmem:[%s6835_s7 + $0xa78] sm:$0xff]  ;;  %v2971_v9 = vunpack.c.h.s8.bf16 %v5480_v3  ;;  %v5512_v3 = vld [vmem:[%s6835_s7 + $0xb20] sm:$0xff] }
 0x54e   : > { %3910 = vmatprep.subr.bf16.mxu1 %v2918_v11  ;;  %v2980_v11 = vunpack.c.l.s8.bf16 %v5489_v39  ;;  %v2990_v15 = vunpack.c.h.s8.bf16 %v5491_v8 }
 0x550   : > { %3747 = vmatpush1.bf16.msra.mxu0 %v2915_v13  ;;  %v2982_v13 = vunpack.c.l.s8.bf16 %v5491_v8  ;;  %v5523_v8 = vld [vmem:[%s6835_s7 + $0xb78] sm:$0xff] }
 0x551   : > { %3911 = vmatpush1.bf16.msra.mxu1 %v2917_v14  ;;  %3748 = vmatprep.subr.bf16.mxu0 %v2924_v4  ;;  %v5490_v14 = vld [vmem:[%s6835_s7 + $0xa70] sm:$0xff]  ;;  %v2979_v4 = vunpack.c.l.s8.bf16 %v5488_v12 }
 0x552   : > { %3912 = vmatprep.subr.bf16.mxu1 %v2926_v19  ;;  %v2988_v19 = vunpack.c.h.s8.bf16 %v5489_v39  ;;  %v3038_v39 = vunpack.c.h.s8.bf16 %v5515_v45 }
 0x554   : > { %3749 = vmatpush1.bf16.msra.mxu0 %v2923_v17  ;;  %v5499_v17 = vld [vmem:[%s6835_s7 + $0xab8] sm:$0xff] }
 0x555   : > { %3913 = vmatpush1.bf16.msra.mxu1 %v2925_v2  ;;  %3750 = vmatprep.subr.bf16.mxu0 %v2932_v18  ;;  %v2987_v2 = vunpack.c.h.s8.bf16 %v5488_v12  ;;  %v2996_v18 = vunpack.c.l.s8.bf16 %v5497_v16  ;;  %v5520_v12 = vld [vmem:[%s6835_s7 + $0xb60] sm:$0xff] }
 0x556   : > { %3914 = vmatprep.subr.bf16.mxu1 %v2934_v21  ;;  %v2998_v21 = vunpack.c.l.s8.bf16 %v5499_v17 }
 0x558   : > { %3751 = vmatpush1.bf16.msra.mxu0 %v2931_v23  ;;  %v2995_v23 = vunpack.c.l.s8.bf16 %v5496_v20 }
 0x559   : > { %3915 = vmatpush1.bf16.msra.mxu1 %v2933_v25  ;;  %3752 = vmatprep.subr.bf16.mxu0 %v2940_v10  ;;  %v2997_v25 = vunpack.c.l.s8.bf16 %v5498_v22  ;;  %v3004_v10 = vunpack.c.h.s8.bf16 %v5497_v16  ;;  %v5529_v16 = vld [vmem:[%s6835_s7 + $0xba8] sm:$0xff] }
 0x55a   : > { %3916 = vmatprep.subr.bf16.mxu1 %v2942_v26  ;;  %v3006_v26 = vunpack.c.h.s8.bf16 %v5499_v17  ;;  %v5531_v17 = vld [vmem:[%s6835_s7 + $0xbb8] sm:$0xff] }
 0x55c   : > { %3753 = vmatpush1.bf16.msra.mxu0 %v2939_v27  ;;  %v3003_v27 = vunpack.c.h.s8.bf16 %v5496_v20  ;;  %v5528_v20 = vld [vmem:[%s6835_s7 + $0xba0] sm:$0xff] }
 0x55d   : > { %3917 = vmatpush1.bf16.msra.mxu1 %v2941_v28  ;;  %3754 = vmatprep.subr.bf16.mxu0 %v2948_v32  ;;  %v3005_v28 = vunpack.c.h.s8.bf16 %v5498_v22  ;;  %v3012_v32 = vunpack.c.l.s8.bf16 %v5505_v24  ;;  %v5530_v22 = vld [vmem:[%s6835_s7 + $0xbb0] sm:$0xff] }
 0x55e   : > { %3918 = vmatprep.subr.bf16.mxu1 %v2950_v35  ;;  %v3014_v35 = vunpack.c.l.s8.bf16 %v5507_v30 }
 0x560   : > { %3755 = vmatpush1.bf16.msra.mxu0 %v2947_v38  ;;  %v3011_v38 = vunpack.c.l.s8.bf16 %v5504_v34 }
 0x561   : > { %3919 = vmatpush1.bf16.msra.mxu1 %v2949_v46  ;;  %3756 = vmatprep.subr.bf16.mxu0 %v2956_v47  ;;  %v3013_v46 = vunpack.c.l.s8.bf16 %v5506_v36  ;;  %v3020_v47 = vunpack.c.h.s8.bf16 %v5505_v24  ;;  %v5537_v24 = vld [vmem:[%s6835_s7 + $0xbe8] sm:$0xff] }
 0x562   : > { %3920 = vmatprep.subr.bf16.mxu1 %v2958_v48  ;;  %v3022_v48 = vunpack.c.h.s8.bf16 %v5507_v30  ;;  %v5539_v30 = vld [vmem:[%s6835_s7 + $0xbf8] sm:$0xff] }
 0x564   : > { %3757 = vmatpush1.bf16.msra.mxu0 %v2955_v63  ;;  %v3019_v63 = vunpack.c.h.s8.bf16 %v5504_v34  ;;  %v5536_v34 = vld [vmem:[%s6835_s7 + $0xbe0] sm:$0xff] }
 0x565   : > { %3921 = vmatpush1.bf16.msra.mxu1 %v2957_v49  ;;  %3767 = vmatprep.subr.bf16.mxu0 %v2964_v0  ;;  %v3021_v49 = vunpack.c.h.s8.bf16 %v5506_v36  ;;  %v3028_v0 = vunpack.c.l.s8.bf16 %v5513_v55  ;;  %v5538_v36 = vld [vmem:[%s6835_s7 + $0xbf0] sm:$0xff] }
 0x566   : > { %3931 = vmatprep.subr.bf16.mxu1 %v2966_v31  ;;  %v3030_v31 = vunpack.c.l.s8.bf16 %v5515_v45  ;;  %v5547_v45 = vld [vmem:[%s6835_s7 + $0xc38] sm:$0xff] }
 0x567   : > { %3759 = vmatmul.mubr.bf16.vlgmr.msra.gmra.mrb[12].mxu0 %v7323_v62 }
 0x568   : > { %3923 = vmatmul.mubr.bf16.vlgmr.msra.gmra.mrb[12].mxu1 %v7323_v62  ;;  %3768 = vmatpush1.bf16.msra.mxu0 %v2963_v33  ;;  %v2981_v62 = vunpack.c.l.s8.bf16 %v5490_v14  ;;  %v3027_v33 = vunpack.c.l.s8.bf16 %v5512_v3 }
 0x569   : > { %3799 = vmatprep.mubr.bf16.mxu0 %v7327_v1  ;;  %3932 = vmatpush1.bf16.msra.mxu1 %v2965_v6  ;;  %v3029_v6 = vunpack.c.l.s8.bf16 %v5514_v53 }
 0x56a   : > { %3963 = vmatprep.mubr.bf16.mxu1 %v7327_v1  ;;  %3769 = vmatprep.subr.bf16.mxu0 %v2972_v58  ;;  %v2989_v1 = vunpack.c.h.s8.bf16 %v5490_v14  ;;  %v3036_v58 = vunpack.c.h.s8.bf16 %v5513_v55  ;;  %v5522_v14 = vld [vmem:[%s6835_s7 + $0xb70] sm:$0xff]  ;;  %v5545_v55 = vld [vmem:[%s6835_s7 + $0xc28] sm:$0xff] }
 0x56b   : > { %3933 = vmatprep.subr.bf16.mxu1 %v2974_v7  ;;  %v5521_v7 = vld [vmem:[%s6835_s7 + $0xb68] sm:$0xff] }
 0x56c   : > { %3770 = vmatpush1.bf16.msra.mxu0 %v2971_v9  ;;  %v3035_v9 = vunpack.c.h.s8.bf16 %v5512_v3  ;;  %v5544_v3 = vld [vmem:[%s6835_s7 + $0xc20] sm:$0xff] }
 0x56d   : > { %3934 = vmatpush1.bf16.msra.mxu1 %v2973_v61  ;;  %3771 = vmatprep.subr.bf16.mxu0 %v2980_v11  ;;  %v3037_v61 = vunpack.c.h.s8.bf16 %v5514_v53  ;;  %v3044_v11 = vunpack.c.l.s8.bf16 %v5521_v7  ;;  %v5546_v53 = vld [vmem:[%s6835_s7 + $0xc30] sm:$0xff] }
 0x56e   : > { %3935 = vmatprep.subr.bf16.mxu1 %v2982_v13  ;;  %v3046_v13 = vunpack.c.l.s8.bf16 %v5523_v8 }
 0x570   : > { %3772 = vmatpush1.bf16.msra.mxu0 %v2979_v4  ;;  %v3043_v4 = vunpack.c.l.s8.bf16 %v5520_v12 }
 0x571   : > { %3936 = vmatpush1.bf16.msra.mxu1 %v2981_v62  ;;  %3773 = vmatprep.subr.bf16.mxu0 %v2988_v19  ;;  %v3045_v62 = vunpack.c.l.s8.bf16 %v5522_v14  ;;  %v3052_v19 = vunpack.c.h.s8.bf16 %v5521_v7  ;;  %v3102_v7 = vunpack.c.h.s8.bf16 %v5547_v45 }
 0x572   : > { %3937 = vmatprep.subr.bf16.mxu1 %v2990_v15  ;;  %v3054_v15 = vunpack.c.h.s8.bf16 %v5523_v8  ;;  %v5555_v8 = vld [vmem:[%s6835_s7 + $0xc78] sm:$0xff] }
 0x574   : > { %3774 = vmatpush1.bf16.msra.mxu0 %v2987_v2  ;;  %v3051_v2 = vunpack.c.h.s8.bf16 %v5520_v12  ;;  %v5552_v12 = vld [vmem:[%s6835_s7 + $0xc60] sm:$0xff] }
 0x575   : > { %3938 = vmatpush1.bf16.msra.mxu1 %v2989_v1  ;;  %3775 = vmatprep.subr.bf16.mxu0 %v2996_v18  ;;  %v3053_v1 = vunpack.c.h.s8.bf16 %v5522_v14  ;;  %v3060_v18 = vunpack.c.l.s8.bf16 %v5529_v16  ;;  %v5554_v14 = vld [vmem:[%s6835_s7 + $0xc70] sm:$0xff] }
 0x576   : > { %3939 = vmatprep.subr.bf16.mxu1 %v2998_v21  ;;  %v3062_v21 = vunpack.c.l.s8.bf16 %v5531_v17 }
 0x578   : > { %3776 = vmatpush1.bf16.msra.mxu0 %v2995_v23  ;;  %v3059_v23 = vunpack.c.l.s8.bf16 %v5528_v20 }
 0x579   : > { %3940 = vmatpush1.bf16.msra.mxu1 %v2997_v25  ;;  %3777 = vmatprep.subr.bf16.mxu0 %v3004_v10  ;;  %v3061_v25 = vunpack.c.l.s8.bf16 %v5530_v22  ;;  %v3068_v10 = vunpack.c.h.s8.bf16 %v5529_v16  ;;  %v5563_v16 = vld [vmem:[%s6835_s7 + $0xcb8] sm:$0xff] }
 0x57a   : > { %3941 = vmatprep.subr.bf16.mxu1 %v3006_v26  ;;  %v3070_v26 = vunpack.c.h.s8.bf16 %v5531_v17  ;;  %v3115_v17 = vunpack.c.h.s8.bf16 %v5552_v12 }
 0x57c   : > { %3778 = vmatpush1.bf16.msra.mxu0 %v3003_v27  ;;  %v3067_v27 = vunpack.c.h.s8.bf16 %v5528_v20  ;;  %v5562_v20 = vld [vmem:[%s6835_s7 + $0xcb0] sm:$0xff] }
 0x57d   : > { %3942 = vmatpush1.bf16.msra.mxu1 %v3005_v28  ;;  %3779 = vmatprep.subr.bf16.mxu0 %v3012_v32  ;;  %v3069_v28 = vunpack.c.h.s8.bf16 %v5530_v22  ;;  %v3076_v32 = vunpack.c.l.s8.bf16 %v5537_v24  ;;  %v3125_v22 = vunpack.c.l.s8.bf16 %v5562_v20 }
 0x57e   : > { %3943 = vmatprep.subr.bf16.mxu1 %v3014_v35  ;;  %v3078_v35 = vunpack.c.l.s8.bf16 %v5539_v30 }
 0x580   : > { %3780 = vmatpush1.bf16.msra.mxu0 %v3011_v38  ;;  %v3075_v38 = vunpack.c.l.s8.bf16 %v5536_v34 }
 0x581   : > { %3944 = vmatpush1.bf16.msra.mxu1 %v3013_v46  ;;  %3781 = vmatprep.subr.bf16.mxu0 %v3020_v47  ;;  %v3077_v46 = vunpack.c.l.s8.bf16 %v5538_v36  ;;  %v3084_v47 = vunpack.c.h.s8.bf16 %v5537_v24 }
 0x582   : > { %3945 = vmatprep.subr.bf16.mxu1 %v3022_v48  ;;  %v3086_v48 = vunpack.c.h.s8.bf16 %v5539_v30  ;;  %v3133_v30 = vunpack.c.h.s8.bf16 %v5562_v20 }
 0x584   : > { %3782 = vmatpush1.bf16.msra.mxu0 %v3019_v63  ;;  %v3083_v63 = vunpack.c.h.s8.bf16 %v5536_v34  ;;  %v5570_v34 = vld [vmem:[%s6835_s7 + $0xcf0] sm:$0xff] }
 0x585   : > { %3946 = vmatpush1.bf16.msra.mxu1 %v3021_v49  ;;  %3783 = vmatprep.subr.bf16.mxu0 %v3028_v0  ;;  %v3085_v49 = vunpack.c.h.s8.bf16 %v5538_v36  ;;  %v3092_v0 = vunpack.c.l.s8.bf16 %v5545_v55  ;;  %v3141_v36 = vunpack.c.l.s8.bf16 %v5570_v34 }
 0x586   : > { %3947 = vmatprep.subr.bf16.mxu1 %v3030_v31  ;;  %v3094_v31 = vunpack.c.l.s8.bf16 %v5547_v45  ;;  %v3149_v45 = vunpack.c.h.s8.bf16 %v5570_v34 }
 0x588   : > { %3784 = vmatpush1.bf16.msra.mxu0 %v3027_v33  ;;  %v3091_v33 = vunpack.c.l.s8.bf16 %v5544_v3 }
 0x589   : > { %3948 = vmatpush1.bf16.msra.mxu1 %v3029_v6  ;;  %3785 = vmatprep.subr.bf16.mxu0 %v3036_v58  ;;  %v3093_v6 = vunpack.c.l.s8.bf16 %v5546_v53  ;;  %v3100_v58 = vunpack.c.h.s8.bf16 %v5545_v55 }
 0x58a   : > { %3949 = vmatprep.subr.bf16.mxu1 %v3038_v39  ;;  %v5553_v39 = vld [vmem:[%s6835_s7 + $0xc68] sm:$0xff] }
 0x58c   : > { %3786 = vmatpush1.bf16.msra.mxu0 %v3035_v9  ;;  %v3099_v9 = vunpack.c.h.s8.bf16 %v5544_v3  ;;  %v5578_v3 = vld [vmem:[%s6835_s7 + $0xd30] sm:$0xff] }
 0x58d   : > { %3950 = vmatpush1.bf16.msra.mxu1 %v3037_v61  ;;  %3787 = vmatprep.subr.bf16.mxu0 %v3044_v11  ;;  %v3101_v61 = vunpack.c.h.s8.bf16 %v5546_v53  ;;  %v3108_v11 = vunpack.c.l.s8.bf16 %v5553_v39  ;;  %v3157_v53 = vunpack.c.l.s8.bf16 %v5578_v3 }
 0x58e   : > { %3951 = vmatprep.subr.bf16.mxu1 %v3046_v13  ;;  %v3110_v13 = vunpack.c.l.s8.bf16 %v5555_v8 }
 0x590   : > { %3788 = vmatpush1.bf16.msra.mxu0 %v3043_v4  ;;  %v3107_v4 = vunpack.c.l.s8.bf16 %v5552_v12  ;;  %v5586_v12 = vld [vmem:[%s6835_s7 + $0xd70] sm:$0xff] }
 0x591   : > { %3952 = vmatpush1.bf16.msra.mxu1 %v3045_v62  ;;  %3789 = vmatprep.subr.bf16.mxu0 %v3052_v19  ;;  %v3116_v62 = vunpack.c.h.s8.bf16 %v5553_v39  ;;  %v3118_v19 = vunpack.c.h.s8.bf16 %v5555_v8  ;;  %v5587_v39 = vld [vmem:[%s6835_s7 + $0xd78] sm:$0xff]  ;;  %v3165_v8 = vunpack.c.h.s8.bf16 %v5578_v3 }
 0x592   : > { %3953 = vmatprep.subr.bf16.mxu1 %v3054_v15  ;;  %v5561_v15 = vld [vmem:[%s6835_s7 + $0xca8] sm:$0xff] }
 0x594   : > { %3790 = vmatpush1.bf16.msra.mxu0 %v3051_v2  ;;  %v3124_v2 = vunpack.c.l.s8.bf16 %v5561_v15 }
 0x595   : > { %3954 = vmatpush1.bf16.msra.mxu1 %v3053_v1  ;;  %3791 = vmatprep.subr.bf16.mxu0 %v3060_v18  ;;  %v5560_v1 = vld [vmem:[%s6835_s7 + $0xca0] sm:$0xff]  ;;  %v3126_v18 = vunpack.c.l.s8.bf16 %v5563_v16 }
 0x596   : > { %3955 = vmatprep.subr.bf16.mxu1 %v3062_v21  ;;  %v3123_v21 = vunpack.c.l.s8.bf16 %v5560_v1  ;;  %v3131_v24 = vunpack.c.h.s8.bf16 %v5560_v1  ;;  %v5594_v1 = vld [vmem:[%s6835_s7 + $0xdb0] sm:$0xff] }
 0x597   : > { %v3189_v20 = vunpack.c.l.s8.bf16 %v5594_v1 }
 0x598   : > { %3792 = vmatpush1.bf16.msra.mxu0 %v3059_v23  ;;  %v3132_v23 = vunpack.c.h.s8.bf16 %v5561_v15 }
 0x599   : > { %3956 = vmatpush1.bf16.msra.mxu1 %v3061_v25  ;;  %3793 = vmatprep.subr.bf16.mxu0 %v3068_v10  ;;  %v3134_v25 = vunpack.c.h.s8.bf16 %v5563_v16  ;;  %v5569_v10 = vld [vmem:[%s6835_s7 + $0xce8] sm:$0xff]  ;;  %v3181_v16 = vunpack.c.h.s8.bf16 %v5586_v12 }
 0x59a   : > { %3957 = vmatprep.subr.bf16.mxu1 %v3070_v26  ;;  %v5571_v26 = vld [vmem:[%s6835_s7 + $0xcf8] sm:$0xff] }
 0x59c   : > { %3794 = vmatpush1.bf16.msra.mxu0 %v3067_v27  ;;  %v3140_v27 = vunpack.c.l.s8.bf16 %v5569_v10 }
 0x59d   : > { %3958 = vmatpush1.bf16.msra.mxu1 %v3069_v28  ;;  %3795 = vmatprep.subr.bf16.mxu0 %v3076_v32  ;;  %v5568_v28 = vld [vmem:[%s6835_s7 + $0xce0] sm:$0xff]  ;;  %v3142_v32 = vunpack.c.l.s8.bf16 %v5571_v26 }
 0x59e   : > { %3959 = vmatprep.subr.bf16.mxu1 %v3078_v35  ;;  %v3139_v35 = vunpack.c.l.s8.bf16 %v5568_v28  ;;  %v3147_v55 = vunpack.c.h.s8.bf16 %v5568_v28  ;;  %v5602_v28 = vld [vmem:[%s6835_s7 + $0xdf0] sm:$0xff] }
 0x59f   : > { %v3205_v34 = vunpack.c.l.s8.bf16 %v5602_v28 }
 0x5a0   : > { %3796 = vmatpush1.bf16.msra.mxu0 %v3075_v38  ;;  %v3148_v38 = vunpack.c.h.s8.bf16 %v5569_v10 }
 0x5a1   : > { %3960 = vmatpush1.bf16.msra.mxu1 %v3077_v46  ;;  %3797 = vmatprep.subr.bf16.mxu0 %v3084_v47  ;;  %v3150_v46 = vunpack.c.h.s8.bf16 %v5571_v26  ;;  %v5577_v47 = vld [vmem:[%s6835_s7 + $0xd28] sm:$0xff]  ;;  %v3197_v26 = vunpack.c.h.s8.bf16 %v5594_v1 }
 0x5a2   : > { %3961 = vmatprep.subr.bf16.mxu1 %v3086_v48  ;;  %v5579_v48 = vld [vmem:[%s6835_s7 + $0xd38] sm:$0xff] }
 0x5a4   : > { %3798 = vmatpush1.bf16.msra.mxu0 %v3083_v63  ;;  %v3156_v63 = vunpack.c.l.s8.bf16 %v5577_v47 }
 0x5a5   : > { %3962 = vmatpush1.bf16.msra.mxu1 %v3085_v49  ;;  %3808 = vmatprep.subr.bf16.mxu0 %v3092_v0  ;;  %v5576_v49 = vld [vmem:[%s6835_s7 + $0xd20] sm:$0xff]  ;;  %v3158_v0 = vunpack.c.l.s8.bf16 %v5579_v48 }
 0x5a6   : > { %3972 = vmatprep.subr.bf16.mxu1 %v3094_v31  ;;  %v3155_v31 = vunpack.c.l.s8.bf16 %v5576_v49 }
 0x5a7   : > { %3800 = vmatmul.mubr.bf16.vlgmr.msra.gmra.mrb[12].mxu0 %v7365_v56 }
 0x5a8   : > { %3964 = vmatmul.mubr.bf16.vlgmr.msra.gmra.mrb[12].mxu1 %v7365_v56  ;;  %3809 = vmatpush1.bf16.msra.mxu0 %v3091_v33  ;;  %v3109_v56 = vunpack.c.l.s8.bf16 %v5554_v14  ;;  %v3164_v33 = vunpack.c.h.s8.bf16 %v5577_v47 }
 0x5a9   : > { %3840 = vmatprep.mubr.bf16.mxu0 %v7435_v40  ;;  %3973 = vmatpush1.bf16.msra.mxu1 %v3093_v6  ;;  %v3166_v6 = vunpack.c.h.s8.bf16 %v5579_v48  ;;  %v3213_v48 = vunpack.c.h.s8.bf16 %v5602_v28 }
 0x5aa   : > { %4004 = vmatprep.mubr.bf16.mxu1 %v7435_v40  ;;  %3810 = vmatprep.subr.bf16.mxu0 %v3100_v58  ;;  %v3117_v40 = vunpack.c.h.s8.bf16 %v5554_v14  ;;  %v5585_v58 = vld [vmem:[%s6835_s7 + $0xd68] sm:$0xff]  ;;  %v3173_v14 = vunpack.c.l.s8.bf16 %v5586_v12 }
 0x5ab   : > { %3974 = vmatprep.subr.bf16.mxu1 %v3102_v7  ;;  %v3163_v7 = vunpack.c.h.s8.bf16 %v5576_v49  ;;  %v5610_v49 = vld [vmem:[%s6835_s7 + $0xe30] sm:$0xff] }
 0x5ac   : > { %3811 = vmatpush1.bf16.msra.mxu0 %v3099_v9  ;;  %v3172_v9 = vunpack.c.l.s8.bf16 %v5585_v58  ;;  %v3221_v3 = vunpack.c.l.s8.bf16 %v5610_v49 }
 0x5ad   : > { %3975 = vmatpush1.bf16.msra.mxu1 %v3101_v61  ;;  %3812 = vmatprep.subr.bf16.mxu0 %v3108_v11  ;;  %v5584_v61 = vld [vmem:[%s6835_s7 + $0xd60] sm:$0xff]  ;;  %v3174_v11 = vunpack.c.l.s8.bf16 %v5587_v39 }
 0x5ae   : > { %3976 = vmatprep.subr.bf16.mxu1 %v3110_v13  ;;  %v3171_v13 = vunpack.c.l.s8.bf16 %v5584_v61  ;;  %v3179_v15 = vunpack.c.h.s8.bf16 %v5584_v61  ;;  %v5618_v61 = vld [vmem:[%s6835_s7 + $0xe70] sm:$0xff] }
 0x5b0   : > { %3813 = vmatpush1.bf16.msra.mxu0 %v3107_v4  ;;  %v3180_v4 = vunpack.c.h.s8.bf16 %v5585_v58 }
 0x5b1   : > { %3977 = vmatpush1.bf16.msra.mxu1 %v3109_v56  ;;  %3814 = vmatprep.subr.bf16.mxu0 %v3116_v62  ;;  %v3182_v56 = vunpack.c.h.s8.bf16 %v5587_v39  ;;  %v5593_v62 = vld [vmem:[%s6835_s7 + $0xda8] sm:$0xff]  ;;  %v3229_v39 = vunpack.c.h.s8.bf16 %v5610_v49 }
 0x5b2   : > { %3978 = vmatprep.subr.bf16.mxu1 %v3118_v19  ;;  %v5595_v19 = vld [vmem:[%s6835_s7 + $0xdb8] sm:$0xff] }
 0x5b4   : > { %3815 = vmatpush1.bf16.msra.mxu0 %v3115_v17  ;;  %v3188_v17 = vunpack.c.l.s8.bf16 %v5593_v62 }
 0x5b5   : > { %3979 = vmatpush1.bf16.msra.mxu1 %v3117_v40  ;;  %3816 = vmatprep.subr.bf16.mxu0 %v3124_v2  ;;  %v5592_v40 = vld [vmem:[%s6835_s7 + $0xda0] sm:$0xff]  ;;  %v3190_v2 = vunpack.c.l.s8.bf16 %v5595_v19 }
 0x5b6   : > { %3980 = vmatprep.subr.bf16.mxu1 %v3126_v18  ;;  %v3187_v18 = vunpack.c.l.s8.bf16 %v5592_v40  ;;  %v3195_v10 = vunpack.c.h.s8.bf16 %v5592_v40 }
 0x5b8   : > { %3817 = vmatpush1.bf16.msra.mxu0 %v3123_v21  ;;  %v3196_v21 = vunpack.c.h.s8.bf16 %v5593_v62  ;;  %v3245_v62 = vunpack.c.h.s8.bf16 %v5618_v61 }
 0x5b9   : > { %3981 = vmatpush1.bf16.msra.mxu1 %v3125_v22  ;;  %3818 = vmatprep.subr.bf16.mxu0 %v3132_v23  ;;  %v3198_v22 = vunpack.c.h.s8.bf16 %v5595_v19  ;;  %v5601_v23 = vld [vmem:[%s6835_s7 + $0xde8] sm:$0xff] }
 0x5ba   : > { %3982 = vmatprep.subr.bf16.mxu1 %v3134_v25  ;;  %v5603_v25 = vld [vmem:[%s6835_s7 + $0xdf8] sm:$0xff] }
 0x5bc   : > { %3819 = vmatpush1.bf16.msra.mxu0 %v3131_v24  ;;  %v3204_v24 = vunpack.c.l.s8.bf16 %v5601_v23 }
 0x5bd   : > { %3983 = vmatpush1.bf16.msra.mxu1 %v3133_v30  ;;  %3820 = vmatprep.subr.bf16.mxu0 %v3140_v27  ;;  %v5600_v30 = vld [vmem:[%s6835_s7 + $0xde0] sm:$0xff]  ;;  %v3206_v27 = vunpack.c.l.s8.bf16 %v5603_v25 }
 0x5be   : > { %3984 = vmatprep.subr.bf16.mxu1 %v3142_v32  ;;  %v3203_v32 = vunpack.c.l.s8.bf16 %v5600_v30  ;;  %v3211_v47 = vunpack.c.h.s8.bf16 %v5600_v30  ;;  %v5633_v30 = vld [vmem:[%s6835_s7 + $0xee8] sm:$0xff] }
 0x5c0   : > { %3821 = vmatpush1.bf16.msra.mxu0 %v3139_v35  ;;  %v3212_v35 = vunpack.c.h.s8.bf16 %v5601_v23 }
 0x5c1   : > { %3985 = vmatpush1.bf16.msra.mxu1 %v3141_v36  ;;  %3822 = vmatprep.subr.bf16.mxu0 %v3148_v38  ;;  %v3214_v36 = vunpack.c.h.s8.bf16 %v5603_v25  ;;  %v5609_v38 = vld [vmem:[%s6835_s7 + $0xe28] sm:$0xff] }
 0x5c2   : > { %3986 = vmatprep.subr.bf16.mxu1 %v3150_v46  ;;  %v5611_v46 = vld [vmem:[%s6835_s7 + $0xe38] sm:$0xff] }
 0x5c4   : > { %3823 = vmatpush1.bf16.msra.mxu0 %v3147_v55  ;;  %v3220_v55 = vunpack.c.l.s8.bf16 %v5609_v38 }
 0x5c5   : > { %3987 = vmatpush1.bf16.msra.mxu1 %v3149_v45  ;;  %3824 = vmatprep.subr.bf16.mxu0 %v3156_v63  ;;  %v5608_v45 = vld [vmem:[%s6835_s7 + $0xe20] sm:$0xff]  ;;  %v3222_v63 = vunpack.c.l.s8.bf16 %v5611_v46 }
 0x5c6   : > { %3988 = vmatprep.subr.bf16.mxu1 %v3158_v0  ;;  %v3219_v0 = vunpack.c.l.s8.bf16 %v5608_v45  ;;  %v3227_v58 = vunpack.c.h.s8.bf16 %v5608_v45 }
 0x5c8   : > { %3825 = vmatpush1.bf16.msra.mxu0 %v3155_v31  ;;  %v3228_v31 = vunpack.c.h.s8.bf16 %v5609_v38 }
 0x5c9   : > { %3989 = vmatpush1.bf16.msra.mxu1 %v3157_v53  ;;  %3826 = vmatprep.subr.bf16.mxu0 %v3164_v33  ;;  %v5617_v53 = vld [vmem:[%s6835_s7 + $0xe68] sm:$0xff]  ;;  %v3230_v33 = vunpack.c.h.s8.bf16 %v5611_v46 }
 0x5ca   : > { %3990 = vmatprep.subr.bf16.mxu1 %v3166_v6  ;;  %v5619_v6 = vld [vmem:[%s6835_s7 + $0xe78] sm:$0xff]  ;;  %v3244_v12 = vunpack.c.h.s8.bf16 %v5617_v53 }
 0x5cc   : > { %3827 = vmatpush1.bf16.msra.mxu0 %v3163_v7  ;;  %v3236_v7 = vunpack.c.l.s8.bf16 %v5617_v53 }
 0x5cd   : > { %3991 = vmatpush1.bf16.msra.mxu1 %v3165_v8  ;;  %3828 = vmatprep.subr.bf16.mxu0 %v3172_v9  ;;  %v5616_v8 = vld [vmem:[%s6835_s7 + $0xe60] sm:$0xff]  ;;  %v3238_v9 = vunpack.c.l.s8.bf16 %v5619_v6 }
 0x5ce   : > { %3992 = vmatprep.subr.bf16.mxu1 %v3174_v11  ;;  %v3235_v11 = vunpack.c.l.s8.bf16 %v5616_v8 }
 0x5d0   : > { %3829 = vmatpush1.bf16.msra.mxu0 %v3171_v13  ;;  %v3246_v13 = vunpack.c.h.s8.bf16 %v5619_v6 }
 0x5d1   : > { %3993 = vmatpush1.bf16.msra.mxu1 %v3173_v14  ;;  %3830 = vmatprep.subr.bf16.mxu0 %v3180_v4  ;;  %v5625_v14 = vld [vmem:[%s6835_s7 + $0xea8] sm:$0xff]  ;;  %v5627_v4 = vld [vmem:[%s6835_s7 + $0xeb8] sm:$0xff] }
 0x5d2   : > { %3994 = vmatprep.subr.bf16.mxu1 %v3182_v56  ;;  %v3243_v56 = vunpack.c.h.s8.bf16 %v5616_v8  ;;  %v3252_v19 = vunpack.c.l.s8.bf16 %v5625_v14  ;;  %v3260_v25 = vunpack.c.h.s8.bf16 %v5625_v14 }
 0x5d4   : > { %3831 = vmatpush1.bf16.msra.mxu0 %v3179_v15  ;;  %v5624_v15 = vld [vmem:[%s6835_s7 + $0xea0] sm:$0xff] }
 0x5d5   : > { %3995 = vmatpush1.bf16.msra.mxu1 %v3181_v16  ;;  %3832 = vmatprep.subr.bf16.mxu0 %v3188_v17  ;;  %v3254_v16 = vunpack.c.l.s8.bf16 %v5627_v4  ;;  %v5626_v17 = vld [vmem:[%s6835_s7 + $0xeb0] sm:$0xff]  ;;  %v3251_v1 = vunpack.c.l.s8.bf16 %v5624_v15 }
 0x5d6   : > { %3996 = vmatprep.subr.bf16.mxu1 %v3190_v2 }
 0x5d8   : > { %3833 = vmatpush1.bf16.msra.mxu0 %v3187_v18 }
 0x5d9   : > { %3997 = vmatpush1.bf16.msra.mxu1 %v3189_v20  ;;  %3834 = vmatprep.subr.bf16.mxu0 %v3196_v21  ;;  %v3253_v21 = vunpack.c.l.s8.bf16 %v5626_v17 }
 0x5da   : > { %3998 = vmatprep.subr.bf16.mxu1 %v3198_v22 }
 0x5dc   : > { %3835 = vmatpush1.bf16.msra.mxu0 %v3195_v10 }
 0x5dd   : > { %3999 = vmatpush1.bf16.msra.mxu1 %v3197_v26  ;;  %3836 = vmatprep.subr.bf16.mxu0 %v3204_v24  ;;  %v3262_v24 = vunpack.c.h.s8.bf16 %v5627_v4  ;;  %v3276_v4 = vunpack.c.h.s8.bf16 %v5633_v30 }
 0x5de   : > { %4000 = vmatprep.subr.bf16.mxu1 %v3206_v27 }
 0x5e0   : > { %3837 = vmatpush1.bf16.msra.mxu0 %v3203_v32  ;;  %v5635_v32 = vld [vmem:[%s6835_s7 + $0xef8] sm:$0xff] }
 0x5e1   : > { %4001 = vmatpush1.bf16.msra.mxu1 %v3205_v34  ;;  %3838 = vmatprep.subr.bf16.mxu0 %v3212_v35 }
 0x5e2   : > { %4002 = vmatprep.subr.bf16.mxu1 %v3214_v36  ;;  %v3259_v36 = vunpack.c.h.s8.bf16 %v5624_v15 }
 0x5e4   : > { %3839 = vmatpush1.bf16.msra.mxu0 %v3211_v47  ;;  %v3261_v47 = vunpack.c.h.s8.bf16 %v5626_v17  ;;  %v5643_v17 = vld [vmem:[%s6835_s7 + $0xf38] sm:$0xff] }
 0x5e5   : > { %4003 = vmatpush1.bf16.msra.mxu1 %v3213_v48  ;;  %3849 = vmatprep.subr.bf16.mxu0 %v3220_v55  ;;  %v3268_v48 = vunpack.c.l.s8.bf16 %v5633_v30  ;;  %v5632_v55 = vld [vmem:[%s6835_s7 + $0xee0] sm:$0xff] }
 0x5e6   : > { %4013 = vmatprep.subr.bf16.mxu1 %v3222_v63 }
 0x5e7   : > { %3841 = vmatmul.mubr.bf16.vlgmr.msra.gmra.mrb[12].mxu0 %v7439_v50 }
 0x5e8   : > { %4005 = vmatmul.mubr.bf16.vlgmr.msra.gmra.mrb[12].mxu1 %v7439_v50  ;;  %3850 = vmatpush1.bf16.msra.mxu0 %v3219_v0  ;;  %v3237_v50 = vunpack.c.l.s8.bf16 %v5618_v61  ;;  %v3267_v61 = vunpack.c.l.s8.bf16 %v5632_v55 }
 0x5e9   : > { %3881 = vmatprep.mubr.bf16.mxu0 %v7443_v59  ;;  %4014 = vmatpush1.bf16.msra.mxu1 %v3221_v3  ;;  %v3270_v3 = vunpack.c.l.s8.bf16 %v5635_v32 }
 0x5ea   : > { %4045 = vmatprep.mubr.bf16.mxu1 %v7443_v59  ;;  %3851 = vmatprep.subr.bf16.mxu0 %v3228_v31  ;;  %v5668_v59 = vld [vmem:[%s6863_s0 + $0x10] sm:$0xff] }
 0x5eb   : > { %4015 = vmatprep.subr.bf16.mxu1 %v3230_v33  ;;  %v4059_v40 = vrot.slane %v5668_v59, %v7200_v37  ;;  %v4067_v2 = vrot.slane %v5668_v59, %v7203_v41  ;;  %v4063_v18 = vrot.slane %v5668_v59, %v7207_v43  ;;  %v4071_v20 = vrot.slane %v5668_v59, %v7210_v44  ;;  %v5634_v31 = vld [vmem:[%s6835_s7 + $0xef0] sm:$0xff] }
 0x5ec   : > { %3852 = vmatpush1.bf16.msra.mxu0 %v3227_v58  ;;  %v4139_v22 = vrot.slane %v5668_v59, %v7215_v51  ;;  %v4147_v23 = vrot.slane %v5668_v59, %v7218_v52  ;;  %v4143_v10 = vrot.slane %v5668_v59, %v7221_v57  ;;  %v4151_v26 = vrot.slane %v5668_v59, %v7224_v54 }
 0x5ed   : > { %4016 = vmatpush1.bf16.msra.mxu1 %v3229_v39  ;;  %3853 = vmatprep.subr.bf16.mxu0 %v3236_v7  ;;  %v4099_v27 = vrot.slane %v4059_v40, %v7200_v37  ;;  %v4107_v28 = vrot.slane %v4067_v2, %v7200_v37  ;;  %v4103_v34 = vrot.slane %v4063_v18, %v7200_v37  ;;  %v3269_v14 = vunpack.c.l.s8.bf16 %v5634_v31 }
 0x5ee   : > { %4017 = vmatprep.subr.bf16.mxu1 %v3238_v9  ;;  %v4111_v35 = vrot.slane %v4071_v20, %v7200_v37  ;;  %v4179_v38 = vrot.slane %v4139_v22, %v7215_v51  ;;  %v4187_v46 = vrot.slane %v4147_v23, %v7215_v51  ;;  %v4183_v49 = vrot.slane %v4143_v10, %v7215_v51  ;;  %v5642_v10 = vld [vmem:[%s6835_s7 + $0xf30] sm:$0xff] }
 0x5ef   : > { %v4191_v0 = vrot.slane %v4151_v26, %v7215_v51  ;;  %v3277_v18 = vunpack.c.h.s8.bf16 %v5634_v31  ;;  %v5657_v31 = vld [vmem:[%s6835_s7 + $0xfa8] sm:$0xff] }
 0x5f0   : > { %3854 = vmatpush1.bf16.msra.mxu0 %v3235_v11 }
 0x5f1   : > { %4018 = vmatpush1.bf16.msra.mxu1 %v3237_v50  ;;  %3855 = vmatprep.subr.bf16.mxu0 %v3244_v12 }
 0x5f2   : > { %4019 = vmatprep.subr.bf16.mxu1 %v3246_v13 }
 0x5f4   : > { %3856 = vmatpush1.bf16.msra.mxu0 %v3243_v56 }
 0x5f5   : > { %4020 = vmatpush1.bf16.msra.mxu1 %v3245_v62  ;;  %3857 = vmatprep.subr.bf16.mxu0 %v3252_v19  ;;  %v3278_v62 = vunpack.c.h.s8.bf16 %v5635_v32  ;;  %v5641_v19 = vld [vmem:[%s6835_s7 + $0xf28] sm:$0xff] }
 0x5f6   : > { %4021 = vmatprep.subr.bf16.mxu1 %v3254_v16  ;;  %v3284_v20 = vunpack.c.l.s8.bf16 %v5641_v19 }
 0x5f8   : > { %3858 = vmatpush1.bf16.msra.mxu0 %v3251_v1  ;;  %v3275_v1 = vunpack.c.h.s8.bf16 %v5632_v55  ;;  %v5648_v55 = vld [vmem:[%s6835_s7 + $0xf60] sm:$0xff] }
 0x5f9   : > { %4022 = vmatpush1.bf16.msra.mxu1 %v3253_v21  ;;  %3859 = vmatprep.subr.bf16.mxu0 %v3260_v25  ;;  %v5640_v21 = vld [vmem:[%s6835_s7 + $0xf20] sm:$0xff]  ;;  %v3286_v25 = vunpack.c.l.s8.bf16 %v5643_v17 }
 0x5fa   : > { %v3555_v45 = vpop.f32.mrb[8].mxu0  ;;  %v3719_v63 = vpop.f32.mrb[8].mxu1  ;;  %4023 = vmatprep.subr.bf16.mxu1 %v3262_v24  ;;  %v3283_v30 = vunpack.c.l.s8.bf16 %v5640_v21 }
 0x5fb   : > { %v4128_v53 = vmul.f32 %v4099_v27, %v3555_v45  ;;  %v4130_v33 = vmul.f32 %v4107_v28, %v3719_v63  ;;  %v3557_v6 = vpop.f32.mrb[9].mxu0  ;;  %v3721_v58 = vpop.f32.mrb[9].mxu1  ;;  %v3285_v27 = vunpack.c.l.s8.bf16 %v5642_v10  ;;  %v3292_v28 = vunpack.c.h.s8.bf16 %v5641_v19  ;;  %v5650_v63 = vld [vmem:[%s6835_s7 + $0xf70] sm:$0xff] }
 0x5fc   : > { %v4129_v39 = vmul.f32 %v4103_v34, %v3557_v6  ;;  %v4131_v7 = vmul.f32 %v4111_v35, %v3721_v58  ;;  %v3559_v8 = vpop.f32.mrb[10].mxu0  ;;  %v3723_v9 = vpop.f32.mrb[10].mxu1  ;;  %3860 = vmatpush1.bf16.msra.mxu0 %v3259_v36  ;;  %v3294_v34 = vunpack.c.h.s8.bf16 %v5643_v17  ;;  %v5649_v35 = vld [vmem:[%s6835_s7 + $0xf68] sm:$0xff]  ;;  %v5651_v36 = vld [vmem:[%s6835_s7 + $0xf78] sm:$0xff]  ;;  %v3309_v6 = vunpack.c.h.s8.bf16 %v5650_v63  ;;  %v5666_v19 = vld [vmem:[%s6835_s7 + $0xff0] sm:$0xff] }
 0x5fd   : > { %v4208_v11 = vadd.f32 %v4179_v38, %v4128_v53  ;;  %v4210_v50 = vadd.f32 %v4187_v46, %v4130_v33  ;;  %4024 = vmatpush1.bf16.msra.mxu1 %v3261_v47  ;;  %v3560_v12 = vpop.f32.mrb[11].mxu0  ;;  %v3724_v13 = vpop.f32.mrb[11].mxu1  ;;  %3861 = vmatprep.subr.bf16.mxu0 %v3268_v48  ;;  %v3291_v46 = vunpack.c.h.s8.bf16 %v5640_v21  ;;  %v3293_v47 = vunpack.c.h.s8.bf16 %v5642_v10  ;;  %v5659_v53 = vld [vmem:[%s6835_s7 + $0xfb8] sm:$0xff]  ;;  %v5658_v8 = vld [vmem:[%s6835_s7 + $0xfb0] sm:$0xff] }
 0x5fe   : > { %v4209_v56 = vadd.f32 %v4183_v49, %v4129_v39  ;;  %v4211_v59 = vadd.f32 %v4191_v0, %v4131_v7  ;;  %4025 = vmatprep.subr.bf16.mxu1 %v3270_v3  ;;  %v3300_v48 = vunpack.c.l.s8.bf16 %v5649_v35  ;;  %v3302_v45 = vunpack.c.l.s8.bf16 %v5651_v36  ;;  %v5656_v39 = vld [vmem:[%s6835_s7 + $0xfa0] sm:$0xff]  ;;  %v5665_v12 = vld [vmem:[%s6835_s7 + $0xfe8] sm:$0xff]  ;;  %v5667_v13 = vld [vmem:[%s6835_s7 + $0xff8] sm:$0xff] }
 0x5ff   : > { %v4216_v15 = vmax.f32 %v4208_v11, 0.0  ;;  %v4218_v16 = vmax.f32 %v4210_v50, 0.0  ;;  %v3299_v49 = vunpack.c.l.s8.bf16 %v5648_v55  ;;  %v3308_v0 = vunpack.c.h.s8.bf16 %v5649_v35 }
 0x600   : > { %v4217_v40 = vmax.f32 %v4209_v56, 0.0  ;;  %v4219_v2 = vmax.f32 %v4211_v59, 0.0  ;;  %3862 = vmatpush1.bf16.msra.mxu0 %v3267_v61  ;;  %v3310_v3 = vunpack.c.h.s8.bf16 %v5651_v36  ;;  %v3307_v33 = vunpack.c.h.s8.bf16 %v5648_v55  ;;  %v5664_v59 = vld [vmem:[%s6835_s7 + $0xfe0] sm:$0xff] }
 0x601   : > { %4026 = vmatpush1.bf16.msra.mxu1 %v3269_v14  ;;  %3863 = vmatprep.subr.bf16.mxu0 %v3276_v4  ;;  %v3316_v58 = vunpack.c.l.s8.bf16 %v5657_v31  ;;  %v3318_v7 = vunpack.c.l.s8.bf16 %v5659_v53  ;;  %v3315_v9 = vunpack.c.l.s8.bf16 %v5656_v39  ;;  %v3317_v61 = vunpack.c.l.s8.bf16 %v5658_v8 }
 0x602   : > { %v4232_v22 = vcombine.low %v4216_v15, %v4217_v40  ;;  %v4233_v23 = vcombine.low %v4218_v16, %v4219_v2  ;;  %4027 = vmatprep.subr.bf16.mxu1 %v3278_v62  ;;  %v3324_v11 = vunpack.c.h.s8.bf16 %v5657_v31  ;;  %v3326_v50 = vunpack.c.h.s8.bf16 %v5659_v53 }
 0x603   : > { %v3323_v14 = vunpack.c.h.s8.bf16 %v5656_v39  ;;  %v3325_v4 = vunpack.c.h.s8.bf16 %v5658_v8  ;;  %v3332_v56 = vunpack.c.l.s8.bf16 %v5665_v12  ;;  %v3334_v62 = vunpack.c.l.s8.bf16 %v5667_v13 }
 0x604   : > { %v4240_v26 = vrot.slane %v4232_v22, %v6897_v60  ;;  %v4247_v24 = vrot.slane %v4233_v23, %v6897_v60  ;;  %3864 = vmatpush1.bf16.msra.mxu0 %v3275_v1  ;;  %v3331_v15 = vunpack.c.l.s8.bf16 %v5664_v59  ;;  %v3333_v16 = vunpack.c.l.s8.bf16 %v5666_v19 }
 0x605   : > { %4028 = vmatpush1.bf16.msra.mxu1 %v3277_v18  ;;  %3865 = vmatprep.subr.bf16.mxu0 %v3284_v20  ;;  %v3340_v17 = vunpack.c.h.s8.bf16 %v5665_v12  ;;  %v3342_v40 = vunpack.c.h.s8.bf16 %v5667_v13  ;;  %v3339_v2 = vunpack.c.h.s8.bf16 %v5664_v59  ;;  %v3341_v1 = vunpack.c.h.s8.bf16 %v5666_v19  ;;  %v5669_v18 = vld [vmem:[%s6863_s0 + $0x18] sm:$0xff]  ;;  %v6086_v59 = vld [vmem:[%s6846_s24 + $0x48] sm:$0xff] (!%p5670_p4)  }
 0x606   : > { %v4248_v32 = vcombine.low %v4240_v26, %v4247_v24  ;;  %4029 = vmatprep.subr.bf16.mxu1 %v3286_v25  ;;  %v4075_v20 = vrot.slane %v5669_v18, %v7200_v37  ;;  %v4083_v21 = vrot.slane %v5669_v18, %v7203_v41  ;;  %v4079_v22 = vrot.slane %v5669_v18, %v7207_v43  ;;  %v6083_v12 = vld [vmem:[%s6846_s24 + $0xc0] sm:$0xff] (!%p5670_p4)   ;;  %v6087_v19 = vld [vmem:[%s6846_s24 + $0xc8] sm:$0xff] (!%p5670_p4)  }
 0x607   : > { %v4155_v23 = vrot.slane %v5669_v18, %v7215_v51  ;;  %v4087_v25 = vrot.slane %v5669_v18, %v7210_v44  ;;  %v4163_v10 = vrot.slane %v5669_v18, %v7218_v52  ;;  %v4159_v26 = vrot.slane %v5669_v18, %v7221_v57  ;;  %v6084_v13 = vld [vmem:[%s6846_s24] sm:$0xff] (!%p5670_p4)  }
 0x608   : > { %v7637_v38 = vadd.f32 %v4248_v32, %v7264_v5  ;;  %3866 = vmatpush1.bf16.msra.mxu0 %v3283_v30  ;;  %v3301_v5 = vunpack.c.l.s8.bf16 %v5650_v63  ;;  %v4115_v24 = vrot.slane %v4075_v20, %v7200_v37  ;;  %v4167_v30 = vrot.slane %v5669_v18, %v7224_v54  ;;  %v6093_v18 = vld [vmem:[%s6846_s24 + $0x90] sm:$0xff] (!%p5670_p4)   ;;  %v6094_v20 = vld [vmem:[%s6846_s24 + $0x58] sm:$0xff] (!%p5670_p4)  }
 0x609   : > { %4030 = vmatpush1.bf16.msra.mxu1 %v3285_v27  ;;  %3867 = vmatprep.subr.bf16.mxu0 %v3292_v28  ;;  %v4119_v27 = vrot.slane %v4079_v22, %v7200_v37  ;;  %v4195_v41 = vrot.slane %v4155_v23, %v7215_v51  ;;  %v4127_v43 = vrot.slane %v4087_v25, %v7200_v37  ;;  %v6096_v22 = vld [vmem:[%s6846_s24 + $0x18] sm:$0xff] (!%p5670_p4)   ;;  %v6098_v25 = vld [vmem:[%s6846_s24 + $0x60] sm:$0xff] (!%p5670_p4)  }
 0x60a   : > { %4270 = vst [vmem:[#allocation2] sm:$0xff] %v7637_v38  ;;  %4031 = vmatprep.subr.bf16.mxu1 %v3294_v34  ;;  %v4203_v32 = vrot.slane %v4163_v10, %v7215_v51  ;;  %v4199_v44 = vrot.slane %v4159_v26, %v7215_v51  ;;  %v4207_v35 = vrot.slane %v4167_v30, %v7215_v51  ;;  %v6097_v23 = vld [vmem:[%s6846_s24 + $0x98] sm:$0xff] (!%p5670_p4)   ;;  %v6099_v10 = vld [vmem:[%s6846_s24 + $0xe0] sm:$0xff] (!%p5670_p4)   ;;  %v6102_v30 = vld [vmem:[%s6846_s24 + $0x68] sm:$0xff] (!%p5670_p4)  }
 0x60b   : > { %v6100_v26 = vld [vmem:[%s6846_s24 + $0x20] sm:$0xff] (!%p5670_p4)  }
 0x60c   : > { %3868 = vmatpush1.bf16.msra.mxu0 %v3291_v46 }
 0x60d   : > { %4032 = vmatpush1.bf16.msra.mxu1 %v3293_v47  ;;  %3869 = vmatprep.subr.bf16.mxu0 %v3300_v48 }
 0x60e   : > { %4033 = vmatprep.subr.bf16.mxu1 %v3302_v45 }
 0x610   : > { %3870 = vmatpush1.bf16.msra.mxu0 %v3299_v49 }
 0x611   : > { %4034 = vmatpush1.bf16.msra.mxu1 %v3301_v5  ;;  %3871 = vmatprep.subr.bf16.mxu0 %v3308_v0 }
 0x612   : > { %4035 = vmatprep.subr.bf16.mxu1 %v3310_v3 }
 0x614   : > { %3872 = vmatpush1.bf16.msra.mxu0 %v3307_v33 }
 0x615   : > { %4036 = vmatpush1.bf16.msra.mxu1 %v3309_v6  ;;  %3873 = vmatprep.subr.bf16.mxu0 %v3316_v58 }
 0x616   : > { %4037 = vmatprep.subr.bf16.mxu1 %v3318_v7 }
 0x618   : > { %3874 = vmatpush1.bf16.msra.mxu0 %v3315_v9 }
 0x619   : > { %4038 = vmatpush1.bf16.msra.mxu1 %v3317_v61  ;;  %3875 = vmatprep.subr.bf16.mxu0 %v3324_v11  ;;  %v6082_v11 = vld [vmem:[%s6846_s24 + $0x40] sm:$0xff] (!%p5670_p4)  }
 0x61a   : > { %4039 = vmatprep.subr.bf16.mxu1 %v3326_v50  ;;  %v7679_v50 = vrot.slane (!%p5670_p4), %v7637_v38, %v6897_v60 }
 0x61c   : > { %3876 = vmatpush1.bf16.msra.mxu0 %v3323_v14  ;;  %v4293_v14 = vcombine.high (!%p5670_p4), %v7679_v50, %v7679_v50 }
 0x61d   : > { %4040 = vmatpush1.bf16.msra.mxu1 %v3325_v4  ;;  %3877 = vmatprep.subr.bf16.mxu0 %v3332_v56  ;;  %v6085_v56 = vld [vmem:[%s6846_s24 + $0x80] sm:$0xff] (!%p5670_p4)  }
 0x61e   : > { %4041 = vmatprep.subr.bf16.mxu1 %v3334_v62  ;;  %v4321_v62 = vpack.c.bf16 (!%p5670_p4), %v4293_v14, %v4293_v14  ;;  %v6133_v14 = vld [vmem:[%s6846_s24 + $0x1a0] sm:$0xff] (!%p5670_p4)  }
 0x620   : > { %3878 = vmatpush1.bf16.msra.mxu0 %v3331_v15  ;;  %v6088_v15 = vld [vmem:[%s6846_s24 + $0x8] sm:$0xff] (!%p5670_p4)  }
 0x621   : > { %4042 = vmatpush1.bf16.msra.mxu1 %v3333_v16  ;;  %3879 = vmatprep.subr.bf16.mxu0 %v3340_v17  ;;  %v6089_v17 = vld [vmem:[%s6846_s24 + $0x88] sm:$0xff] (!%p5670_p4)  }
 0x622   : > { %4043 = vmatprep.subr.bf16.mxu1 %v3342_v40  ;;  %v6090_v40 = vld [vmem:[%s6846_s24 + $0x50] sm:$0xff] (!%p5670_p4)  }
 0x624   : > { %3880 = vmatpush1.bf16.msra.mxu0 %v3339_v2  ;;  %v6091_v2 = vld [vmem:[%s6846_s24 + $0xd0] sm:$0xff] (!%p5670_p4)  }
 0x625   : > { %4044 = vmatpush1.bf16.msra.mxu1 %v3341_v1  ;;  %5753 = vmatprep.subr.bf16.mxu0 (!%p5670_p4), %v6082_v11  ;;  %v6092_v1 = vld [vmem:[%s6846_s24 + $0x10] sm:$0xff] (!%p5670_p4)   ;;  %v6128_v11 = vld [vmem:[%s6846_s24 + $0x118] sm:$0xff] (!%p5670_p4)  }
 0x626   : > { %5775 = vmatprep.subr.bf16.mxu1 (!%p5670_p4), %v6083_v12  ;;  %v6131_v12 = vld [vmem:[%s6846_s24 + $0x1e0] sm:$0xff] (!%p5670_p4)  }
 0x627   : > { %3882 = vmatmul.mubr.bf16.vlgmr.msra.gmra.mrb[12].mxu0 %v7485_v42 }
 0x628   : > { %4046 = vmatmul.mubr.bf16.vlgmr.msra.gmra.mrb[12].mxu1 %v7485_v42  ;;  %v4123_v42 = vrot.slane %v4083_v21, %v7200_v37  ;;  %5754 = vmatpush3.bf16.msra.mxu0 (!%p5670_p4), %v6084_v13  ;;  %v6095_v21 = vld [vmem:[%s6846_s24 + $0xd8] sm:$0xff] (!%p5670_p4)   ;;  %v6132_v13 = vld [vmem:[%s6846_s24 + $0x120] sm:$0xff] (!%p5670_p4)  }
 0x629   : > { %5776 = vmatpush3.bf16.msra.mxu1 (!%p5670_p4), %v6085_v56  ;;  %5755 = vmatprep.subr.bf16.mxu0 (!%p5670_p4), %v6086_v59  ;;  %v6135_v56 = vld [vmem:[%s6846_s24 + $0x1e8] sm:$0xff] (!%p5670_p4)  }
 0x62a   : > { %4877 = vmatprep.mubr.bf16.mxu0 (!%p5670_p4), %v4321_v62  ;;  %5777 = vmatprep.subr.bf16.mxu1 (!%p5670_p4), %v6087_v19  ;;  %v6136_v59 = vld [vmem:[%s6846_s24 + $0x128] sm:$0xff] (!%p5670_p4)   ;;  %v6139_v19 = vld [vmem:[%s6846_s24 + $0x1f0] sm:$0xff] (!%p5670_p4)  }
 0x62b   : > { %v6137_v62 = vld [vmem:[%s6846_s24 + $0x1a8] sm:$0xff] (!%p5670_p4)  }
 0x62c   : > { %5756 = vmatpush3.bf16.msra.mxu0 (!%p5670_p4), %v6088_v15  ;;  %v6140_v15 = vld [vmem:[%s6846_s24 + $0x130] sm:$0xff] (!%p5670_p4)  }
 0x62d   : > { %5778 = vmatpush3.bf16.msra.mxu1 (!%p5670_p4), %v6089_v17  ;;  %5757 = vmatprep.subr.bf16.mxu0 (!%p5670_p4), %v6090_v40  ;;  %v6142_v17 = vld [vmem:[%s6846_s24 + $0x178] sm:$0xff] (!%p5670_p4)  }
 0x62e   : > { %5779 = vmatprep.subr.bf16.mxu1 (!%p5670_p4), %v6091_v2  ;;  %v6143_v40 = vld [vmem:[%s6846_s24 + $0x1f8] sm:$0xff] (!%p5670_p4)  }
 0x62f   : > { %v6144_v2 = vld [vmem:[%s6846_s24 + $0x138] sm:$0xff] (!%p5670_p4)  }
 0x630   : > { %5758 = vmatpush3.bf16.msra.mxu0 (!%p5670_p4), %v6092_v1  ;;  %v6145_v1 = vld [vmem:[%s6846_s24 + $0x1b8] sm:$0xff] (!%p5670_p4)  }
 0x631   : > { %5780 = vmatpush3.bf16.msra.mxu1 (!%p5670_p4), %v6093_v18  ;;  %5759 = vmatprep.subr.bf16.mxu0 (!%p5670_p4), %v6094_v20 }
 0x632   : > { %5781 = vmatprep.subr.bf16.mxu1 (!%p5670_p4), %v6095_v21  ;;  %v5010_v21 = vld [vmem:[%s6851_s20 + $0x10] sm:$0xff] (!%p5670_p4) }
 0x634   : > { %5760 = vmatpush3.bf16.msra.mxu0 (!%p5670_p4), %v6096_v22  ;;  %v5737_v22 = vcombine.high (!%p5670_p4), %v5010_v21, %v5010_v21 }
 0x635   : > { %5782 = vmatpush3.bf16.msra.mxu1 (!%p5670_p4), %v6097_v23  ;;  %5761 = vmatprep.subr.bf16.mxu0 (!%p5670_p4), %v6098_v25  ;;  %v5736_v23 = vcombine.low (!%p5670_p4), %v5010_v21, %v5010_v21 }
 0x636   : > { %5783 = vmatprep.subr.bf16.mxu1 (!%p5670_p4), %v6099_v10  ;;  %v6149_v10 = vld [vmem:[%s6851_s20 + $0x4] ss:$8 sps:$4 sm:$0xff] (!%p5670_p4)  }
 0x637   : > { %v5022_v25 = vsel (!%p5670_p4), %vm5020_vm1, %v5736_v23, 0 }
 0x638   : > { %5762 = vmatpush3.bf16.msra.mxu0 (!%p5670_p4), %v6100_v26  ;;  %v5005_v26 = vld [vmem:[#allocation5] sm:$0x3] (!%p5670_p4) }
 0x639   : > { %5763 = vmatprep.subr.bf16.mxu0 (!%p5670_p4), %v6102_v30  ;;  %v5006_v30 = vpack.c.bf16 (!%p5670_p4), %v5005_v26, %v5005_v26 }
 0x6fa   : > { %v3883_v28 = vpop.f32.mrb[12].mxu0 }
 0x6fb   : > { %v4132_v52 = vmul.f32 %v4115_v24, %v3883_v28  ;;  %v4047_v34 = vpop.f32.mrb[12].mxu1  ;;  %v3885_v57 = vpop.f32.mrb[13].mxu0  ;;  %v6101_v24 = vld [vmem:[%s6846_s24 + $0xa0] sm:$0xff] (!%p5670_p4)   ;;  %v6106_v28 = vld [vmem:[%s6846_s24 + $0x70] sm:$0xff] (!%p5670_p4)  }
 0x6fc   : > { %v4134_v36 = vmul.f32 %v4123_v42, %v4047_v34  ;;  %v4133_v54 = vmul.f32 %v4119_v27, %v3885_v57  ;;  %v4049_v46 = vpop.f32.mrb[13].mxu1  ;;  %v3887_v47 = vpop.f32.mrb[14].mxu0  ;;  %5784 = vmatpush3.bf16.msra.mxu1 (!%p5670_p4), %v6101_v24  ;;  %v6103_v42 = vld [vmem:[%s6846_s24 + $0xe8] sm:$0xff] (!%p5670_p4)   ;;  %v6109_v57 = vld [vmem:[%s6846_s24 + $0xb0] sm:$0xff] (!%p5670_p4)  }
 0x6fd   : > { %v4212_v48 = vadd.f32 %v4195_v41, %v4132_v52  ;;  %v4135_v55 = vmul.f32 %v4127_v43, %v4049_v46  ;;  %v4051_v45 = vpop.f32.mrb[14].mxu1  ;;  %v3888_v63 = vpop.f32.mrb[15].mxu0  ;;  %v6104_v27 = vld [vmem:[%s6846_s24 + $0x28] sm:$0xff] (!%p5670_p4)   ;;  %5785 = vmatprep.subr.bf16.mxu1 (!%p5670_p4), %v6103_v42  ;;  %v6108_v52 = vld [vmem:[%s6846_s24 + $0x30] sm:$0xff] (!%p5670_p4)   ;;  %v6112_v46 = vld [vmem:[%s6846_s24 + $0x38] sm:$0xff] (!%p5670_p4)   ;;  %v6446_v42 = vmov (!%p5670_p4), 0  }
 0x6fe   : > { %v4214_v49 = vadd.f32 %v4203_v32, %v4134_v36  ;;  %v4213_v5 = vadd.f32 %v4199_v44, %v4133_v54  ;;  %v4052_v0 = vpop.f32.mrb[15].mxu1  ;;  %v6105_v43 = vld [vmem:[%s6846_s24 + $0xa8] sm:$0xff] (!%p5670_p4)   ;;  %5764 = vmatpush3.bf16.msra.mxu0 (!%p5670_p4), %v6104_v27  ;;  %v6107_v32 = vld [vmem:[%s6846_s24 + $0xf0] sm:$0xff] (!%p5670_p4)   ;;  %v6111_v36 = vld [vmem:[%s6846_s24 + $0xf8] sm:$0xff] (!%p5670_p4)  }
 0x6ff   : > { %v4220_v3 = vmax.f32 %v4212_v48, 0.0  ;;  %v4215_v31 = vadd.f32 %v4207_v35, %v4135_v55  ;;  %5765 = vmatprep.subr.bf16.mxu0 (!%p5670_p4), %v6106_v28  ;;  %v6110_v35 = vld [vmem:[%s6846_s24 + $0x78] sm:$0xff] (!%p5670_p4)   ;;  %v4320_v48 = vpack.c.bf16 (!%p5670_p4), %v7679_v50, %v7679_v50  ;;  %v6114_v45 = vld [vmem:[%s6846_s24 + $0x140] sm:$0xff] (!%p5670_p4)  }
 0x700   : > { %v4222_v53 = vmax.f32 %v4214_v49, 0.0  ;;  %v4221_v33 = vmax.f32 %v4213_v5, 0.0  ;;  %5786 = vmatpush3.bf16.msra.mxu1 (!%p5670_p4), %v6105_v43  ;;  %v6115_v63 = vld [vmem:[%s6846_s24 + $0x1c0] sm:$0xff] (!%p5670_p4)   ;;  %v6129_v50 = vld [vmem:[%s6846_s24 + $0x198] sm:$0xff] (!%p5670_p4)  }
 0x701   : > { %v4223_v6 = vmax.f32 %v4215_v31, 0.0  ;;  %5787 = vmatprep.subr.bf16.mxu1 (!%p5670_p4), %v6107_v32  ;;  %v6116_v5 = vld [vmem:[%s6846_s24 + $0x100] sm:$0xff] (!%p5670_p4)   ;;  %v6118_v31 = vld [vmem:[%s6846_s24 + $0x148] sm:$0xff] (!%p5670_p4)  }
 0x702   : > { %v4249_v58 = vcombine.low %v4220_v3, %v4221_v33  ;;  %5766 = vmatpush3.bf16.msra.mxu0 (!%p5670_p4), %v6108_v52  ;;  %v6117_v3 = vld [vmem:[%s6846_s24 + $0x180] sm:$0xff] (!%p5670_p4)   ;;  %v6120_v33 = vld [vmem:[%s6846_s24 + $0x108] sm:$0xff] (!%p5670_p4)  }
 0x703   : > { %v4250_v39 = vcombine.low %v4222_v53, %v4223_v6  ;;  %5767 = vmatprep.subr.bf16.mxu0 (!%p5670_p4), %v6110_v35  ;;  %v6119_v53 = vld [vmem:[%s6846_s24 + $0x1c8] sm:$0xff] (!%p5670_p4)   ;;  %v5671_v43 = vld [vmem:[%s6856_s22 + $0x1] ss:$0 sm:$0xff] (!%p5670_p4) }
 0x704   : > { %v4257_v7 = vrot.slane %v4249_v58, %v6897_v60  ;;  %5788 = vmatpush3.bf16.msra.mxu1 (!%p5670_p4), %v6109_v57  ;;  %v6121_v6 = vld [vmem:[%s6846_s24 + $0x188] sm:$0xff] (!%p5670_p4)   ;;  %v6122_v58 = vld [vmem:[%s6846_s24 + $0x150] sm:$0xff] (!%p5670_p4)  }
 0x705   : > { %v4264_v8 = vrot.slane %v4250_v39, %v6897_v60  ;;  %4275 = sbr.rel (%p5670_p4) target bundleno = 2430 (0x97e), region = 88  ;;  %5789 = vmatprep.subr.bf16.mxu1 (!%p5670_p4), %v6111_v36  ;;  %v6123_v39 = vld [vmem:[%s6846_s24 + $0x1d0] sm:$0xff] (!%p5670_p4)   ;;  %v6147_v24 = vld [vmem:[%s6851_s20] ss:$8 sps:$4 sm:$0xff] (!%p5670_p4)  }
 0x706   : > { %5768 = vmatpush3.bf16.msra.mxu0 (!%p5670_p4), %v6112_v46 }
 0x707   : > { %v4265_v9 = vcombine.low %v4257_v7, %v4264_v8  ;;  %5797 = vmatprep.subr.bf16.mxu0 (!%p5670_p4), %v6114_v45  ;;  %v6124_v7 = vld [vmem:[%s6846_s24 + $0x110] sm:$0xff] (!%p5670_p4)  }
 0x708   : > { %v6125_v8 = vld [vmem:[%s6846_s24 + $0x190] sm:$0xff] (!%p5670_p4)  }
 0x709   : > { %v7672_v61 = vadd.f32 %v4265_v9, %v7424_v29  ;;  %v4278_v29 = vcombine.high (!%p5670_p4), %v7637_v38, %v7637_v38  ;;  %4878 = vmatmul.mubr.bf16.vlgmr.msra.gmra.mrb[0].mxu0 (!%p5670_p4), %v4320_v48  ;;  %v6126_v9 = vld [vmem:[%s6846_s24 + $0x158] sm:$0xff] (!%p5670_p4)  }
 0x70a   : > { %5798 = vmatpush3.bf16.msra.mxu0 (!%p5670_p4), %v6116_v5 }
 0x70b   : > { %4271 = vst [vmem:[#allocation2 + $0x8] sm:$0xff] %v7672_v61  ;;  %v7688_v4 = vrot.slane (!%p5670_p4), %v4278_v29, %v6897_v60  ;;  %v4295_v41 = vcombine.high (!%p5670_p4), %v7672_v61, %v7672_v61  ;;  %v7719_v44 = vrot.slane (!%p5670_p4), %v7672_v61, %v6897_v60  ;;  %5799 = vmatprep.subr.bf16.mxu0 (!%p5670_p4), %v6118_v31  ;;  %v6127_v61 = vld [vmem:[%s6846_s24 + $0x1d8] sm:$0xff] (!%p5670_p4)   ;;  %v6130_v29 = vld [vmem:[%s6846_s24 + $0x160] sm:$0xff] (!%p5670_p4)  }
 0x70d   : > { %v4294_v38 = vcombine.high %v7688_v4, %v7688_v4  ;;  %v7723_v34 = vrot.slane %v4295_v41, %v6897_v60  ;;  %v4310_v54 = vcombine.high %v7719_v44, %v7719_v44  ;;  %v6113_v60 = vld [vmem:[%s6846_s24 + $0xb8] sm:$0xff]   ;;  %v4322_v55 = vpack.c.bf16 %v7688_v4, %v7688_v4  ;;  %v6134_v4 = vld [vmem:[%s6846_s24 + $0x168] sm:$0xff]  }
 0x70e   : > { %5790 = vmatpush3.bf16.msra.mxu1 %v6113_v60  ;;  %5800 = vmatpush3.bf16.msra.mxu0 %v6120_v33  ;;  %v4324_v18 = vpack.c.bf16 %v7719_v44, %v7719_v44 }
 0x70f   : > { %v4323_v16 = vpack.c.bf16 %v4294_v38, %v4294_v38  ;;  %v4311_v47 = vcombine.high %v7723_v34, %v7723_v34  ;;  %v4325_v49 = vpack.c.bf16 %v4310_v54, %v4310_v54  ;;  %5819 = vmatprep.subr.bf16.mxu1 %v6115_v63  ;;  %5801 = vmatprep.subr.bf16.mxu0 %v6122_v58  ;;  %v6138_v38 = vld [vmem:[%s6846_s24 + $0x170] sm:$0xff]  }
 0x710   : > { %v4326_v20 = vpack.c.bf16 %v7723_v34, %v7723_v34 }
 0x711   : > { %4917 = vmatprep.mubr.bf16.mxu1 %v4323_v16  ;;  %v4327_v0 = vpack.c.bf16 %v4311_v47, %v4311_v47  ;;  %4957 = vmatprep.mubr.bf16.mxu0 %v4325_v49  ;;  %v6141_v16 = vld [vmem:[%s6846_s24 + $0x1b0] sm:$0xff]  }
 0x712   : > { %4918 = vmatmul.mubr.bf16.vlgmr.msra.gmra.mrb[0].mxu1 %v4322_v55  ;;  %5802 = vmatpush3.bf16.msra.mxu0 %v6124_v7 }
 0x713   : > { %5820 = vmatpush3.bf16.msra.mxu1 %v6117_v3  ;;  %4997 = vmatprep.mubr.bf16.mxu1 %v4327_v0 }
 0x714   : > { %5821 = vmatprep.subr.bf16.mxu1 %v6119_v53  ;;  %5803 = vmatprep.subr.bf16.mxu0 %v6126_v9  ;;  %v5139_v9 = vld [vmem:[%s6851_s20 + $0x18] sm:$0x11] }
 0x716   : > { %5804 = vmatpush3.bf16.msra.mxu0 %v6128_v11  ;;  %v5140_v11 = vunpack.c.l.bf16 %v5139_v9 }
 0x717   : > { %5822 = vmatpush3.bf16.msra.mxu1 %v6121_v6  ;;  %5805 = vmatprep.subr.bf16.mxu0 %v6130_v29 }
 0x718   : > { %5823 = vmatprep.subr.bf16.mxu1 %v6123_v39 }
 0x71a   : > { %5806 = vmatpush3.bf16.msra.mxu0 %v6132_v13 }
 0x71b   : > { %5824 = vmatpush3.bf16.msra.mxu1 %v6125_v8  ;;  %5807 = vmatprep.subr.bf16.mxu0 %v6134_v4  ;;  %v5123_v8 = vld [vmem:[%s6856_s22] ss:$4 sm:$0x3] }
 0x71c   : > { %5825 = vmatprep.subr.bf16.mxu1 %v6127_v61  ;;  %v5128_v61 = vrot.slane %v5123_v8, %v7200_v37  ;;  %v5132_v29 = vrot.slane %v5123_v8, %v7215_v51 }
 0x71e   : > { %5808 = vmatpush3.bf16.msra.mxu0 %v6136_v59 }
 0x71f   : > { %5826 = vmatpush3.bf16.msra.mxu1 %v6129_v50  ;;  %5809 = vmatprep.subr.bf16.mxu0 %v6138_v38  ;;  %v5145_v38 = vrot.slane %v5140_v11, %v7200_v37 }
 0x720   : > { %5827 = vmatprep.subr.bf16.mxu1 %v6131_v12  ;;  %v5141_v12 = vunpack.c.h.bf16 %v5139_v9 }
 0x722   : > { %5810 = vmatpush3.bf16.msra.mxu0 %v6140_v15  ;;  %v5149_v15 = vrot.slane %v5141_v12, %v7200_v37 }
 0x723   : > { %5828 = vmatpush3.bf16.msra.mxu1 %v6133_v14  ;;  %5811 = vmatprep.subr.bf16.mxu0 %v6142_v17 }
 0x724   : > { %5829 = vmatprep.subr.bf16.mxu1 %v6135_v56 }
 0x726   : > { %5812 = vmatpush3.bf16.msra.mxu0 %v6144_v2 }
 0x727   : > { %5830 = vmatpush3.bf16.msra.mxu1 %v6137_v62  ;;  %5738 = vmatprep.subr.msk.bf16.mxu0 %vm5020_vm1, %v5737_v22 }
 0x728   : > { %5831 = vmatprep.subr.bf16.mxu1 %v6139_v19 }
 0x729   : > { %4958 = vmatmul.mubr.bf16.vlgmr.msra.gmra.mrb[4].mxu0 %v4324_v18 }
 0x72a   : > { %5028 = vmatpush1.bf16.msra.mxu0 %v5022_v25  ;;  %5059 = vmatprep.mubr.bf16.mxu0 %v6446_v42 }
 0x72b   : > { %5832 = vmatpush3.bf16.msra.mxu1 %v6141_v16 }
 0x72c   : > { %5833 = vmatprep.subr.bf16.mxu1 %v6143_v40 }
 0x72f   : > { %5834 = vmatpush3.bf16.msra.mxu1 %v6145_v1 }
 0x730   : > { %5082 = vmatprep.subr.bf16.mxu1 %v6149_v10 }
 0x731   : > { %5739 = vmatmul.mubr.msk.bf16.vlgmr.msra.gmra.mrb[8].mxu0 %vm5016_vm2, %v5006_v30 }
 0x732   : > { %4998 = vmatmul.mubr.bf16.vlgmr.msra.gmra.mrb[4].mxu1 %v4326_v20  ;;  %v5743_v20 = vld [vmem:[%s6856_s22 + $0x2] ss:$0 sm:$0xff] }
 0x733   : > { %5083 = vmatpush1.bf16.msra.mxu1 %v6147_v24  ;;  %5114 = vmatprep.mubr.bf16.mxu1 %v6446_v42 }
 0x7dc   : > { %v5769_v27 = vpop.f32.mrb[0].mxu0 }
 0x7dd   : > { %v5770_v28 = vpop.f32.mrb[1].mxu0 }
 0x7de   : > { %v5771_v32 = vadd.f32 %v5770_v28, %v5769_v27  ;;  %v5772_v52 = vpop.f32.mrb[2].mxu0 }
 0x7df   : > { %v5773_v35 = vpop.f32.mrb[3].mxu0 }
 0x7e0   : > { %v4880_v36 = vadd.f32 %v5771_v32, %v5671_v43 }
 0x7e5   : > { %v5791_v41 = vpop.f32.mrb[0].mxu1 }
 0x7e6   : > { %v5792_v44 = vpop.f32.mrb[1].mxu1 }
 0x7e7   : > { %v5793_v34 = vadd.f32 %v5792_v44, %v5791_v41  ;;  %v5794_v57 = vpop.f32.mrb[2].mxu1 }
 0x7e8   : > { %v5795_v54 = vpop.f32.mrb[3].mxu1 }
 0x7e9   : > { %v4920_v46 = vadd.f32 %v5793_v34, %v4880_v36 }
 0x7fc   : > { %v5813_v47 = vpop.f32.mrb[4].mxu0 }
 0x7fd   : > { %v5814_v48 = vpop.f32.mrb[5].mxu0 }
 0x7fe   : > { %v5815_v55 = vadd.f32 %v5814_v48, %v5813_v47  ;;  %v5816_v63 = vpop.f32.mrb[6].mxu0 }
 0x7ff   : > { %v5817_v0 = vpop.f32.mrb[7].mxu0 }
 0x800   : > { %v4960_v3 = vadd.f32 %v5815_v55, %v4920_v46 }
 0x804   : > { %v5061_v6 = vpop.f32.mrb[8].mxu0 }
 0x805   : > { %v5835_v60 = vpop.f32.mrb[4].mxu1  ;;  %v5063_v58 = vpop.f32.mrb[9].mxu0 }
 0x806   : > { %v5836_v45 = vpop.f32.mrb[5].mxu1  ;;  %v5065_v39 = vpop.f32.mrb[10].mxu0 }
 0x807   : > { %v5837_v49 = vadd.f32 %v5836_v45, %v5835_v60  ;;  %v5838_v5 = vpop.f32.mrb[6].mxu1  ;;  %v5066_v7 = vpop.f32.mrb[11].mxu0 }
 0x808   : > { %v5839_v31 = vpop.f32.mrb[7].mxu1 }
 0x809   : > { %v5000_v53 = vadd.f32 %v5837_v49, %v4960_v3 }
 0x80b   : > { %v5007_v33 = vpack.c.bf16 %v5000_v53, %v5000_v53 }
 0x80d   : > { %5742 = vmatmul.mubr.msk.bf16.vlgmr.msra.gmra.mrb[8].mxu1 %vm5078_vm3, %v5007_v33 }
 0x8e0   : > { %v5116_v50 = vpop.f32.mrb[8].mxu1 }
 0x8e1   : > { %v5117_v13 = vadd.f32 %v5116_v50, %v5061_v6  ;;  %v5118_v14 = vpop.f32.mrb[9].mxu1 }
 0x8e2   : > { %v5119_v4 = vadd.f32 %v5118_v14, %v5063_v58  ;;  %v5120_v56 = vpop.f32.mrb[10].mxu1 }
 0x8e3   : > { %v5135_v59 = vadd.f32 %v5128_v61, %v5117_v13  ;;  %v5121_v62 = vpop.f32.mrb[11].mxu1 }
 0x8e4   : > { %v5136_v19 = vadd.f32 %v5132_v29, %v5119_v4 }
 0x8e5   : > { %v5137_v16 = vmax.f32 %v5135_v59, 0.0 }
 0x8e6   : > { %v5138_v17 = vmax.f32 %v5136_v19, 0.0 }
 0x8e7   : > { %v5150_v40 = vmul.f32 %v5145_v38, %v5137_v16 }
 0x8e8   : > { %v5151_v2 = vmul.f32 %v5149_v15, %v5138_v17 }
 0x8e9   : > { %v5153_v51 = vsel %vm5152_vm4, %v5150_v40, 0.0 }
 0x8ea   : > { %v5154_v1 = vsel %vm5152_vm4, %v5151_v2, 0.0 }
 0x8eb   : > { %v5155_v18 = vadd.f32 %v5154_v1, %v5153_v51 }
 0x8ed   : > { %5156 = vadd.xlane.f32.xlu0 %v5155_v18 }
 0x97a   : > { %v5157_v21 = vpop.xlane.xlu0 %5156 }
 0x97b   : > { %v5163_v22 = vadd.f32 %v5743_v20, %v5157_v21 }
 0x97d   : > { %5165 = vst.msk [vmem:[%s6861_s17] sm:$0x3] %vm5164_vm5, %v5163_v22 }
 0x97e PF: > { %s21_s19 = sadd.s32 1, %s6429_s19   ;;  %s7911_s18 = sld [smem:[#allocation22_spill]] }
 0x97f   : > { %p18_p8 = scmp.ge.s32.totalorder %s21_s19, 6   ;;  %s7912_s15 = sld [smem:[#allocation17_spill]] }
 0x980   : > { %s7913_s16 = sld [smem:[#allocation18_spill]]  ;;  %s7914_s17 = sld [smem:[#allocation20_spill]] }
 0x981   : > { %s7915_s2 = sld [smem:[#allocation21_spill]]  ;;  %s7916_s30 = smov %s6393_s10 }
 0x982   : > { %s7917_s10 = smov %s6397_s11  ;;  %s7918_s11 = smov %s6729_s29 }
 0x983   : > { %s7919_s12 = smov %s6405_s13  ;;  %s7920_s13 = smov %s6409_s14 }
 0x984   : > { %s7921_s14 = smov %s7911_s18  ;;  %20 = sbr.rel (!%p18_p8) target bundleno = 18 (0x12), region = 155 }
 0x987   : > { %s7922_s18 = smov %s7915_s2 }
 0x98b   :  { %5185 = vsyncpa [#allocation4], 1 }
 0x98c   :  { %5187 = vsyncpa [#allocation4 + $0x1], 1 }
 0x98d   :  { %5188 = vsyncpa [#allocation6], 1 }

</bundles_post_ra>
